<compile_context>
chip_gen: v7x
topology: tpu7x:2x2x1
jax: 0.10.0
libtpu: 0.0.40
codegen_flags: <defaults>
</compile_context>

<pallas_src>
import jax
import jax.numpy as jnp
from jax.experimental import pallas as pl
from jax.experimental.pallas import tpu as pltpu

IN_FEATURES = 164 * 70   # 11480
H1 = 128
H2 = 32
OUT = 2


def _round_up(n, m):
    return ((n + m - 1) // m) * m


def _tile_config():
    """Pick (batch_tile, vmem_limit_bytes) from the chip's VMEM capacity.

    x is streamed as f32 (cast to bf16 in-kernel), so per grid step VMEM holds
    2 double-buffered f32 x tiles, a bf16 convert temporary, and the resident
    bf16 weights (~3 MB for w1, double-buffered ~6 MB).
    """
    vmem_bytes = 64 << 20  # conservative default (v7x-class per-TC VMEM)
    try:
        info = pltpu.get_tpu_info()
        vmem_bytes = int(getattr(info, "vmem_capacity_bytes", vmem_bytes))
    except Exception:
        pass
    if vmem_bytes <= (64 << 20):
        # v7x-class (64 MiB per TC): TB=256 -> ~36 MB peak; cap limit < physical.
        return 256, 56 << 20
    # v5e / v6e (128 MiB VMEM): TB=512 -> ~65 MB peak; bigger tile amortizes the
    # ~0.35 us per-grid-step overhead on the HBM-bound x stream.
    return 512, 100 << 20


def _mlp_softmax_kernel(x_ref, w1_ref, b1_ref, w2_ref, b2_ref,
                        w3_ref, b3_ref, o_ref):
    # x tile arrives straight from HBM as f32; cast in-VMEM (avoids a separate
    # wrapper-side convert pass over x).
    x_bf = x_ref[...].astype(jnp.bfloat16)

    # Layer 1: (TB, 11480)bf16 @ (11480, 128)bf16 on the MXU, f32 acc.
    h1 = jnp.dot(x_bf, w1_ref[...], preferred_element_type=jnp.float32)
    h1 = jnp.maximum(h1 + b1_ref[...], 0.0)

    # Layer 2: (TB, 128) @ (128, 32)
    h2 = jnp.dot(h1.astype(jnp.bfloat16), w2_ref[...],
                 preferred_element_type=jnp.float32)
    h2 = jnp.maximum(h2 + b2_ref[...], 0.0)

    # Layer 3: (TB, 32) @ (32, 2) -> f32 logits
    logits = jnp.dot(h2.astype(jnp.bfloat16), w3_ref[...],
                     preferred_element_type=jnp.float32)
    logits = logits + b3_ref[...]

    # Numerically stable softmax over the class dim (dim=1 in PyTorch), exact
    # normalization in f32 (no approx reciprocal) -> rows sum to 1.
    m = jnp.max(logits, axis=-1, keepdims=True)
    e = jnp.exp(logits - m)
    o_ref[...] = (e / jnp.sum(e, axis=-1, keepdims=True)).astype(o_ref.dtype)


def discriminator_forward(x, params):
    """x: (B, 164, 70) float32. Returns softmax probs of shape (B, 2) float32."""
    w1, b1, w2, b2, w3, b3 = params
    B = x.shape[0]

    # Contiguous flatten is free; x stays f32 (single HBM read inside kernel).
    x_flat = x.reshape(B, IN_FEATURES)
    w1b = w1.astype(jnp.bfloat16)
    w2b = w2.astype(jnp.bfloat16)
    w3b = w3.astype(jnp.bfloat16)

    tb_target, vmem_limit = _tile_config()

    # No batch padding: partial last block is handled by Pallas; out-of-range
    # rows are independent and never written back.
    TB = min(tb_target, B)
    if TB == B and B >= 16:
        # Ensure >= 2 grid steps so multi-TensorCore chips (v7x) can split.
        TB = _round_up((B + 1) // 2, 8)
    grid = (pl.cdiv(B, TB),)

    batch_spec = lambda shape: pl.BlockSpec(shape, lambda i: (i, 0))
    const_spec = lambda shape: pl.BlockSpec(shape, lambda i: (0, 0))

    flops = 2 * B * (IN_FEATURES * H1 + H1 * H2 + H2 * OUT)
    bytes_accessed = (B * IN_FEATURES * 4 + B * OUT * 4
                      + (IN_FEATURES * H1 + H1 * H2 + H2 * OUT) * 2
                      + (H1 + H2 + OUT) * 4)

    out = pl.pallas_call(
        _mlp_softmax_kernel,
        out_shape=jax.ShapeDtypeStruct((B, OUT), jnp.float32),
        grid=grid,
        in_specs=[
            batch_spec((TB, IN_FEATURES)),      # x tile: f32, double-buffered
            const_spec((IN_FEATURES, H1)),      # w1: bf16, VMEM-resident
            const_spec((1, H1)),                # b1
            const_spec((H1, H2)),               # w2
            const_spec((1, H2)),                # b2
            const_spec((H2, OUT)),              # w3
            const_spec((1, OUT)),               # b3
        ],
        out_specs=batch_spec((TB, OUT)),
        compiler_params=pltpu.CompilerParams(
            dimension_semantics=("parallel",),
            vmem_limit_bytes=vmem_limit,
        ),
        cost_estimate=pl.CostEstimate(
            flops=flops, transcendentals=2 * B, bytes_accessed=bytes_accessed),
    )(x_flat, w1b, b1, w2b, b2, w3b, b3)

    return out


def init_params(key):
    """Deterministic parameter init (PyTorch-Linear-style uniform bounds)."""
    keys = jax.random.split(key, 6)

    def linear(kw, kb, fan_in, fan_out):
        bound = 1.0 / jnp.sqrt(fan_in)
        w = jax.random.uniform(kw, (fan_in, fan_out), jnp.float32, -bound, bound)
        b = jax.random.uniform(kb, (1, fan_out), jnp.float32, -bound, bound)
        return w, b

    w1, b1 = linear(keys[0], keys[1], IN_FEATURES, H1)
    w2, b2 = linear(keys[2], keys[3], H1, H2)
    w3, b3 = linear(keys[4], keys[5], H2, OUT)
    return (w1, b1, w2, b2, w3, b3)


if __name__ == "__main__":
    key = jax.random.PRNGKey(0)
    k_x, k_p = jax.random.split(key)
    params = init_params(k_p)
    w1, b1, w2, b2, w3, b3 = params

    def ref_forward(xin):
        xf = xin.reshape(xin.shape[0], IN_FEATURES)
        h1 = jnp.maximum(xf @ w1 + b1, 0.0)
        h2 = jnp.maximum(h1 @ w2 + b2, 0.0)
        return jax.nn.softmax(h2 @ w3 + b3, axis=-1)

    # B=2: spec-sized smoke test. B=20: exercises the split grid (>=2 steps)
    # and the partial last block (no batch padding).
    for B in (2, 20):
        x = jax.random.normal(jax.random.fold_in(k_x, B), (B, 164, 70),
                              dtype=jnp.float32)
        out = jax.block_until_ready(discriminator_forward(x, params))
        ref = ref_forward(x)
        assert out.shape == (B, OUT)
        # exact normalization -> rows sum to 1 within f32
        assert bool(jnp.allclose(jnp.sum(out, axis=1), 1.0, atol=1e-5))
        # matches f32 reference within bf16 input-quantization tolerance
        assert bool(jnp.allclose(out, ref, atol=3e-2))

    print("KERNEL_OK")
</pallas_src>

<mosaic_0001>
module attributes {stable_mosaic.version = 11 : i64} {
  func.func @_mlp_softmax_kernel(%arg0: i32, %arg1: memref<2x11480xf32, #tpu.memory_space<vmem>>, %arg2: memref<11480x128xbf16, #tpu.memory_space<vmem>>, %arg3: memref<1x128xf32, #tpu.memory_space<vmem>>, %arg4: memref<128x32xbf16, #tpu.memory_space<vmem>>, %arg5: memref<1x32xf32, #tpu.memory_space<vmem>>, %arg6: memref<32x2xbf16, #tpu.memory_space<vmem>>, %arg7: memref<1x2xf32, #tpu.memory_space<vmem>>, %arg8: memref<2x2xf32, #tpu.memory_space<vmem>>) attributes {dimension_semantics = [#tpu.dimension_semantics<parallel>], iteration_bounds = array<i64: 1>, scalar_prefetch = 0 : i64, scratch_operands = 0 : i64, tpu.core_type = #tpu.core_type<tc>, window_params = [{transform_indices = @transform_0, window_bounds = array<i64: 2, 11480>}, {pipeline_mode = #tpu.pipeline_mode<synchronous>, transform_indices = @transform_1, window_bounds = array<i64: 11480, 128>}, {pipeline_mode = #tpu.pipeline_mode<synchronous>, transform_indices = @transform_2, window_bounds = array<i64: 1, 128>}, {pipeline_mode = #tpu.pipeline_mode<synchronous>, transform_indices = @transform_3, window_bounds = array<i64: 128, 32>}, {pipeline_mode = #tpu.pipeline_mode<synchronous>, transform_indices = @transform_4, window_bounds = array<i64: 1, 32>}, {pipeline_mode = #tpu.pipeline_mode<synchronous>, transform_indices = @transform_5, window_bounds = array<i64: 32, 2>}, {pipeline_mode = #tpu.pipeline_mode<synchronous>, transform_indices = @transform_6, window_bounds = array<i64: 1, 2>}, {transform_indices = @transform_7, window_bounds = array<i64: 2, 2>}]} {
    %c0 = arith.constant 0 : index
    %c0_0 = arith.constant 0 : index
    %0 = vector.load %arg1[%c0, %c0_0] : memref<2x11480xf32, #tpu.memory_space<vmem>>, vector<2x11480xf32>
    %1 = arith.truncf %0 : vector<2x11480xf32> to vector<2x11480xbf16>
    %c0_1 = arith.constant 0 : index
    %c0_2 = arith.constant 0 : index
    %2 = vector.load %arg2[%c0_1, %c0_2] : memref<11480x128xbf16, #tpu.memory_space<vmem>>, vector<11480x128xbf16>
    %cst = arith.constant dense<0.000000e+00> : vector<2x128xf32>
    %3 = tpu.matmul %1, %2, %cst {dimension_numbers = #tpu.dot_dimension_numbers<[1], [0], [0], [1], [0, 0, 1, 1], [], []>} : vector<2x11480xbf16>, vector<11480x128xbf16>, vector<2x128xf32> -> vector<2x128xf32>
    %c0_3 = arith.constant 0 : index
    %c0_4 = arith.constant 0 : index
    %4 = vector.load %arg3[%c0_3, %c0_4] : memref<1x128xf32, #tpu.memory_space<vmem>>, vector<1x128xf32>
    %5 = vector.broadcast %4 : vector<1x128xf32> to vector<2x128xf32>
    %6 = arith.addf %3, %5 : vector<2x128xf32>
    %cst_5 = arith.constant 0.000000e+00 : f32
    %7 = vector.broadcast %cst_5 : f32 to vector<2x128xf32>
    %8 = arith.maximumf %6, %7 : vector<2x128xf32>
    %9 = arith.truncf %8 : vector<2x128xf32> to vector<2x128xbf16>
    %c0_6 = arith.constant 0 : index
    %c0_7 = arith.constant 0 : index
    %10 = vector.load %arg4[%c0_6, %c0_7] : memref<128x32xbf16, #tpu.memory_space<vmem>>, vector<128x32xbf16>
    %cst_8 = arith.constant dense<0.000000e+00> : vector<2x32xf32>
    %11 = tpu.matmul %9, %10, %cst_8 {dimension_numbers = #tpu.dot_dimension_numbers<[1], [0], [0], [1], [0, 0, 1, 1], [], []>} : vector<2x128xbf16>, vector<128x32xbf16>, vector<2x32xf32> -> vector<2x32xf32>
    %c0_9 = arith.constant 0 : index
    %c0_10 = arith.constant 0 : index
    %12 = vector.load %arg5[%c0_9, %c0_10] : memref<1x32xf32, #tpu.memory_space<vmem>>, vector<1x32xf32>
    %13 = vector.broadcast %12 : vector<1x32xf32> to vector<2x32xf32>
    %14 = arith.addf %11, %13 : vector<2x32xf32>
    %cst_11 = arith.constant 0.000000e+00 : f32
    %15 = vector.broadcast %cst_11 : f32 to vector<2x32xf32>
    %16 = arith.maximumf %14, %15 : vector<2x32xf32>
    %17 = arith.truncf %16 : vector<2x32xf32> to vector<2x32xbf16>
    %c0_12 = arith.constant 0 : index
    %c0_13 = arith.constant 0 : index
    %18 = vector.load %arg6[%c0_12, %c0_13] : memref<32x2xbf16, #tpu.memory_space<vmem>>, vector<32x2xbf16>
    %cst_14 = arith.constant dense<0.000000e+00> : vector<2x2xf32>
    %19 = tpu.matmul %17, %18, %cst_14 {dimension_numbers = #tpu.dot_dimension_numbers<[1], [0], [0], [1], [0, 0, 1, 1], [], []>} : vector<2x32xbf16>, vector<32x2xbf16>, vector<2x2xf32> -> vector<2x2xf32>
    %c0_15 = arith.constant 0 : index
    %c0_16 = arith.constant 0 : index
    %20 = vector.load %arg7[%c0_15, %c0_16] : memref<1x2xf32, #tpu.memory_space<vmem>>, vector<1x2xf32>
    %21 = vector.broadcast %20 : vector<1x2xf32> to vector<2x2xf32>
    %22 = arith.addf %19, %21 : vector<2x2xf32>
    %cst_17 = arith.constant dense<0xFF800000> : vector<2xf32>
    %23 = vector.multi_reduction <maximumf>, %22, %cst_17 [1] : vector<2x2xf32> to vector<2xf32>
    %24 = vector.shape_cast %23 : vector<2xf32> to vector<2x1xf32>
    %25 = vector.broadcast %24 : vector<2x1xf32> to vector<2x2xf32>
    %26 = arith.subf %22, %25 : vector<2x2xf32>
    %27 = math.exp %26 : vector<2x2xf32>
    %cst_18 = arith.constant dense<0.000000e+00> : vector<2xf32>
    %28 = vector.multi_reduction <add>, %27, %cst_18 [1] : vector<2x2xf32> to vector<2xf32>
    %29 = vector.shape_cast %28 : vector<2xf32> to vector<2x1xf32>
    %30 = vector.broadcast %29 : vector<2x1xf32> to vector<2x2xf32>
    %31 = arith.divf %27, %30 : vector<2x2xf32>
    %c0_19 = arith.constant 0 : index
    %c0_20 = arith.constant 0 : index
    %32 = vector.load %arg8[%c0_19, %c0_20] : memref<2x2xf32, #tpu.memory_space<vmem>>, vector<2x2xf32>
    tpu.vector_store %arg8[%c0_19, %c0_20], %31 {strides = array<i32>} : memref<2x2xf32, #tpu.memory_space<vmem>>, vector<2x2xf32>,
    return
  }
  func.func @transform_0(%arg0: i32) -> (i32, i32) {
    %c0_i32 = arith.constant 0 : i32
    %c0_i32_0 = arith.constant 0 : i32
    return %arg0, %c0_i32 : i32, i32
  }
  func.func @transform_1(%arg0: i32) -> (i32, i32) {
    %c0_i32 = arith.constant 0 : i32
    %c0_i32_0 = arith.constant 0 : i32
    %c0_i32_1 = arith.constant 0 : i32
    return %c0_i32, %c0_i32_0 : i32, i32
  }
  func.func @transform_2(%arg0: i32) -> (i32, i32) {
    %c0_i32 = arith.constant 0 : i32
    %c0_i32_0 = arith.constant 0 : i32
    %c0_i32_1 = arith.constant 0 : i32
    return %c0_i32, %c0_i32_0 : i32, i32
  }
  func.func @transform_3(%arg0: i32) -> (i32, i32) {
    %c0_i32 = arith.constant 0 : i32
    %c0_i32_0 = arith.constant 0 : i32
    %c0_i32_1 = arith.constant 0 : i32
    return %c0_i32, %c0_i32_0 : i32, i32
  }
  func.func @transform_4(%arg0: i32) -> (i32, i32) {
    %c0_i32 = arith.constant 0 : i32
    %c0_i32_0 = arith.constant 0 : i32
    %c0_i32_1 = arith.constant 0 : i32
    return %c0_i32, %c0_i32_0 : i32, i32
  }
  func.func @transform_5(%arg0: i32) -> (i32, i32) {
    %c0_i32 = arith.constant 0 : i32
    %c0_i32_0 = arith.constant 0 : i32
    %c0_i32_1 = arith.constant 0 : i32
    return %c0_i32, %c0_i32_0 : i32, i32
  }
  func.func @transform_6(%arg0: i32) -> (i32, i32) {
    %c0_i32 = arith.constant 0 : i32
    %c0_i32_0 = arith.constant 0 : i32
    %c0_i32_1 = arith.constant 0 : i32
    return %c0_i32, %c0_i32_0 : i32, i32
  }
  func.func @transform_7(%arg0: i32) -> (i32, i32) {
    %c0_i32 = arith.constant 0 : i32
    %c0_i32_0 = arith.constant 0 : i32
    return %arg0, %c0_i32 : i32, i32
  }
}

</mosaic_0001>

<bundles_post_ra>
// kernel: tpu_custom_call.1
= control target key start
LH: loop header
LB: loop body
LE: loop exit
PB: predicated region body
PF: predicated region fallthrough
CT: control target
= control target key end

     0   :  { %12 = vsyncpa [#allocation3], 0  ;;  %s11390_s0 = inlined_call_operand.hbm [shape: f32[2,11480], index: 0, kind: input, shape index: {}]   ;;  %s11391_s1 = inlined_call_operand.hbm [shape: bf16[11480,128], index: 1, kind: input, shape index: {}]   ;;  %s11392_s2 = inlined_call_operand.hbm [shape: f32[1,128], index: 2, kind: input, shape index: {}]   ;;  %s11393_s3 = inlined_call_operand.vmem [shape: bf16[128,32], index: 3, kind: input, shape index: {}]   ;;  %s11394_s4 = inlined_call_operand.hbm [shape: f32[1,32], index: 4, kind: input, shape index: {}]   ;;  %s11395_s5 = inlined_call_operand.vmem [shape: bf16[32,2], index: 5, kind: input, shape index: {}]   ;;  %s11396_s6 = inlined_call_operand.hbm [shape: f32[1,2], index: 6, kind: input, shape index: {}]   ;;  %s11397_s7 = inlined_call_operand.hbm [shape: f32[2,2], index: 7, kind: output, shape index: {}]  }
   0x1   :  { %13 = vsyncpa [#allocation6], 0 }
   0x2   :  { %14 = vsyncpa [#allocation9], 0 }
   0x3   :  { %15 = vsyncpa [#allocation4], 0  ;;  %s11111_s24 = smov [#allocation5]   ;;  %s10971_s28 = scalar_lea.hbm %s11391_s1, 91840 }
   0x4   :  { %s31_s25 = sshll.u32 %s11111_s24, 4  ;;  %p10972_p0 = scmp.ne.s32.totalorder %s11391_s1, %s10971_s28  ;;  %s32_s25 = int_to_ptr.vmem [resolvable:$true] %s31_s25 }
   0x5   :  { %p10975_p1 = scmp.lt.u32.totalorder %s10971_s28, %s11391_s1 }
   0x7   :  { %p10977_p2 = pnand %p10975_p1, %p10972_p0 }
   0x9   :  { %10980 = shalt.err (!%p10977_p2)
}
   0xa   :  { %s10981_s10 = scalar_lea.vmem %s32_s25, 91840  ;;  %p10986_p4 = scmp.lt.s32.totalorder %s32_s25, %s32_s25 }
   0xb   :  { %p10982_p3 = scmp.ne.s32.totalorder %s32_s25, %s10981_s10  ;;  %p10987_p5 = scmp.lt.s32.totalorder %s10981_s10, %s10981_s10 }
   0xd   :  { %p10988_p6 = por %p10987_p5, %p10986_p4 }
   0xf   :  { %p10989_p7 = pnand %p10988_p6, %p10982_p3 }
  0x11   :  { %10992 = shalt.err (!%p10989_p7)
}
  0x12   :  { %s11112_s11 = smov 64   ;;  %s11113_s12 = smov 4  }
  0x13   :  { %37 = dma.hbm_to_vmem [thread:$0]  %s11391_s1, 91840, %s32_s25, [#allocation6], %s11112_s11, %s11112_s11, %s11113_s12  }
  0x14   :  { %s11114_s15 = smov [#allocation8]   ;;  %s11115_s17 = smov [#allocation2]  }
  0x15   :  { %s56_s16 = sshll.u32 %s11114_s15, 4  ;;  %s22_s18 = sshll.u32 %s11115_s17, 4  ;;  %s57_s16 = int_to_ptr.vmem [resolvable:$true] %s56_s16  ;;  %s23_s18 = int_to_ptr.vmem [resolvable:$true] %s22_s18 }
  0x16   :  { %s10993_s21 = scalar_lea.hbm %s11394_s4, 16 }
  0x17   :  { %p10994_p8 = scmp.ne.s32.totalorder %s11394_s4, %s10993_s21  ;;  %p10997_p9 = scmp.lt.u32.totalorder %s10993_s21, %s11394_s4 }
  0x19   :  { %p10999_p10 = pnand %p10997_p9, %p10994_p8 }
  0x1b   :  { %11002 = shalt.err (!%p10999_p10)
}
  0x1c   :  { %s11003_s1 = scalar_lea.vmem %s57_s16, 16  ;;  %s11007_s25 = scalar_lea.vmem %s57_s16, 32 }
  0x1d   :  { %p11004_p11 = scmp.ne.s32.totalorder %s57_s16, %s11003_s1  ;;  %p11008_p12 = scmp.lt.s32.totalorder %s57_s16, %s57_s16 }
  0x1e   :  { %p11009_p13 = scmp.lt.s32.totalorder %s11007_s25, %s11003_s1 }
  0x20   :  { %p11010_p0 = por %p11009_p13, %p11008_p12 }
  0x22   :  { %p11011_p1 = pnand %p11010_p0, %p11004_p11 }
  0x24   :  { %11014 = shalt.err (!%p11011_p1)
}
  0x25   :  { %59 = dma.hbm_to_vmem [thread:$0]  %s11394_s4, 16, %s57_s16, [#allocation9]  }
  0x26   :  { %s11015_s8 = scalar_lea.hbm %s11390_s0, 2880 }
  0x27   :  { %p11016_p2 = scmp.ne.s32.totalorder %s11390_s0, %s11015_s8  ;;  %p11019_p3 = scmp.lt.u32.totalorder %s11015_s8, %s11390_s0 }
  0x29   :  { %p11021_p4 = pnand %p11019_p3, %p11016_p2 }
  0x2b   :  { %11024 = shalt.err (!%p11021_p4)
}
  0x2c   :  { %s11025_s13 = scalar_lea.vmem %s23_s18, 2880  ;;  %p11030_p6 = scmp.lt.s32.totalorder %s23_s18, %s23_s18 }
  0x2d   :  { %p11026_p5 = scmp.ne.s32.totalorder %s23_s18, %s11025_s13  ;;  %p11031_p7 = scmp.lt.s32.totalorder %s11025_s13, %s11025_s13 }
  0x2f   :  { %p11032_p8 = por %p11031_p7, %p11030_p6 }
  0x31   :  { %p11033_p9 = pnand %p11032_p8, %p11026_p5 }
  0x33   :  { %11036 = shalt.err (!%p11033_p9)
}
  0x34   :  { %25 = dma.hbm_to_vmem [thread:$0]  %s11390_s0, 2880, %s23_s18, [#allocation3]  }
  0x35   :  { %s11116_s15 = smov [#allocation7]   ;;  %s11117_s17 = smov [#allocation10]  }
  0x36   :  { %s44_s16 = sshll.u32 %s11116_s15, 4  ;;  %s68_s19 = sshll.u32 %s11117_s17, 4  ;;  %s45_s16 = int_to_ptr.vmem [resolvable:$true] %s44_s16  ;;  %s69_s19 = int_to_ptr.vmem [resolvable:$true] %s68_s19 }
  0x37   :  { %s11037_s22 = scalar_lea.hbm %s11392_s2, 16 }
  0x38   :  { %p11038_p10 = scmp.ne.s32.totalorder %s11392_s2, %s11037_s22  ;;  %p11041_p11 = scmp.lt.u32.totalorder %s11037_s22, %s11392_s2 }
  0x3a   :  { %p11043_p12 = pnand %p11041_p11, %p11038_p10 }
  0x3c   :  { %11046 = shalt.err (!%p11043_p12)
}
  0x3d   :  { %s11047_s0 = scalar_lea.vmem %s45_s16, 16  ;;  %s11051_s18 = scalar_lea.vmem %s45_s16, 32 }
  0x3e   :  { %p11048_p13 = scmp.ne.s32.totalorder %s45_s16, %s11047_s0  ;;  %p11052_p0 = scmp.lt.s32.totalorder %s45_s16, %s45_s16 }
  0x3f   :  { %p11053_p1 = scmp.lt.s32.totalorder %s11051_s18, %s11047_s0 }
  0x41   :  { %p11054_p2 = por %p11053_p1, %p11052_p0 }
  0x43   :  { %p11055_p3 = pnand %p11054_p2, %p11048_p13 }
  0x45   :  { %11058 = shalt.err (!%p11055_p3)
}
  0x46   :  { %47 = dma.hbm_to_vmem [thread:$0]  %s11392_s2, 16, %s45_s16, [#allocation6]  }
  0x47   :  { %s11059_s30 = scalar_lea.hbm %s11396_s6, 16 }
  0x48   :  { %p11060_p4 = scmp.ne.s32.totalorder %s11396_s6, %s11059_s30  ;;  %p11063_p5 = scmp.lt.u32.totalorder %s11059_s30, %s11396_s6 }
  0x4a   :  { %p11065_p6 = pnand %p11063_p5, %p11060_p4 }
  0x4c   :  { %11068 = shalt.err (!%p11065_p6)
}
  0x4d   :  { %s11069_s12 = scalar_lea.vmem %s69_s19, 16  ;;  %s11073_s13 = scalar_lea.vmem %s69_s19, 32 }
  0x4e   :  { %p11070_p7 = scmp.ne.s32.totalorder %s69_s19, %s11069_s12  ;;  %p11074_p8 = scmp.lt.s32.totalorder %s69_s19, %s69_s19 }
  0x4f   :  { %p11075_p9 = scmp.lt.s32.totalorder %s11073_s13, %s11069_s12 }
  0x51   :  { %p11076_p10 = por %p11075_p9, %p11074_p8 }
  0x53   :  { %p11077_p11 = pnand %p11076_p10, %p11070_p7 }
  0x55   :  { %11080 = shalt.err (!%p11077_p11)
}
  0x56   :  { %71 = dma.hbm_to_vmem [thread:$0]  %s11396_s6, 16, %s69_s19, [#allocation9]  }
  0x57   :  { %11103 = dma.done.wait [#allocation3], 2880  }
  0x58   :  { %11104 = vsyncadd [#allocation3], 4294964416 }
  0x59   :  { %11105 = dma.done.wait [#allocation6], 91856  }
  0x5a   :  { %11106 = vsyncadd [#allocation6], 4294875440 }
  0x5b   :  { %11107 = dma.done.wait [#allocation9], 32  }
  0x5c   :  { %11108 = vsyncadd [#allocation9], 4294967264  ;;  %v10217_v0 = vld [vmem:[#allocation5 + $0x40] sm:$0xff]   ;;  %v10221_v4 = vld [vmem:[#allocation5 + $0x48] sm:$0xff]   ;;  %v11118_v21 = vmov 1983009808   ;;  %v138_v23 = vlaneseq }
  0x5d   :  { %v10218_v1 = vld [vmem:[#allocation5] sm:$0xff]   ;;  %9197 = vmatprep.subr.bf16.mxu0 %v10217_v0  ;;  %v10222_v5 = vld [vmem:[#allocation5 + $0x8] sm:$0xff]   ;;  %v10225_v8 = vld [vmem:[#allocation5 + $0x50] sm:$0xff]   ;;  %v136_v22 = vunpack.c.l.s4 %v11118_v21  ;;  %vm6443_vm0 = vcmask 719872   ;;  %vm6447_vm1 = vcmask 1043456   ;;  %vm11121_vm2 = vmmov 0  }
  0x5e   :  { %v10219_v2 = vld [vmem:[#allocation5 + $0xc0] sm:$0xff]   ;;  %9198 = vmatpush3.bf16.msra.mxu0 %v10218_v1  ;;  %v10223_v6 = vld [vmem:[#allocation5 + $0xc8] sm:$0xff]   ;;  %v10226_v9 = vld [vmem:[#allocation5 + $0x10] sm:$0xff]   ;;  %v139_v29 = vshrl.u32 %v138_v23, 7  ;;  %vm8389_vm3 = vcmask 261120   ;;  %vm8433_vm4 = vcmask 9216  }
  0x5f   :  { %v10220_v3 = vld [vmem:[#allocation5 + $0x80] sm:$0xff]   ;;  %9219 = vmatprep.subr.bf16.mxu1 %v10219_v2  ;;  %9199 = vmatprep.subr.bf16.mxu0 %v10221_v4  ;;  %v10224_v7 = vld [vmem:[#allocation5 + $0x88] sm:$0xff]   ;;  %v10227_v10 = vld [vmem:[#allocation5 + $0xd0] sm:$0xff]   ;;  %v137_v28 = vunpack.c.0.s8 %v136_v22 }
  0x60   :  { %9220 = vmatpush3.bf16.msra.mxu1 %v10220_v3  ;;  %v10228_v11 = vld [vmem:[#allocation5 + $0x90] sm:$0xff]   ;;  %v10229_v12 = vld [vmem:[#allocation5 + $0x58] sm:$0xff]   ;;  %v10233_v16 = vld [vmem:[#allocation5 + $0x60] sm:$0xff]  }
  0x61   :  { %9221 = vmatprep.subr.bf16.mxu1 %v10223_v6  ;;  %v10230_v13 = vld [vmem:[#allocation5 + $0x18] sm:$0xff]   ;;  %v10234_v17 = vld [vmem:[#allocation5 + $0x20] sm:$0xff]   ;;  %v10237_v20 = vld [vmem:[#allocation5 + $0x68] sm:$0xff]   ;;  %v11223_v34 = vsub.s32 %v137_v28, %v139_v29 }
  0x62   :  { %9200 = vmatpush3.bf16.msra.mxu0 %v10222_v5  ;;  %v10231_v14 = vld [vmem:[#allocation5 + $0xd8] sm:$0xff]   ;;  %v10235_v18 = vld [vmem:[#allocation5 + $0xe0] sm:$0xff]   ;;  %v10238_v24 = vld [vmem:[#allocation5 + $0x28] sm:$0xff]  }
  0x63   :  { %9201 = vmatprep.subr.bf16.mxu0 %v10225_v8  ;;  %v10232_v15 = vld [vmem:[#allocation5 + $0x98] sm:$0xff]   ;;  %v10236_v19 = vld [vmem:[#allocation5 + $0xa0] sm:$0xff]   ;;  %v10239_v25 = vld [vmem:[#allocation5 + $0xe8] sm:$0xff]  }
  0x64   :  { %9222 = vmatpush3.bf16.msra.mxu1 %v10224_v7  ;;  %v10240_v26 = vld [vmem:[#allocation5 + $0xa8] sm:$0xff]   ;;  %v10241_v27 = vld [vmem:[#allocation5 + $0x70] sm:$0xff]   ;;  %v10245_v33 = vld [vmem:[#allocation5 + $0x78] sm:$0xff]  }
  0x65   :  { %9223 = vmatprep.subr.bf16.mxu1 %v10227_v10  ;;  %v10242_v30 = vld [vmem:[#allocation5 + $0x30] sm:$0xff]   ;;  %v10246_v35 = vld [vmem:[#allocation5 + $0x38] sm:$0xff]   ;;  %v10249_v41 = vld [vmem:[#allocation5 + $0x140] sm:$0xff]  }
  0x66   :  { %9202 = vmatpush3.bf16.msra.mxu0 %v10226_v9  ;;  %v10243_v31 = vld [vmem:[#allocation5 + $0xf0] sm:$0xff]   ;;  %v10247_v36 = vld [vmem:[#allocation5 + $0xf8] sm:$0xff]   ;;  %v10251_v44 = vld [vmem:[#allocation5 + $0x100] sm:$0xff]  }
  0x67   :  { %9203 = vmatprep.subr.bf16.mxu0 %v10229_v12  ;;  %v10244_v32 = vld [vmem:[#allocation5 + $0xb0] sm:$0xff]   ;;  %v10248_v39 = vld [vmem:[#allocation5 + $0xb8] sm:$0xff]   ;;  %v10252_v46 = vld [vmem:[#allocation5 + $0x1c0] sm:$0xff]  }
  0x68   :  { %9224 = vmatpush3.bf16.msra.mxu1 %v10228_v11  ;;  %v88_v37 = vld [vmem:[#allocation2] sm:$0xff]  ;;  %v10253_v49 = vld [vmem:[#allocation5 + $0x180] sm:$0xff]   ;;  %v10262_v60 = vld [vmem:[#allocation5 + $0x158] sm:$0xff]  }
  0x69   :  { %9225 = vmatprep.subr.bf16.mxu1 %v10231_v14  ;;  %v141_v38 = vrot.slane %v88_v37, %v11223_v34  ;;  %v134_v40 = vcombine.high %v88_v37, %v88_v37  ;;  %v10254_v51 = vld [vmem:[#allocation5 + $0x148] sm:$0xff]   ;;  %v10258_v56 = vld [vmem:[#allocation5 + $0x150] sm:$0xff]   ;;  %v10263_v61 = vld [vmem:[#allocation5 + $0x118] sm:$0xff]  }
  0x6a   :  { %9204 = vmatpush3.bf16.msra.mxu0 %v10230_v13  ;;  %v10255_v53 = vld [vmem:[#allocation5 + $0x108] sm:$0xff]   ;;  %v10259_v57 = vld [vmem:[#allocation5 + $0x110] sm:$0xff]   ;;  %v10264_v62 = vld [vmem:[#allocation5 + $0x1d8] sm:$0xff]  }
  0x6b   :  { %9205 = vmatprep.subr.bf16.mxu0 %v10233_v16  ;;  %v149_v42 = vcombine.high %v141_v38, %v141_v38  ;;  %v148_v43 = vrot.slane %v134_v40, %v11223_v34  ;;  %v606_v45 = vpack.c.bf16 %v141_v38, %v141_v38  ;;  %v10256_v54 = vld [vmem:[#allocation5 + $0x1c8] sm:$0xff]   ;;  %v10260_v58 = vld [vmem:[#allocation5 + $0x1d0] sm:$0xff]   ;;  %v10265_v63 = vld [vmem:[#allocation5 + $0x198] sm:$0xff]  }
  0x6c   :  { %9226 = vmatpush3.bf16.msra.mxu1 %v10232_v15  ;;  %v10257_v55 = vld [vmem:[#allocation5 + $0x188] sm:$0xff]   ;;  %v10261_v59 = vld [vmem:[#allocation5 + $0x190] sm:$0xff]   ;;  %v10266_v0 = vld [vmem:[#allocation5 + $0x160] sm:$0xff]  }
  0x6d   :  { %9227 = vmatprep.subr.bf16.mxu1 %v10235_v18  ;;  %v607_v47 = vpack.c.bf16 %v149_v42, %v149_v42  ;;  %v150_v48 = vcombine.high %v148_v43, %v148_v43  ;;  %v608_v50 = vpack.c.bf16 %v148_v43, %v148_v43  ;;  %v10267_v1 = vld [vmem:[#allocation5 + $0x120] sm:$0xff]   ;;  %v10270_v4 = vld [vmem:[#allocation5 + $0x168] sm:$0xff]   ;;  %v10274_v8 = vld [vmem:[#allocation5 + $0x170] sm:$0xff]  }
  0x6e   :  { %9206 = vmatpush3.bf16.msra.mxu0 %v10234_v17  ;;  %v10268_v2 = vld [vmem:[#allocation5 + $0x1e0] sm:$0xff]   ;;  %v10271_v5 = vld [vmem:[#allocation5 + $0x128] sm:$0xff]   ;;  %v10275_v9 = vld [vmem:[#allocation5 + $0x130] sm:$0xff]  }
  0x6f   :  { %9207 = vmatprep.subr.bf16.mxu0 %v10237_v20  ;;  %6483 = vmatprep.mubr.bf16.mxu0 %v607_v47  ;;  %v609_v52 = vpack.c.bf16 %v150_v48, %v150_v48  ;;  %v10269_v3 = vld [vmem:[#allocation5 + $0x1a0] sm:$0xff]   ;;  %v10272_v6 = vld [vmem:[#allocation5 + $0x1e8] sm:$0xff]   ;;  %v10276_v10 = vld [vmem:[#allocation5 + $0x1f0] sm:$0xff]  }
  0x70   :  { %9228 = vmatpush3.bf16.msra.mxu1 %v10236_v19  ;;  %v10273_v7 = vld [vmem:[#allocation5 + $0x1a8] sm:$0xff]   ;;  %v10277_v11 = vld [vmem:[#allocation5 + $0x1b0] sm:$0xff]   ;;  %v10278_v12 = vld [vmem:[#allocation5 + $0x178] sm:$0xff]  }
  0x71   :  { %9229 = vmatprep.subr.bf16.mxu1 %v10239_v25  ;;  %6523 = vmatprep.mubr.bf16.mxu1 %v609_v52  ;;  %v10279_v13 = vld [vmem:[#allocation5 + $0x138] sm:$0xff]   ;;  %v10282_v19 = vld [vmem:[#allocation5 + $0x240] sm:$0xff]   ;;  %v10287_v29 = vld [vmem:[#allocation5 + $0x248] sm:$0xff]  }
  0x72   :  { %9208 = vmatpush3.bf16.msra.mxu0 %v10238_v24  ;;  %v10280_v14 = vld [vmem:[#allocation5 + $0x1f8] sm:$0xff]   ;;  %v10284_v22 = vld [vmem:[#allocation5 + $0x200] sm:$0xff]   ;;  %v10293_v37 = vld [vmem:[#allocation5 + $0x2d0] sm:$0xff]  }
  0x73   :  { %9209 = vmatprep.subr.bf16.mxu0 %v10241_v27  ;;  %v89_v15 = vld [vmem:[#allocation2 + $0x8] sm:$0xff]  ;;  %v10285_v24 = vld [vmem:[#allocation5 + $0x2c0] sm:$0xff]   ;;  %v10303_v47 = vld [vmem:[#allocation5 + $0x268] sm:$0xff]  }
  0x74   :  { %9230 = vmatpush3.bf16.msra.mxu1 %v10240_v26  ;;  %v158_v16 = vrot.slane %v89_v15, %v11223_v34  ;;  %v10281_v17 = vld [vmem:[#allocation5 + $0x1b8] sm:$0xff]   ;;  %v151_v18 = vcombine.high %v89_v15, %v89_v15  ;;  %v10286_v27 = vld [vmem:[#allocation5 + $0x280] sm:$0xff]   ;;  %v10294_v38 = vld [vmem:[#allocation5 + $0x290] sm:$0xff]  }
  0x75   :  { %9231 = vmatprep.subr.bf16.mxu1 %v10243_v31  ;;  %v10288_v31 = vld [vmem:[#allocation5 + $0x208] sm:$0xff]   ;;  %v10296_v40 = vld [vmem:[#allocation5 + $0x218] sm:$0xff]   ;;  %v10299_v43 = vld [vmem:[#allocation5 + $0x260] sm:$0xff]  }
  0x76   :  { %9210 = vmatpush3.bf16.msra.mxu0 %v10242_v30  ;;  %v166_v20 = vcombine.high %v158_v16, %v158_v16  ;;  %v165_v21 = vrot.slane %v151_v18, %v11223_v34  ;;  %v610_v23 = vpack.c.bf16 %v158_v16, %v158_v16  ;;  %v10298_v42 = vld [vmem:[#allocation5 + $0x298] sm:$0xff]   ;;  %v10304_v48 = vld [vmem:[#allocation5 + $0x228] sm:$0xff]   ;;  %v10308_v52 = vld [vmem:[#allocation5 + $0x230] sm:$0xff]  }
  0x77   :  { %9211 = vmatprep.subr.bf16.mxu0 %v10245_v33  ;;  %v10290_v33 = vld [vmem:[#allocation5 + $0x288] sm:$0xff]   ;;  %v10326_v15 = vld [vmem:[#allocation5 + $0x3d0] sm:$0xff]   ;;  %v10329_v18 = vld [vmem:[#allocation5 + $0x318] sm:$0xff]  }
  0x78   :  { %9232 = vmatpush3.bf16.msra.mxu1 %v10244_v32  ;;  %v611_v25 = vpack.c.bf16 %v166_v20, %v166_v20  ;;  %v167_v26 = vcombine.high %v165_v21, %v165_v21  ;;  %v612_v28 = vpack.c.bf16 %v165_v21, %v165_v21  ;;  %v10289_v32 = vld [vmem:[#allocation5 + $0x2c8] sm:$0xff]   ;;  %v10327_v16 = vld [vmem:[#allocation5 + $0x390] sm:$0xff]   ;;  %v10331_v20 = vld [vmem:[#allocation5 + $0x398] sm:$0xff]  }
  0x79   :  { %9233 = vmatprep.subr.bf16.mxu1 %v10247_v36  ;;  %v10292_v36 = vld [vmem:[#allocation5 + $0x210] sm:$0xff]   ;;  %v10332_v21 = vld [vmem:[#allocation5 + $0x360] sm:$0xff]  }
  0x7a   :  { %9212 = vmatpush3.bf16.msra.mxu0 %v10246_v35  ;;  %v613_v30 = vpack.c.bf16 %v167_v26, %v167_v26  ;;  %v10291_v35 = vld [vmem:[#allocation5 + $0x250] sm:$0xff]   ;;  %v10337_v26 = vld [vmem:[#allocation5 + $0x328] sm:$0xff]  }
  0x7b   :  { %9241 = vmatprep.subr.bf16.mxu0 %v10249_v41  ;;  %v10297_v41 = vld [vmem:[#allocation5 + $0x2d8] sm:$0xff]  }
  0x7c   :  { %9234 = vmatpush3.bf16.msra.mxu1 %v10248_v39  ;;  %v10295_v39 = vld [vmem:[#allocation5 + $0x258] sm:$0xff]  }
  0x7d   :  { %9263 = vmatprep.subr.bf16.mxu1 %v10252_v46  ;;  %6484 = vmatmul.mubr.bf16.vlgmr.msra.gmra.mrb[0].mxu0 %v606_v45  ;;  %v10301_v45 = vld [vmem:[#allocation5 + $0x2e0] sm:$0xff]  }
  0x7e   :  { %9242 = vmatpush3.bf16.msra.mxu0 %v10251_v44  ;;  %6563 = vmatprep.mubr.bf16.mxu0 %v611_v25  ;;  %v10300_v44 = vld [vmem:[#allocation5 + $0x220] sm:$0xff]   ;;  %v10336_v25 = vld [vmem:[#allocation5 + $0x368] sm:$0xff]  }
  0x7f   :  { %6524 = vmatmul.mubr.bf16.vlgmr.msra.gmra.mrb[0].mxu1 %v608_v50  ;;  %9243 = vmatprep.subr.bf16.mxu0 %v10254_v51  ;;  %v10302_v46 = vld [vmem:[#allocation5 + $0x2a0] sm:$0xff]   ;;  %v10306_v50 = vld [vmem:[#allocation5 + $0x2a8] sm:$0xff]   ;;  %v10307_v51 = vld [vmem:[#allocation5 + $0x270] sm:$0xff]  }
  0x80   :  { %9264 = vmatpush3.bf16.msra.mxu1 %v10253_v49  ;;  %6603 = vmatprep.mubr.bf16.mxu1 %v613_v30  ;;  %v10305_v49 = vld [vmem:[#allocation5 + $0x2e8] sm:$0xff]   ;;  %v10341_v30 = vld [vmem:[#allocation5 + $0x330] sm:$0xff]  }
  0x81   :  { %9265 = vmatprep.subr.bf16.mxu1 %v10256_v54  ;;  %v10310_v54 = vld [vmem:[#allocation5 + $0x2b0] sm:$0xff]  }
  0x82   :  { %9244 = vmatpush3.bf16.msra.mxu0 %v10255_v53  ;;  %v10309_v53 = vld [vmem:[#allocation5 + $0x2f0] sm:$0xff]  }
  0x83   :  { %9245 = vmatprep.subr.bf16.mxu0 %v10258_v56  ;;  %v10312_v56 = vld [vmem:[#allocation5 + $0x238] sm:$0xff]  }
  0x84   :  { %9266 = vmatpush3.bf16.msra.mxu1 %v10257_v55  ;;  %v10311_v55 = vld [vmem:[#allocation5 + $0x278] sm:$0xff]  }
  0x85   :  { %9267 = vmatprep.subr.bf16.mxu1 %v10260_v58  ;;  %v90_v58 = vld [vmem:[#allocation2 + $0x10] sm:$0xff] }
  0x86   :  { %9246 = vmatpush3.bf16.msra.mxu0 %v10259_v57  ;;  %v10313_v57 = vld [vmem:[#allocation5 + $0x2f8] sm:$0xff]  }
  0x87   :  { %9247 = vmatprep.subr.bf16.mxu0 %v10262_v60  ;;  %v10314_v60 = vld [vmem:[#allocation5 + $0x2b8] sm:$0xff]  }
  0x88   :  { %9268 = vmatpush3.bf16.msra.mxu1 %v10261_v59  ;;  %v175_v59 = vrot.slane %v90_v58, %v11223_v34 }
  0x89   :  { %9269 = vmatprep.subr.bf16.mxu1 %v10264_v62  ;;  %v10315_v62 = vld [vmem:[#allocation5 + $0x340] sm:$0xff]  }
  0x8a   :  { %9248 = vmatpush3.bf16.msra.mxu0 %v10263_v61  ;;  %v168_v61 = vcombine.high %v90_v58, %v90_v58  ;;  %v10359_v58 = vld [vmem:[#allocation5 + $0x4d0] sm:$0xff]  }
  0x8b   :  { %9249 = vmatprep.subr.bf16.mxu0 %v10266_v0 }
  0x8c   :  { %9270 = vmatpush3.bf16.msra.mxu1 %v10265_v63  ;;  %v183_v63 = vcombine.high %v175_v59, %v175_v59  ;;  %v182_v0 = vrot.slane %v168_v61, %v11223_v34  ;;  %v10362_v61 = vld [vmem:[#allocation5 + $0x418] sm:$0xff]  }
  0x8d   :  { %9271 = vmatprep.subr.bf16.mxu1 %v10268_v2  ;;  %v614_v2 = vpack.c.bf16 %v175_v59, %v175_v59  ;;  %v10360_v59 = vld [vmem:[#allocation5 + $0x490] sm:$0xff]  }
  0x8e   :  { %9250 = vmatpush3.bf16.msra.mxu0 %v10267_v1  ;;  %v10317_v1 = vld [vmem:[#allocation5 + $0x300] sm:$0xff]  }
  0x8f   :  { %9251 = vmatprep.subr.bf16.mxu0 %v10270_v4  ;;  %v615_v4 = vpack.c.bf16 %v183_v63, %v183_v63  ;;  %v10364_v63 = vld [vmem:[#allocation5 + $0x498] sm:$0xff]  }
  0x90   :  { %9272 = vmatpush3.bf16.msra.mxu1 %v10269_v3  ;;  %v10318_v3 = vld [vmem:[#allocation5 + $0x3c0] sm:$0xff]  }
  0x91   :  { %9273 = vmatprep.subr.bf16.mxu1 %v10272_v6  ;;  %v10319_v6 = vld [vmem:[#allocation5 + $0x380] sm:$0xff]  }
  0x92   :  { %9252 = vmatpush3.bf16.msra.mxu0 %v10271_v5  ;;  %v184_v5 = vcombine.high %v182_v0, %v182_v0 }
  0x93   :  { %9253 = vmatprep.subr.bf16.mxu0 %v10274_v8  ;;  %v10320_v8 = vld [vmem:[#allocation5 + $0x348] sm:$0xff]  }
  0x94   :  { %9274 = vmatpush3.bf16.msra.mxu1 %v10273_v7  ;;  %v616_v7 = vpack.c.bf16 %v182_v0, %v182_v0  ;;  %v10365_v0 = vld [vmem:[#allocation5 + $0x460] sm:$0xff]  }
  0x95   :  { %9275 = vmatprep.subr.bf16.mxu1 %v10276_v10  ;;  %v10321_v10 = vld [vmem:[#allocation5 + $0x308] sm:$0xff]  }
  0x96   :  { %9254 = vmatpush3.bf16.msra.mxu0 %v10275_v9  ;;  %v617_v9 = vpack.c.bf16 %v184_v5, %v184_v5  ;;  %v10370_v5 = vld [vmem:[#allocation5 + $0x428] sm:$0xff]  }
  0x97   :  { %9255 = vmatprep.subr.bf16.mxu0 %v10278_v12  ;;  %v10323_v12 = vld [vmem:[#allocation5 + $0x388] sm:$0xff]  }
  0x98   :  { %9276 = vmatpush3.bf16.msra.mxu1 %v10277_v11  ;;  %v10322_v11 = vld [vmem:[#allocation5 + $0x3c8] sm:$0xff]  }
  0x99   :  { %9277 = vmatprep.subr.bf16.mxu1 %v10280_v14  ;;  %v10325_v14 = vld [vmem:[#allocation5 + $0x310] sm:$0xff]  }
  0x9a   :  { %9256 = vmatpush3.bf16.msra.mxu0 %v10279_v13  ;;  %v10324_v13 = vld [vmem:[#allocation5 + $0x350] sm:$0xff]  }
  0x9b   :  { %9285 = vmatprep.subr.bf16.mxu0 %v10282_v19  ;;  %v10330_v19 = vld [vmem:[#allocation5 + $0x3d8] sm:$0xff]  }
  0x9c   :  { %9278 = vmatpush3.bf16.msra.mxu1 %v10281_v17  ;;  %v10328_v17 = vld [vmem:[#allocation5 + $0x358] sm:$0xff]  }
  0x9d   :  { %6564 = vmatmul.mubr.bf16.vlgmr.msra.gmra.mrb[4].mxu0 %v610_v23  ;;  %9307 = vmatprep.subr.bf16.mxu1 %v10285_v24  ;;  %v10334_v23 = vld [vmem:[#allocation5 + $0x3e0] sm:$0xff]  }
  0x9e   :  { %9286 = vmatpush3.bf16.msra.mxu0 %v10284_v22  ;;  %6643 = vmatprep.mubr.bf16.mxu0 %v615_v4  ;;  %v10333_v22 = vld [vmem:[#allocation5 + $0x320] sm:$0xff]   ;;  %v10369_v4 = vld [vmem:[#allocation5 + $0x468] sm:$0xff]  }
  0x9f   :  { %6604 = vmatmul.mubr.bf16.vlgmr.msra.gmra.mrb[4].mxu1 %v612_v28  ;;  %9287 = vmatprep.subr.bf16.mxu0 %v10287_v29  ;;  %v10335_v24 = vld [vmem:[#allocation5 + $0x3a0] sm:$0xff]   ;;  %v10339_v28 = vld [vmem:[#allocation5 + $0x3a8] sm:$0xff]   ;;  %v10340_v29 = vld [vmem:[#allocation5 + $0x370] sm:$0xff]  }
  0xa0   :  { %9308 = vmatpush3.bf16.msra.mxu1 %v10286_v27  ;;  %6683 = vmatprep.mubr.bf16.mxu1 %v617_v9  ;;  %v10338_v27 = vld [vmem:[#allocation5 + $0x3e8] sm:$0xff]   ;;  %v10374_v9 = vld [vmem:[#allocation5 + $0x430] sm:$0xff]  }
  0xa1   :  { %9309 = vmatprep.subr.bf16.mxu1 %v10289_v32  ;;  %v10343_v32 = vld [vmem:[#allocation5 + $0x3b0] sm:$0xff]  }
  0xa2   :  { %9288 = vmatpush3.bf16.msra.mxu0 %v10288_v31  ;;  %v10342_v31 = vld [vmem:[#allocation5 + $0x3f0] sm:$0xff]  }
  0xa3   :  { %9289 = vmatprep.subr.bf16.mxu0 %v10291_v35  ;;  %v10345_v35 = vld [vmem:[#allocation5 + $0x338] sm:$0xff]  }
  0xa4   :  { %9310 = vmatpush3.bf16.msra.mxu1 %v10290_v33  ;;  %v10344_v33 = vld [vmem:[#allocation5 + $0x378] sm:$0xff]  }
  0xa5   :  { %9311 = vmatprep.subr.bf16.mxu1 %v10293_v37  ;;  %v91_v37 = vld [vmem:[#allocation2 + $0x18] sm:$0xff] }
  0xa6   :  { %9290 = vmatpush3.bf16.msra.mxu0 %v10292_v36  ;;  %v10346_v36 = vld [vmem:[#allocation5 + $0x3f8] sm:$0xff]  }
  0xa7   :  { %9291 = vmatprep.subr.bf16.mxu0 %v10295_v39  ;;  %v10347_v39 = vld [vmem:[#allocation5 + $0x3b8] sm:$0xff]  }
  0xa8   :  { %9312 = vmatpush3.bf16.msra.mxu1 %v10294_v38  ;;  %v192_v38 = vrot.slane %v91_v37, %v11223_v34 }
  0xa9   :  { %9313 = vmatprep.subr.bf16.mxu1 %v10297_v41  ;;  %v10348_v41 = vld [vmem:[#allocation5 + $0x440] sm:$0xff]  }
  0xaa   :  { %9292 = vmatpush3.bf16.msra.mxu0 %v10296_v40  ;;  %v185_v40 = vcombine.high %v91_v37, %v91_v37  ;;  %v10392_v37 = vld [vmem:[#allocation5 + $0x5d0] sm:$0xff]  }
  0xab   :  { %9293 = vmatprep.subr.bf16.mxu0 %v10299_v43 }
  0xac   :  { %9314 = vmatpush3.bf16.msra.mxu1 %v10298_v42  ;;  %v200_v42 = vcombine.high %v192_v38, %v192_v38  ;;  %v199_v43 = vrot.slane %v185_v40, %v11223_v34  ;;  %v10395_v40 = vld [vmem:[#allocation5 + $0x518] sm:$0xff]  }
  0xad   :  { %9315 = vmatprep.subr.bf16.mxu1 %v10301_v45  ;;  %v618_v45 = vpack.c.bf16 %v192_v38, %v192_v38  ;;  %v10393_v38 = vld [vmem:[#allocation5 + $0x590] sm:$0xff]  }
  0xae   :  { %9294 = vmatpush3.bf16.msra.mxu0 %v10300_v44  ;;  %v10350_v44 = vld [vmem:[#allocation5 + $0x400] sm:$0xff]  }
  0xaf   :  { %9295 = vmatprep.subr.bf16.mxu0 %v10303_v47  ;;  %v619_v47 = vpack.c.bf16 %v200_v42, %v200_v42  ;;  %v10397_v42 = vld [vmem:[#allocation5 + $0x598] sm:$0xff]  }
  0xb0   :  { %9316 = vmatpush3.bf16.msra.mxu1 %v10302_v46  ;;  %v10351_v46 = vld [vmem:[#allocation5 + $0x4c0] sm:$0xff]  }
  0xb1   :  { %9317 = vmatprep.subr.bf16.mxu1 %v10305_v49  ;;  %v10352_v49 = vld [vmem:[#allocation5 + $0x480] sm:$0xff]  }
  0xb2   :  { %9296 = vmatpush3.bf16.msra.mxu0 %v10304_v48  ;;  %v201_v48 = vcombine.high %v199_v43, %v199_v43 }
  0xb3   :  { %9297 = vmatprep.subr.bf16.mxu0 %v10307_v51  ;;  %v10353_v51 = vld [vmem:[#allocation5 + $0x448] sm:$0xff]  }
  0xb4   :  { %9318 = vmatpush3.bf16.msra.mxu1 %v10306_v50  ;;  %v620_v50 = vpack.c.bf16 %v199_v43, %v199_v43  ;;  %v10398_v43 = vld [vmem:[#allocation5 + $0x560] sm:$0xff]  }
  0xb5   :  { %9319 = vmatprep.subr.bf16.mxu1 %v10309_v53  ;;  %v10354_v53 = vld [vmem:[#allocation5 + $0x408] sm:$0xff]  }
  0xb6   :  { %9298 = vmatpush3.bf16.msra.mxu0 %v10308_v52  ;;  %v621_v52 = vpack.c.bf16 %v201_v48, %v201_v48  ;;  %v10403_v48 = vld [vmem:[#allocation5 + $0x528] sm:$0xff]  }
  0xb7   :  { %9299 = vmatprep.subr.bf16.mxu0 %v10311_v55  ;;  %v10356_v55 = vld [vmem:[#allocation5 + $0x488] sm:$0xff]  }
  0xb8   :  { %9320 = vmatpush3.bf16.msra.mxu1 %v10310_v54  ;;  %v10355_v54 = vld [vmem:[#allocation5 + $0x4c8] sm:$0xff]  }
  0xb9   :  { %9321 = vmatprep.subr.bf16.mxu1 %v10313_v57  ;;  %v10358_v57 = vld [vmem:[#allocation5 + $0x410] sm:$0xff]  }
  0xba   :  { %9300 = vmatpush3.bf16.msra.mxu0 %v10312_v56  ;;  %v10357_v56 = vld [vmem:[#allocation5 + $0x450] sm:$0xff]  }
  0xbb   :  { %9329 = vmatprep.subr.bf16.mxu0 %v10315_v62  ;;  %v10363_v62 = vld [vmem:[#allocation5 + $0x4d8] sm:$0xff]  }
  0xbc   :  { %9322 = vmatpush3.bf16.msra.mxu1 %v10314_v60  ;;  %v10361_v60 = vld [vmem:[#allocation5 + $0x458] sm:$0xff]  }
  0xbd   :  { %6644 = vmatmul.mubr.bf16.vlgmr.msra.gmra.mrb[8].mxu0 %v614_v2  ;;  %9351 = vmatprep.subr.bf16.mxu1 %v10318_v3  ;;  %v10367_v2 = vld [vmem:[#allocation5 + $0x4e0] sm:$0xff]  }
  0xbe   :  { %9330 = vmatpush3.bf16.msra.mxu0 %v10317_v1  ;;  %6723 = vmatprep.mubr.bf16.mxu0 %v619_v47  ;;  %v10366_v1 = vld [vmem:[#allocation5 + $0x420] sm:$0xff]   ;;  %v10402_v47 = vld [vmem:[#allocation5 + $0x568] sm:$0xff]  }
  0xbf   :  { %6684 = vmatmul.mubr.bf16.vlgmr.msra.gmra.mrb[8].mxu1 %v616_v7  ;;  %9331 = vmatprep.subr.bf16.mxu0 %v10320_v8  ;;  %v10368_v3 = vld [vmem:[#allocation5 + $0x4a0] sm:$0xff]   ;;  %v10372_v7 = vld [vmem:[#allocation5 + $0x4a8] sm:$0xff]   ;;  %v10373_v8 = vld [vmem:[#allocation5 + $0x470] sm:$0xff]  }
  0xc0   :  { %9352 = vmatpush3.bf16.msra.mxu1 %v10319_v6  ;;  %6763 = vmatprep.mubr.bf16.mxu1 %v621_v52  ;;  %v10371_v6 = vld [vmem:[#allocation5 + $0x4e8] sm:$0xff]   ;;  %v10407_v52 = vld [vmem:[#allocation5 + $0x530] sm:$0xff]  }
  0xc1   :  { %9353 = vmatprep.subr.bf16.mxu1 %v10322_v11  ;;  %v10376_v11 = vld [vmem:[#allocation5 + $0x4b0] sm:$0xff]  }
  0xc2   :  { %9332 = vmatpush3.bf16.msra.mxu0 %v10321_v10  ;;  %v10375_v10 = vld [vmem:[#allocation5 + $0x4f0] sm:$0xff]  }
  0xc3   :  { %9333 = vmatprep.subr.bf16.mxu0 %v10324_v13  ;;  %v10378_v13 = vld [vmem:[#allocation5 + $0x438] sm:$0xff]  }
  0xc4   :  { %9354 = vmatpush3.bf16.msra.mxu1 %v10323_v12  ;;  %v10377_v12 = vld [vmem:[#allocation5 + $0x478] sm:$0xff]  }
  0xc5   :  { %9355 = vmatprep.subr.bf16.mxu1 %v10326_v15  ;;  %v92_v15 = vld [vmem:[#allocation2 + $0x20] sm:$0xff] }
  0xc6   :  { %9334 = vmatpush3.bf16.msra.mxu0 %v10325_v14  ;;  %v10379_v14 = vld [vmem:[#allocation5 + $0x4f8] sm:$0xff]  }
  0xc7   :  { %9335 = vmatprep.subr.bf16.mxu0 %v10328_v17  ;;  %v10380_v17 = vld [vmem:[#allocation5 + $0x4b8] sm:$0xff]  }
  0xc8   :  { %9356 = vmatpush3.bf16.msra.mxu1 %v10327_v16  ;;  %v209_v16 = vrot.slane %v92_v15, %v11223_v34 }
  0xc9   :  { %9357 = vmatprep.subr.bf16.mxu1 %v10330_v19  ;;  %v10381_v19 = vld [vmem:[#allocation5 + $0x540] sm:$0xff]  }
  0xca   :  { %9336 = vmatpush3.bf16.msra.mxu0 %v10329_v18  ;;  %v202_v18 = vcombine.high %v92_v15, %v92_v15  ;;  %v10425_v15 = vld [vmem:[#allocation5 + $0x6d0] sm:$0xff]  }
  0xcb   :  { %9337 = vmatprep.subr.bf16.mxu0 %v10332_v21 }
  0xcc   :  { %9358 = vmatpush3.bf16.msra.mxu1 %v10331_v20  ;;  %v217_v20 = vcombine.high %v209_v16, %v209_v16  ;;  %v216_v21 = vrot.slane %v202_v18, %v11223_v34  ;;  %v10428_v18 = vld [vmem:[#allocation5 + $0x618] sm:$0xff]  }
  0xcd   :  { %9359 = vmatprep.subr.bf16.mxu1 %v10334_v23  ;;  %v622_v23 = vpack.c.bf16 %v209_v16, %v209_v16  ;;  %v10426_v16 = vld [vmem:[#allocation5 + $0x690] sm:$0xff]  }
  0xce   :  { %9338 = vmatpush3.bf16.msra.mxu0 %v10333_v22  ;;  %v10383_v22 = vld [vmem:[#allocation5 + $0x500] sm:$0xff]  }
  0xcf   :  { %9339 = vmatprep.subr.bf16.mxu0 %v10336_v25  ;;  %v623_v25 = vpack.c.bf16 %v217_v20, %v217_v20  ;;  %v10430_v20 = vld [vmem:[#allocation5 + $0x698] sm:$0xff]  }
  0xd0   :  { %9360 = vmatpush3.bf16.msra.mxu1 %v10335_v24  ;;  %v10384_v24 = vld [vmem:[#allocation5 + $0x5c0] sm:$0xff]  }
  0xd1   :  { %9361 = vmatprep.subr.bf16.mxu1 %v10338_v27  ;;  %v10385_v27 = vld [vmem:[#allocation5 + $0x580] sm:$0xff]  }
  0xd2   :  { %9340 = vmatpush3.bf16.msra.mxu0 %v10337_v26  ;;  %v218_v26 = vcombine.high %v216_v21, %v216_v21 }
  0xd3   :  { %9341 = vmatprep.subr.bf16.mxu0 %v10340_v29  ;;  %v10386_v29 = vld [vmem:[#allocation5 + $0x548] sm:$0xff]  }
  0xd4   :  { %9362 = vmatpush3.bf16.msra.mxu1 %v10339_v28  ;;  %v624_v28 = vpack.c.bf16 %v216_v21, %v216_v21  ;;  %v10431_v21 = vld [vmem:[#allocation5 + $0x660] sm:$0xff]  }
  0xd5   :  { %9363 = vmatprep.subr.bf16.mxu1 %v10342_v31  ;;  %v10387_v31 = vld [vmem:[#allocation5 + $0x508] sm:$0xff]  }
  0xd6   :  { %9342 = vmatpush3.bf16.msra.mxu0 %v10341_v30  ;;  %v625_v30 = vpack.c.bf16 %v218_v26, %v218_v26  ;;  %v10436_v26 = vld [vmem:[#allocation5 + $0x628] sm:$0xff]  }
  0xd7   :  { %9343 = vmatprep.subr.bf16.mxu0 %v10344_v33  ;;  %v10389_v33 = vld [vmem:[#allocation5 + $0x588] sm:$0xff]  }
  0xd8   :  { %9364 = vmatpush3.bf16.msra.mxu1 %v10343_v32  ;;  %v10388_v32 = vld [vmem:[#allocation5 + $0x5c8] sm:$0xff]  }
  0xd9   :  { %9365 = vmatprep.subr.bf16.mxu1 %v10346_v36  ;;  %v10391_v36 = vld [vmem:[#allocation5 + $0x510] sm:$0xff]  }
  0xda   :  { %9344 = vmatpush3.bf16.msra.mxu0 %v10345_v35  ;;  %v10390_v35 = vld [vmem:[#allocation5 + $0x550] sm:$0xff]  }
  0xdb   :  { %9373 = vmatprep.subr.bf16.mxu0 %v10348_v41  ;;  %v10396_v41 = vld [vmem:[#allocation5 + $0x5d8] sm:$0xff]  }
  0xdc   :  { %9366 = vmatpush3.bf16.msra.mxu1 %v10347_v39  ;;  %v10394_v39 = vld [vmem:[#allocation5 + $0x558] sm:$0xff]  }
  0xdd   :  { %9395 = vmatprep.subr.bf16.mxu1 %v10351_v46  ;;  %6724 = vmatmul.mubr.bf16.vlgmr.msra.gmra.mrb[12].mxu0 %v618_v45  ;;  %v10400_v45 = vld [vmem:[#allocation5 + $0x5e0] sm:$0xff]  }
  0xde   :  { %9374 = vmatpush3.bf16.msra.mxu0 %v10350_v44  ;;  %6803 = vmatprep.mubr.bf16.mxu0 %v623_v25  ;;  %v10399_v44 = vld [vmem:[#allocation5 + $0x520] sm:$0xff]   ;;  %v10435_v25 = vld [vmem:[#allocation5 + $0x668] sm:$0xff]  }
  0xdf   :  { %6764 = vmatmul.mubr.bf16.vlgmr.msra.gmra.mrb[12].mxu1 %v620_v50  ;;  %9375 = vmatprep.subr.bf16.mxu0 %v10353_v51  ;;  %v10401_v46 = vld [vmem:[#allocation5 + $0x5a0] sm:$0xff]   ;;  %v10405_v50 = vld [vmem:[#allocation5 + $0x5a8] sm:$0xff]   ;;  %v10406_v51 = vld [vmem:[#allocation5 + $0x570] sm:$0xff]  }
  0xe0   :  { %9396 = vmatpush3.bf16.msra.mxu1 %v10352_v49  ;;  %6843 = vmatprep.mubr.bf16.mxu1 %v625_v30  ;;  %v10404_v49 = vld [vmem:[#allocation5 + $0x5e8] sm:$0xff]   ;;  %v10440_v30 = vld [vmem:[#allocation5 + $0x630] sm:$0xff]  }
  0xe1   :  { %9397 = vmatprep.subr.bf16.mxu1 %v10355_v54  ;;  %v10409_v54 = vld [vmem:[#allocation5 + $0x5b0] sm:$0xff]  }
  0xe2   :  { %9376 = vmatpush3.bf16.msra.mxu0 %v10354_v53  ;;  %v10408_v53 = vld [vmem:[#allocation5 + $0x5f0] sm:$0xff]  }
  0xe3   :  { %9377 = vmatprep.subr.bf16.mxu0 %v10357_v56  ;;  %v10411_v56 = vld [vmem:[#allocation5 + $0x538] sm:$0xff]  }
  0xe4   :  { %9398 = vmatpush3.bf16.msra.mxu1 %v10356_v55  ;;  %v10410_v55 = vld [vmem:[#allocation5 + $0x578] sm:$0xff]  }
  0xe5   :  { %9399 = vmatprep.subr.bf16.mxu1 %v10359_v58  ;;  %v93_v58 = vld [vmem:[#allocation2 + $0x28] sm:$0xff] }
  0xe6   :  { %9378 = vmatpush3.bf16.msra.mxu0 %v10358_v57  ;;  %v10412_v57 = vld [vmem:[#allocation5 + $0x5f8] sm:$0xff]  }
  0xe7   :  { %9379 = vmatprep.subr.bf16.mxu0 %v10361_v60  ;;  %v10413_v60 = vld [vmem:[#allocation5 + $0x5b8] sm:$0xff]  }
  0xe8   :  { %9400 = vmatpush3.bf16.msra.mxu1 %v10360_v59  ;;  %v226_v59 = vrot.slane %v93_v58, %v11223_v34 }
  0xe9   :  { %9401 = vmatprep.subr.bf16.mxu1 %v10363_v62  ;;  %v10414_v62 = vld [vmem:[#allocation5 + $0x640] sm:$0xff]  }
  0xea   :  { %9380 = vmatpush3.bf16.msra.mxu0 %v10362_v61  ;;  %v219_v61 = vcombine.high %v93_v58, %v93_v58  ;;  %v10457_v58 = vld [vmem:[#allocation5 + $0x710] sm:$0xff]  }
  0xeb   :  { %9381 = vmatprep.subr.bf16.mxu0 %v10365_v0 }
  0xec   :  { %9402 = vmatpush3.bf16.msra.mxu1 %v10364_v63  ;;  %v234_v63 = vcombine.high %v226_v59, %v226_v59  ;;  %v233_v0 = vrot.slane %v219_v61, %v11223_v34  ;;  %v10462_v61 = vld [vmem:[#allocation5 + $0x7d8] sm:$0xff]  }
  0xed   :  { %9403 = vmatprep.subr.bf16.mxu1 %v10367_v2  ;;  %v626_v2 = vpack.c.bf16 %v226_v59, %v226_v59  ;;  %v10460_v59 = vld [vmem:[#allocation5 + $0x758] sm:$0xff]  }
  0xee   :  { %9382 = vmatpush3.bf16.msra.mxu0 %v10366_v1  ;;  %v10416_v1 = vld [vmem:[#allocation5 + $0x600] sm:$0xff]  }
  0xef   :  { %9383 = vmatprep.subr.bf16.mxu0 %v10369_v4  ;;  %v627_v4 = vpack.c.bf16 %v234_v63, %v234_v63  ;;  %v10464_v63 = vld [vmem:[#allocation5 + $0x760] sm:$0xff]  }
  0xf0   :  { %9404 = vmatpush3.bf16.msra.mxu1 %v10368_v3  ;;  %v10417_v3 = vld [vmem:[#allocation5 + $0x6c0] sm:$0xff]  }
  0xf1   :  { %9405 = vmatprep.subr.bf16.mxu1 %v10371_v6  ;;  %v10418_v6 = vld [vmem:[#allocation5 + $0x680] sm:$0xff]  }
  0xf2   :  { %9384 = vmatpush3.bf16.msra.mxu0 %v10370_v5  ;;  %v235_v5 = vcombine.high %v233_v0, %v233_v0 }
  0xf3   :  { %9385 = vmatprep.subr.bf16.mxu0 %v10373_v8  ;;  %v10419_v8 = vld [vmem:[#allocation5 + $0x648] sm:$0xff]  }
  0xf4   :  { %9406 = vmatpush3.bf16.msra.mxu1 %v10372_v7  ;;  %v628_v7 = vpack.c.bf16 %v233_v0, %v233_v0  ;;  %v10463_v0 = vld [vmem:[#allocation5 + $0x798] sm:$0xff]  }
  0xf5   :  { %9407 = vmatprep.subr.bf16.mxu1 %v10375_v10  ;;  %v10420_v10 = vld [vmem:[#allocation5 + $0x608] sm:$0xff]  }
  0xf6   :  { %9386 = vmatpush3.bf16.msra.mxu0 %v10374_v9  ;;  %v629_v9 = vpack.c.bf16 %v235_v5, %v235_v5  ;;  %v10469_v5 = vld [vmem:[#allocation5 + $0x728] sm:$0xff]  }
  0xf7   :  { %9387 = vmatprep.subr.bf16.mxu0 %v10377_v12  ;;  %v10422_v12 = vld [vmem:[#allocation5 + $0x688] sm:$0xff]  }
  0xf8   :  { %9408 = vmatpush3.bf16.msra.mxu1 %v10376_v11  ;;  %v10421_v11 = vld [vmem:[#allocation5 + $0x6c8] sm:$0xff]  }
  0xf9   :  { %9409 = vmatprep.subr.bf16.mxu1 %v10379_v14  ;;  %v10424_v14 = vld [vmem:[#allocation5 + $0x610] sm:$0xff]  }
  0xfa   :  { %9388 = vmatpush3.bf16.msra.mxu0 %v10378_v13  ;;  %v10423_v13 = vld [vmem:[#allocation5 + $0x650] sm:$0xff]  }
  0xfb   :  { %9417 = vmatprep.subr.bf16.mxu0 %v10381_v19  ;;  %v10429_v19 = vld [vmem:[#allocation5 + $0x6d8] sm:$0xff]  }
  0xfc   :  { %9410 = vmatpush3.bf16.msra.mxu1 %v10380_v17  ;;  %v10427_v17 = vld [vmem:[#allocation5 + $0x658] sm:$0xff]  }
  0xfd   :  { %6804 = vmatmul.mubr.bf16.vlgmr.msra.gmra.mrb[16].mxu0 %v622_v23  ;;  %9439 = vmatprep.subr.bf16.mxu1 %v10384_v24  ;;  %v10433_v23 = vld [vmem:[#allocation5 + $0x6e0] sm:$0xff]  }
  0xfe   :  { %9418 = vmatpush3.bf16.msra.mxu0 %v10383_v22  ;;  %6883 = vmatprep.mubr.bf16.mxu0 %v627_v4  ;;  %v10432_v22 = vld [vmem:[#allocation5 + $0x620] sm:$0xff]   ;;  %v10468_v4 = vld [vmem:[#allocation5 + $0x768] sm:$0xff]  }
  0xff   :  { %6844 = vmatmul.mubr.bf16.vlgmr.msra.gmra.mrb[16].mxu1 %v624_v28  ;;  %9419 = vmatprep.subr.bf16.mxu0 %v10386_v29  ;;  %v10434_v24 = vld [vmem:[#allocation5 + $0x6a0] sm:$0xff]   ;;  %v10438_v28 = vld [vmem:[#allocation5 + $0x6a8] sm:$0xff]   ;;  %v10439_v29 = vld [vmem:[#allocation5 + $0x670] sm:$0xff]  }
 0x100   :  { %9440 = vmatpush3.bf16.msra.mxu1 %v10385_v27  ;;  %6923 = vmatprep.mubr.bf16.mxu1 %v629_v9  ;;  %v10437_v27 = vld [vmem:[#allocation5 + $0x6e8] sm:$0xff]  }
 0x101   :  { %9441 = vmatprep.subr.bf16.mxu1 %v10388_v32  ;;  %v10442_v32 = vld [vmem:[#allocation5 + $0x6b0] sm:$0xff]   ;;  %v10471_v9 = vld [vmem:[#allocation5 + $0x7a8] sm:$0xff]  }
 0x102   :  { %9420 = vmatpush3.bf16.msra.mxu0 %v10387_v31  ;;  %v10441_v31 = vld [vmem:[#allocation5 + $0x6f0] sm:$0xff]  }
 0x103   :  { %9421 = vmatprep.subr.bf16.mxu0 %v10390_v35  ;;  %v10444_v35 = vld [vmem:[#allocation5 + $0x638] sm:$0xff]  }
 0x104   :  { %9442 = vmatpush3.bf16.msra.mxu1 %v10389_v33  ;;  %v10443_v33 = vld [vmem:[#allocation5 + $0x678] sm:$0xff]  }
 0x105   :  { %9443 = vmatprep.subr.bf16.mxu1 %v10392_v37  ;;  %v94_v37 = vld [vmem:[#allocation2 + $0x30] sm:$0xff] }
 0x106   :  { %9422 = vmatpush3.bf16.msra.mxu0 %v10391_v36  ;;  %v10445_v36 = vld [vmem:[#allocation5 + $0x6f8] sm:$0xff]  }
 0x107   :  { %9423 = vmatprep.subr.bf16.mxu0 %v10394_v39  ;;  %v10446_v39 = vld [vmem:[#allocation5 + $0x6b8] sm:$0xff]  }
 0x108   :  { %9444 = vmatpush3.bf16.msra.mxu1 %v10393_v38  ;;  %v243_v38 = vrot.slane %v94_v37, %v11223_v34 }
 0x109   :  { %9445 = vmatprep.subr.bf16.mxu1 %v10396_v41  ;;  %v10447_v41 = vld [vmem:[#allocation5 + $0x740] sm:$0xff]  }
 0x10a   :  { %9424 = vmatpush3.bf16.msra.mxu0 %v10395_v40  ;;  %v236_v40 = vcombine.high %v94_v37, %v94_v37  ;;  %v10483_v37 = vld [vmem:[#allocation5 + $0x8c0] sm:$0xff]  }
 0x10b   :  { %9425 = vmatprep.subr.bf16.mxu0 %v10398_v43 }
 0x10c   :  { %9446 = vmatpush3.bf16.msra.mxu1 %v10397_v42  ;;  %v251_v42 = vcombine.high %v243_v38, %v243_v38  ;;  %v250_v43 = vrot.slane %v236_v40, %v11223_v34  ;;  %v10482_v40 = vld [vmem:[#allocation5 + $0x800] sm:$0xff]  }
 0x10d   :  { %9447 = vmatprep.subr.bf16.mxu1 %v10400_v45  ;;  %v10450_v45 = vld [vmem:[#allocation5 + $0x7c0] sm:$0xff]  }
 0x10e   :  { %9426 = vmatpush3.bf16.msra.mxu0 %v10399_v44  ;;  %v630_v44 = vpack.c.bf16 %v243_v38, %v243_v38 }
 0x10f   :  { %9427 = vmatprep.subr.bf16.mxu0 %v10402_v47  ;;  %v252_v47 = vcombine.high %v250_v43, %v250_v43 }
 0x110   :  { %9448 = vmatpush3.bf16.msra.mxu1 %v10401_v46  ;;  %v631_v46 = vpack.c.bf16 %v251_v42, %v251_v42  ;;  %v10485_v42 = vld [vmem:[#allocation5 + $0x848] sm:$0xff]  }
 0x111   :  { %9449 = vmatprep.subr.bf16.mxu1 %v10404_v49  ;;  %v632_v49 = vpack.c.bf16 %v250_v43, %v250_v43 }
 0x112   :  { %9428 = vmatpush3.bf16.msra.mxu0 %v10403_v48  ;;  %v10449_v48 = vld [vmem:[#allocation5 + $0x700] sm:$0xff]  }
 0x113   :  { %9429 = vmatprep.subr.bf16.mxu0 %v10406_v51  ;;  %v633_v51 = vpack.c.bf16 %v252_v47, %v252_v47  ;;  %v10489_v47 = vld [vmem:[#allocation5 + $0x850] sm:$0xff]  }
 0x114   :  { %9450 = vmatpush3.bf16.msra.mxu1 %v10405_v50  ;;  %v10452_v50 = vld [vmem:[#allocation5 + $0x748] sm:$0xff]  }
 0x115   :  { %9451 = vmatprep.subr.bf16.mxu1 %v10408_v53  ;;  %v10454_v53 = vld [vmem:[#allocation5 + $0x7c8] sm:$0xff]  }
 0x116   :  { %9430 = vmatpush3.bf16.msra.mxu0 %v10407_v52  ;;  %v10451_v52 = vld [vmem:[#allocation5 + $0x780] sm:$0xff]  }
 0x117   :  { %9431 = vmatprep.subr.bf16.mxu0 %v10410_v55  ;;  %v10456_v55 = vld [vmem:[#allocation5 + $0x750] sm:$0xff]  }
 0x118   :  { %9452 = vmatpush3.bf16.msra.mxu1 %v10409_v54  ;;  %v10453_v54 = vld [vmem:[#allocation5 + $0x708] sm:$0xff]  }
 0x119   :  { %9453 = vmatprep.subr.bf16.mxu1 %v10412_v57  ;;  %v10458_v57 = vld [vmem:[#allocation5 + $0x7d0] sm:$0xff]  }
 0x11a   :  { %9432 = vmatpush3.bf16.msra.mxu0 %v10411_v56  ;;  %v10455_v56 = vld [vmem:[#allocation5 + $0x788] sm:$0xff]  }
 0x11b   :  { %9461 = vmatprep.subr.bf16.mxu0 %v10414_v62  ;;  %v10461_v62 = vld [vmem:[#allocation5 + $0x718] sm:$0xff]  }
 0x11c   :  { %9454 = vmatpush3.bf16.msra.mxu1 %v10413_v60  ;;  %v10459_v60 = vld [vmem:[#allocation5 + $0x790] sm:$0xff]  }
 0x11d   :  { %6884 = vmatmul.mubr.bf16.vlgmr.msra.gmra.mrb[20].mxu0 %v626_v2  ;;  %9483 = vmatprep.subr.bf16.mxu1 %v10417_v3  ;;  %v10465_v2 = vld [vmem:[#allocation5 + $0x720] sm:$0xff]  }
 0x11e   :  { %9462 = vmatpush3.bf16.msra.mxu0 %v10416_v1  ;;  %6963 = vmatprep.mubr.bf16.mxu0 %v631_v46  ;;  %v10466_v1 = vld [vmem:[#allocation5 + $0x7e0] sm:$0xff]   ;;  %v10486_v46 = vld [vmem:[#allocation5 + $0x808] sm:$0xff]  }
 0x11f   :  { %6924 = vmatmul.mubr.bf16.vlgmr.msra.gmra.mrb[20].mxu1 %v628_v7  ;;  %9463 = vmatprep.subr.bf16.mxu0 %v10419_v8  ;;  %v10467_v3 = vld [vmem:[#allocation5 + $0x7a0] sm:$0xff]   ;;  %v10470_v7 = vld [vmem:[#allocation5 + $0x7e8] sm:$0xff]  }
 0x120   :  { %9484 = vmatpush3.bf16.msra.mxu1 %v10418_v6  ;;  %7003 = vmatprep.mubr.bf16.mxu1 %v633_v51  ;;  %v8464_v6 = vld [vmem:[#allocation7] ss:$0 sm:$0xff]  ;;  %v10493_v51 = vld [vmem:[#allocation5 + $0x858] sm:$0xff]  }
 0x121   :  { %9485 = vmatprep.subr.bf16.mxu1 %v10421_v11  ;;  %v10472_v11 = vld [vmem:[#allocation5 + $0x770] sm:$0xff]  }
 0x122   :  { %9464 = vmatpush3.bf16.msra.mxu0 %v10420_v10 }
 0x123   :  { %9465 = vmatprep.subr.bf16.mxu0 %v10423_v13 }
 0x124   :  { %9486 = vmatpush3.bf16.msra.mxu1 %v10422_v12 }
 0x125   :  { %9487 = vmatprep.subr.bf16.mxu1 %v10425_v15  ;;  %v10473_v15 = vld [vmem:[#allocation5 + $0x730] sm:$0xff]  }
 0x126   :  { %9466 = vmatpush3.bf16.msra.mxu0 %v10424_v14 }
 0x127   :  { %9467 = vmatprep.subr.bf16.mxu0 %v10427_v17 }
 0x128   :  { %9488 = vmatpush3.bf16.msra.mxu1 %v10426_v16  ;;  %v10474_v16 = vld [vmem:[#allocation5 + $0x7f0] sm:$0xff]  }
 0x129   :  { %9489 = vmatprep.subr.bf16.mxu1 %v10429_v19 }
 0x12a   :  { %9468 = vmatpush3.bf16.msra.mxu0 %v10428_v18 }
 0x12b   :  { %9469 = vmatprep.subr.bf16.mxu0 %v10431_v21  ;;  %v10475_v21 = vld [vmem:[#allocation5 + $0x7b0] sm:$0xff]  }
 0x12c   :  { %9490 = vmatpush3.bf16.msra.mxu1 %v10430_v20 }
 0x12d   :  { %9491 = vmatprep.subr.bf16.mxu1 %v10433_v23  ;;  %v10476_v23 = vld [vmem:[#allocation5 + $0x778] sm:$0xff]  }
 0x12e   :  { %9470 = vmatpush3.bf16.msra.mxu0 %v10432_v22 }
 0x12f   :  { %9471 = vmatprep.subr.bf16.mxu0 %v10435_v25 }
 0x130   :  { %9492 = vmatpush3.bf16.msra.mxu1 %v10434_v24 }
 0x131   :  { %9493 = vmatprep.subr.bf16.mxu1 %v10437_v27  ;;  %v10478_v27 = vld [vmem:[#allocation5 + $0x7f8] sm:$0xff]  }
 0x132   :  { %9472 = vmatpush3.bf16.msra.mxu0 %v10436_v26  ;;  %v10477_v26 = vld [vmem:[#allocation5 + $0x738] sm:$0xff]  }
 0x133   :  { %9473 = vmatprep.subr.bf16.mxu0 %v10439_v29 }
 0x134   :  { %9494 = vmatpush3.bf16.msra.mxu1 %v10438_v28  ;;  %v95_v28 = vld [vmem:[#allocation2 + $0x38] sm:$0xff] }
 0x135   :  { %9495 = vmatprep.subr.bf16.mxu1 %v10441_v31  ;;  %v260_v29 = vrot.slane %v95_v28, %v11223_v34  ;;  %v253_v31 = vcombine.high %v95_v28, %v95_v28  ;;  %v10516_v28 = vld [vmem:[#allocation5 + $0x9c0] sm:$0xff]  }
 0x136   :  { %9474 = vmatpush3.bf16.msra.mxu0 %v10440_v30  ;;  %v10479_v30 = vld [vmem:[#allocation5 + $0x7b8] sm:$0xff]  }
 0x137   :  { %9475 = vmatprep.subr.bf16.mxu0 %v10443_v33  ;;  %v268_v33 = vcombine.high %v260_v29, %v260_v29 }
 0x138   :  { %9496 = vmatpush3.bf16.msra.mxu1 %v10442_v32  ;;  %v10480_v32 = vld [vmem:[#allocation5 + $0x840] sm:$0xff]  }
 0x139   :  { %9497 = vmatprep.subr.bf16.mxu1 %v10445_v36  ;;  %v634_v36 = vpack.c.bf16 %v260_v29, %v260_v29  ;;  %v635_v38 = vpack.c.bf16 %v268_v33, %v268_v33  ;;  %v10518_v33 = vld [vmem:[#allocation5 + $0x948] sm:$0xff]  }
 0x13a   :  { %9476 = vmatpush3.bf16.msra.mxu0 %v10444_v35  ;;  %v267_v35 = vrot.slane %v253_v31, %v11223_v34  ;;  %v10517_v31 = vld [vmem:[#allocation5 + $0x980] sm:$0xff]  }
 0x13b   :  { %9505 = vmatprep.subr.bf16.mxu0 %v10447_v41 }
 0x13c   :  { %9498 = vmatpush3.bf16.msra.mxu1 %v10446_v39  ;;  %v269_v39 = vcombine.high %v267_v35, %v267_v35  ;;  %v636_v41 = vpack.c.bf16 %v267_v35, %v267_v35 }
 0x13d   :  { %9527 = vmatprep.subr.bf16.mxu1 %v10450_v45  ;;  %6964 = vmatmul.mubr.bf16.vlgmr.msra.gmra.mrb[24].mxu0 %v630_v44  ;;  %v10484_v44 = vld [vmem:[#allocation5 + $0x880] sm:$0xff]   ;;  %v10487_v45 = vld [vmem:[#allocation5 + $0x8c8] sm:$0xff]  }
 0x13e   :  { %9506 = vmatpush3.bf16.msra.mxu0 %v10449_v48  ;;  %7043 = vmatprep.mubr.bf16.mxu0 %v635_v38  ;;  %v637_v43 = vpack.c.bf16 %v269_v39, %v269_v39  ;;  %v10488_v48 = vld [vmem:[#allocation5 + $0x888] sm:$0xff]   ;;  %v10522_v39 = vld [vmem:[#allocation5 + $0x950] sm:$0xff]  }
 0x13f   :  { %7004 = vmatmul.mubr.bf16.vlgmr.msra.gmra.mrb[24].mxu1 %v632_v49  ;;  %9507 = vmatprep.subr.bf16.mxu0 %v10452_v50  ;;  %v10491_v49 = vld [vmem:[#allocation5 + $0x8d0] sm:$0xff]   ;;  %v10521_v38 = vld [vmem:[#allocation5 + $0x988] sm:$0xff]  }
 0x140   :  { %9528 = vmatpush3.bf16.msra.mxu1 %v10451_v52  ;;  %7083 = vmatprep.mubr.bf16.mxu1 %v637_v43  ;;  %v10490_v50 = vld [vmem:[#allocation5 + $0x810] sm:$0xff]   ;;  %v10526_v43 = vld [vmem:[#allocation5 + $0x958] sm:$0xff]  }
 0x141   :  { %9529 = vmatprep.subr.bf16.mxu1 %v10454_v53  ;;  %v10492_v52 = vld [vmem:[#allocation5 + $0x890] sm:$0xff]   ;;  %v10495_v53 = vld [vmem:[#allocation5 + $0x8d8] sm:$0xff]  }
 0x142   :  { %9508 = vmatpush3.bf16.msra.mxu0 %v10453_v54  ;;  %v10494_v54 = vld [vmem:[#allocation5 + $0x818] sm:$0xff]  }
 0x143   :  { %9509 = vmatprep.subr.bf16.mxu0 %v10456_v55  ;;  %v10497_v55 = vld [vmem:[#allocation5 + $0x860] sm:$0xff]  }
 0x144   :  { %9530 = vmatpush3.bf16.msra.mxu1 %v10455_v56  ;;  %v10496_v56 = vld [vmem:[#allocation5 + $0x898] sm:$0xff]  }
 0x145   :  { %9531 = vmatprep.subr.bf16.mxu1 %v10458_v57  ;;  %v10499_v57 = vld [vmem:[#allocation5 + $0x8e0] sm:$0xff]  }
 0x146   :  { %9510 = vmatpush3.bf16.msra.mxu0 %v10457_v58  ;;  %v10498_v58 = vld [vmem:[#allocation5 + $0x820] sm:$0xff]  }
 0x147   :  { %9511 = vmatprep.subr.bf16.mxu0 %v10460_v59  ;;  %v10501_v59 = vld [vmem:[#allocation5 + $0x868] sm:$0xff]  }
 0x148   :  { %9532 = vmatpush3.bf16.msra.mxu1 %v10459_v60  ;;  %v10500_v60 = vld [vmem:[#allocation5 + $0x8a0] sm:$0xff]  }
 0x149   :  { %9533 = vmatprep.subr.bf16.mxu1 %v10462_v61 }
 0x14a   :  { %9512 = vmatpush3.bf16.msra.mxu0 %v10461_v62  ;;  %v10503_v62 = vld [vmem:[#allocation5 + $0x8e8] sm:$0xff]  }
 0x14b   :  { %9513 = vmatprep.subr.bf16.mxu0 %v10464_v63 }
 0x14c   :  { %9534 = vmatpush3.bf16.msra.mxu1 %v10463_v0  ;;  %v10502_v0 = vld [vmem:[#allocation5 + $0x828] sm:$0xff]  }
 0x14d   :  { %9535 = vmatprep.subr.bf16.mxu1 %v10466_v1 }
 0x14e   :  { %9514 = vmatpush3.bf16.msra.mxu0 %v10465_v2 }
 0x14f   :  { %9515 = vmatprep.subr.bf16.mxu0 %v10468_v4  ;;  %v10504_v4 = vld [vmem:[#allocation5 + $0x8a8] sm:$0xff]  }
 0x150   :  { %v9213_v8 = vpop.f32.mrb[0].mxu0  ;;  %9536 = vmatpush3.bf16.msra.mxu1 %v10467_v3 }
 0x151   :  { %v9214_v10 = vpop.f32.mrb[1].mxu0  ;;  %9537 = vmatprep.subr.bf16.mxu1 %v10470_v7 }
 0x152   :  { %v9215_v12 = vadd.f32 %v9214_v10, %v9213_v8  ;;  %v9216_v13 = vpop.f32.mrb[2].mxu0  ;;  %v9235_v14 = vpop.f32.mrb[0].mxu1  ;;  %9516 = vmatpush3.bf16.msra.mxu0 %v10469_v5  ;;  %v10505_v5 = vld [vmem:[#allocation5 + $0x870] sm:$0xff]  }
 0x153   :  { %v9217_v17 = vpop.f32.mrb[3].mxu0  ;;  %v9236_v18 = vpop.f32.mrb[1].mxu1  ;;  %9517 = vmatprep.subr.bf16.mxu0 %v10472_v11  ;;  %v10506_v8 = vld [vmem:[#allocation5 + $0x830] sm:$0xff]  }
 0x154   :  { %v6486_v19 = vadd.f32 %v9215_v12, %v8464_v6  ;;  %v9237_v20 = vadd.f32 %v9236_v18, %v9235_v14  ;;  %v9238_v22 = vpop.f32.mrb[2].mxu1  ;;  %9538 = vmatpush3.bf16.msra.mxu1 %v10471_v9  ;;  %v10507_v11 = vld [vmem:[#allocation5 + $0x8f0] sm:$0xff]   ;;  %v10510_v17 = vld [vmem:[#allocation5 + $0x838] sm:$0xff]  }
 0x155   :  { %v9239_v24 = vpop.f32.mrb[3].mxu1  ;;  %9539 = vmatprep.subr.bf16.mxu1 %v10474_v16  ;;  %v10508_v13 = vld [vmem:[#allocation5 + $0x8b0] sm:$0xff]   ;;  %v10509_v16 = vld [vmem:[#allocation5 + $0x878] sm:$0xff]  }
 0x156   :  { %v11239_v25 = vadd.f32 %v9237_v20, %v6486_v19  ;;  %9518 = vmatpush3.bf16.msra.mxu0 %v10473_v15  ;;  %v10511_v18 = vld [vmem:[#allocation5 + $0x8f8] sm:$0xff]   ;;  %v96_v19 = vld [vmem:[#allocation2 + $0x40] sm:$0xff] }
 0x157   :  { %9519 = vmatprep.subr.bf16.mxu0 %v10476_v23  ;;  %v277_v20 = vrot.slane %v96_v19, %v11223_v34  ;;  %v270_v22 = vcombine.high %v96_v19, %v96_v19  ;;  %v10513_v23 = vld [vmem:[#allocation5 + $0x940] sm:$0xff]  }
 0x158   :  { %9540 = vmatpush3.bf16.msra.mxu1 %v10475_v21  ;;  %v10512_v21 = vld [vmem:[#allocation5 + $0x8b8] sm:$0xff]  }
 0x159   :  { %9541 = vmatprep.subr.bf16.mxu1 %v10478_v27  ;;  %v285_v24 = vcombine.high %v277_v20, %v277_v20  ;;  %v638_v27 = vpack.c.bf16 %v277_v20, %v277_v20 }
 0x15a   :  { %9520 = vmatpush3.bf16.msra.mxu0 %v10477_v26  ;;  %v10515_v26 = vld [vmem:[#allocation5 + $0x900] sm:$0xff]  }
 0x15b   :  { %9549 = vmatprep.subr.bf16.mxu0 %v10480_v32  ;;  %v639_v29 = vpack.c.bf16 %v285_v24, %v285_v24 }
 0x15c   :  { %9542 = vmatpush3.bf16.msra.mxu1 %v10479_v30 }
 0x15d   :  { %9571 = vmatprep.subr.bf16.mxu1 %v10483_v37  ;;  %7044 = vmatmul.mubr.bf16.vlgmr.msra.gmra.mrb[28].mxu0 %v634_v36  ;;  %v10519_v36 = vld [vmem:[#allocation5 + $0x908] sm:$0xff]  }
 0x15e   :  { %9550 = vmatpush3.bf16.msra.mxu0 %v10482_v40  ;;  %7123 = vmatprep.mubr.bf16.mxu0 %v639_v29  ;;  %v10520_v37 = vld [vmem:[#allocation5 + $0x9c8] sm:$0xff]   ;;  %v10523_v40 = vld [vmem:[#allocation5 + $0x910] sm:$0xff]  }
 0x15f   :  { %7084 = vmatmul.mubr.bf16.vlgmr.msra.gmra.mrb[28].mxu1 %v636_v41  ;;  %9551 = vmatprep.subr.bf16.mxu0 %v10485_v42  ;;  %v10524_v41 = vld [vmem:[#allocation5 + $0x9d0] sm:$0xff]   ;;  %v10554_v29 = vld [vmem:[#allocation5 + $0xa88] sm:$0xff]  }
 0x160   :  { %9572 = vmatpush3.bf16.msra.mxu1 %v10484_v44  ;;  %v10525_v42 = vld [vmem:[#allocation5 + $0x990] sm:$0xff]   ;;  %v10527_v44 = vld [vmem:[#allocation5 + $0x918] sm:$0xff]  }
 0x161   :  { %9573 = vmatprep.subr.bf16.mxu1 %v10487_v45  ;;  %v10528_v45 = vld [vmem:[#allocation5 + $0x9d8] sm:$0xff]  }
 0x162   :  { %9552 = vmatpush3.bf16.msra.mxu0 %v10486_v46  ;;  %v10529_v46 = vld [vmem:[#allocation5 + $0x998] sm:$0xff]  }
 0x163   :  { %9553 = vmatprep.subr.bf16.mxu0 %v10489_v47  ;;  %v10530_v47 = vld [vmem:[#allocation5 + $0x960] sm:$0xff]  }
 0x164   :  { %9574 = vmatpush3.bf16.msra.mxu1 %v10488_v48  ;;  %v10531_v48 = vld [vmem:[#allocation5 + $0x920] sm:$0xff]  }
 0x165   :  { %9575 = vmatprep.subr.bf16.mxu1 %v10491_v49  ;;  %v10532_v49 = vld [vmem:[#allocation5 + $0x9e0] sm:$0xff]  }
 0x166   :  { %9554 = vmatpush3.bf16.msra.mxu0 %v10490_v50  ;;  %v10533_v50 = vld [vmem:[#allocation5 + $0x9a0] sm:$0xff]  }
 0x167   :  { %9555 = vmatprep.subr.bf16.mxu0 %v10493_v51  ;;  %v10534_v51 = vld [vmem:[#allocation5 + $0x968] sm:$0xff]  }
 0x168   :  { %9576 = vmatpush3.bf16.msra.mxu1 %v10492_v52  ;;  %v10535_v52 = vld [vmem:[#allocation5 + $0x928] sm:$0xff]  }
 0x169   :  { %9577 = vmatprep.subr.bf16.mxu1 %v10495_v53 }
 0x16a   :  { %9556 = vmatpush3.bf16.msra.mxu0 %v10494_v54  ;;  %v10536_v54 = vld [vmem:[#allocation5 + $0x9e8] sm:$0xff]  }
 0x16b   :  { %9557 = vmatprep.subr.bf16.mxu0 %v10497_v55 }
 0x16c   :  { %9578 = vmatpush3.bf16.msra.mxu1 %v10496_v56  ;;  %v10537_v56 = vld [vmem:[#allocation5 + $0x9a8] sm:$0xff]  }
 0x16d   :  { %9579 = vmatprep.subr.bf16.mxu1 %v10499_v57 }
 0x16e   :  { %9558 = vmatpush3.bf16.msra.mxu0 %v10498_v58 }
 0x16f   :  { %9559 = vmatprep.subr.bf16.mxu0 %v10501_v59 }
 0x170   :  { %v9257_v61 = vpop.f32.mrb[4].mxu0  ;;  %9580 = vmatpush3.bf16.msra.mxu1 %v10500_v60 }
 0x171   :  { %v9258_v63 = vpop.f32.mrb[5].mxu0  ;;  %9581 = vmatprep.subr.bf16.mxu1 %v10503_v62  ;;  %v10538_v62 = vld [vmem:[#allocation5 + $0x970] sm:$0xff]  }
 0x172   :  { %v9259_v1 = vadd.f32 %v9258_v63, %v9257_v61  ;;  %v9260_v2 = vpop.f32.mrb[6].mxu0  ;;  %v9279_v3 = vpop.f32.mrb[4].mxu1  ;;  %9560 = vmatpush3.bf16.msra.mxu0 %v10502_v0  ;;  %v10539_v63 = vld [vmem:[#allocation5 + $0x930] sm:$0xff]  }
 0x173   :  { %v9261_v6 = vpop.f32.mrb[7].mxu0  ;;  %v9280_v7 = vpop.f32.mrb[5].mxu1  ;;  %9561 = vmatprep.subr.bf16.mxu0 %v10505_v5  ;;  %v10540_v2 = vld [vmem:[#allocation5 + $0x9f0] sm:$0xff]  }
 0x174   :  { %v6566_v9 = vadd.f32 %v9259_v1, %v11239_v25  ;;  %v9281_v10 = vadd.f32 %v9280_v7, %v9279_v3  ;;  %v9282_v12 = vpop.f32.mrb[6].mxu1  ;;  %9582 = vmatpush3.bf16.msra.mxu1 %v10504_v4  ;;  %v284_v25 = vrot.slane %v270_v22, %v11223_v34  ;;  %v10541_v5 = vld [vmem:[#allocation5 + $0x9b0] sm:$0xff]   ;;  %v10542_v7 = vld [vmem:[#allocation5 + $0x978] sm:$0xff]  }
 0x175   :  { %v9283_v14 = vpop.f32.mrb[7].mxu1  ;;  %9583 = vmatprep.subr.bf16.mxu1 %v10507_v11  ;;  %v10545_v12 = vld [vmem:[#allocation5 + $0x9b8] sm:$0xff]  }
 0x176   :  { %v11244_v15 = vadd.f32 %v9281_v10, %v6566_v9  ;;  %9562 = vmatpush3.bf16.msra.mxu0 %v10506_v8  ;;  %v286_v30 = vcombine.high %v284_v25, %v284_v25  ;;  %v640_v32 = vpack.c.bf16 %v284_v25, %v284_v25  ;;  %v10543_v8 = vld [vmem:[#allocation5 + $0x938] sm:$0xff]   ;;  %v10546_v14 = vld [vmem:[#allocation5 + $0xa40] sm:$0xff]  }
 0x177   :  { %9563 = vmatprep.subr.bf16.mxu0 %v10509_v16  ;;  %v10544_v9 = vld [vmem:[#allocation5 + $0x9f8] sm:$0xff]   ;;  %v10550_v25 = vld [vmem:[#allocation5 + $0xa80] sm:$0xff]  }
 0x178   :  { %9584 = vmatpush3.bf16.msra.mxu1 %v10508_v13  ;;  %v641_v35 = vpack.c.bf16 %v286_v30, %v286_v30  ;;  %v97_v10 = vld [vmem:[#allocation2 + $0x48] sm:$0xff] }
 0x179   :  { %9585 = vmatprep.subr.bf16.mxu1 %v10511_v18  ;;  %v294_v11 = vrot.slane %v97_v10, %v11223_v34  ;;  %v287_v13 = vcombine.high %v97_v10, %v97_v10  ;;  %v10549_v18 = vld [vmem:[#allocation5 + $0xac0] sm:$0xff]   ;;  %v10557_v30 = vld [vmem:[#allocation5 + $0xad0] sm:$0xff]  }
 0x17a   :  { %9564 = vmatpush3.bf16.msra.mxu0 %v10510_v17  ;;  %7163 = vmatprep.mubr.bf16.mxu1 %v641_v35  ;;  %v10561_v35 = vld [vmem:[#allocation5 + $0xad8] sm:$0xff]   ;;  %v10582_v10 = vld [vmem:[#allocation5 + $0xbc0] sm:$0xff]  }
 0x17b   :  { %9593 = vmatprep.subr.bf16.mxu0 %v10513_v23  ;;  %v301_v16 = vrot.slane %v287_v13, %v11223_v34  ;;  %v642_v17 = vpack.c.bf16 %v294_v11, %v294_v11  ;;  %v10551_v23 = vld [vmem:[#allocation5 + $0xa48] sm:$0xff]   ;;  %v10583_v13 = vld [vmem:[#allocation5 + $0xb80] sm:$0xff]  }
 0x17c   :  { %9586 = vmatpush3.bf16.msra.mxu1 %v10512_v21  ;;  %v10548_v21 = vld [vmem:[#allocation5 + $0xa00] sm:$0xff]  }
 0x17d   :  { %7124 = vmatmul.mubr.bf16.vlgmr.msra.gmra.mrb[32].mxu0 %v638_v27  ;;  %9615 = vmatprep.subr.bf16.mxu1 %v10516_v28  ;;  %v303_v20 = vcombine.high %v301_v16, %v301_v16  ;;  %v644_v22 = vpack.c.bf16 %v301_v16, %v301_v16  ;;  %v10552_v27 = vld [vmem:[#allocation5 + $0xa08] sm:$0xff]   ;;  %v10555_v28 = vld [vmem:[#allocation5 + $0xa50] sm:$0xff]  }
 0x17e   :  { %9594 = vmatpush3.bf16.msra.mxu0 %v10515_v26  ;;  %v10553_v26 = vld [vmem:[#allocation5 + $0xac8] sm:$0xff]  }
 0x17f   :  { %7164 = vmatmul.mubr.bf16.vlgmr.msra.gmra.mrb[32].mxu1 %v640_v32  ;;  %9595 = vmatprep.subr.bf16.mxu0 %v10518_v33  ;;  %v645_v24 = vpack.c.bf16 %v303_v20, %v303_v20  ;;  %v10559_v32 = vld [vmem:[#allocation5 + $0xa58] sm:$0xff]   ;;  %v10558_v33 = vld [vmem:[#allocation5 + $0xa90] sm:$0xff]  }
 0x180   :  { %9616 = vmatpush3.bf16.msra.mxu1 %v10517_v31  ;;  %v10556_v31 = vld [vmem:[#allocation5 + $0xa10] sm:$0xff]  }
 0x181   :  { %9617 = vmatprep.subr.bf16.mxu1 %v10520_v37  ;;  %7243 = vmatprep.mubr.bf16.mxu1 %v645_v24  ;;  %v10563_v37 = vld [vmem:[#allocation5 + $0xa60] sm:$0xff]   ;;  %v10588_v20 = vld [vmem:[#allocation5 + $0xb50] sm:$0xff]   ;;  %v10592_v24 = vld [vmem:[#allocation5 + $0xb58] sm:$0xff]  }
 0x182   :  { %9596 = vmatpush3.bf16.msra.mxu0 %v10519_v36  ;;  %v10560_v36 = vld [vmem:[#allocation5 + $0xa18] sm:$0xff]  }
 0x183   :  { %9597 = vmatprep.subr.bf16.mxu0 %v10522_v39  ;;  %v10565_v39 = vld [vmem:[#allocation5 + $0xae0] sm:$0xff]  }
 0x184   :  { %9618 = vmatpush3.bf16.msra.mxu1 %v10521_v38  ;;  %v10562_v38 = vld [vmem:[#allocation5 + $0xa98] sm:$0xff]  }
 0x185   :  { %9619 = vmatprep.subr.bf16.mxu1 %v10524_v41  ;;  %v10567_v41 = vld [vmem:[#allocation5 + $0xa68] sm:$0xff]  }
 0x186   :  { %9598 = vmatpush3.bf16.msra.mxu0 %v10523_v40  ;;  %v10564_v40 = vld [vmem:[#allocation5 + $0xa20] sm:$0xff]  }
 0x187   :  { %9599 = vmatprep.subr.bf16.mxu0 %v10526_v43 }
 0x188   :  { %9620 = vmatpush3.bf16.msra.mxu1 %v10525_v42  ;;  %v10566_v42 = vld [vmem:[#allocation5 + $0xaa0] sm:$0xff]  }
 0x189   :  { %9621 = vmatprep.subr.bf16.mxu1 %v10528_v45 }
 0x18a   :  { %9600 = vmatpush3.bf16.msra.mxu0 %v10527_v44  ;;  %v10569_v44 = vld [vmem:[#allocation5 + $0xae8] sm:$0xff]  }
 0x18b   :  { %9601 = vmatprep.subr.bf16.mxu0 %v10530_v47 }
 0x18c   :  { %9622 = vmatpush3.bf16.msra.mxu1 %v10529_v46  ;;  %v10568_v46 = vld [vmem:[#allocation5 + $0xa28] sm:$0xff]  }
 0x18d   :  { %9623 = vmatprep.subr.bf16.mxu1 %v10532_v49 }
 0x18e   :  { %9602 = vmatpush3.bf16.msra.mxu0 %v10531_v48 }
 0x18f   :  { %9603 = vmatprep.subr.bf16.mxu0 %v10534_v51  ;;  %v10571_v51 = vld [vmem:[#allocation5 + $0xa70] sm:$0xff]  }
 0x190   :  { %v9301_v53 = vpop.f32.mrb[8].mxu0  ;;  %9624 = vmatpush3.bf16.msra.mxu1 %v10533_v50  ;;  %v10570_v50 = vld [vmem:[#allocation5 + $0xaa8] sm:$0xff]  }
 0x191   :  { %v9302_v55 = vpop.f32.mrb[9].mxu0  ;;  %9625 = vmatprep.subr.bf16.mxu1 %v10536_v54  ;;  %v10572_v54 = vld [vmem:[#allocation5 + $0xa30] sm:$0xff]  }
 0x192   :  { %v9303_v57 = vadd.f32 %v9302_v55, %v9301_v53  ;;  %v9304_v58 = vpop.f32.mrb[10].mxu0  ;;  %v9323_v59 = vpop.f32.mrb[8].mxu1  ;;  %9604 = vmatpush3.bf16.msra.mxu0 %v10535_v52 }
 0x193   :  { %v9305_v60 = vpop.f32.mrb[11].mxu0  ;;  %v9324_v61 = vpop.f32.mrb[9].mxu1  ;;  %9605 = vmatprep.subr.bf16.mxu0 %v10538_v62  ;;  %v10575_v62 = vld [vmem:[#allocation5 + $0xa78] sm:$0xff]  }
 0x194   :  { %v6646_v0 = vadd.f32 %v9303_v57, %v11244_v15  ;;  %v9325_v1 = vadd.f32 %v9324_v61, %v9323_v59  ;;  %v9326_v3 = vpop.f32.mrb[10].mxu1  ;;  %9626 = vmatpush3.bf16.msra.mxu1 %v10537_v56  ;;  %v302_v15 = vcombine.high %v294_v11, %v294_v11  ;;  %v10573_v57 = vld [vmem:[#allocation5 + $0xaf0] sm:$0xff]  }
 0x195   :  { %v9327_v6 = vpop.f32.mrb[11].mxu1  ;;  %9627 = vmatprep.subr.bf16.mxu1 %v10540_v2  ;;  %v10574_v59 = vld [vmem:[#allocation5 + $0xab0] sm:$0xff]   ;;  %v10578_v3 = vld [vmem:[#allocation5 + $0xab8] sm:$0xff]  }
 0x196   :  { %v11249_v4 = vadd.f32 %v9325_v1, %v6646_v0  ;;  %9606 = vmatpush3.bf16.msra.mxu0 %v10539_v63  ;;  %v643_v19 = vpack.c.bf16 %v302_v15, %v302_v15  ;;  %v10576_v63 = vld [vmem:[#allocation5 + $0xa38] sm:$0xff]   ;;  %v10584_v15 = vld [vmem:[#allocation5 + $0xb48] sm:$0xff]  }
 0x197   :  { %9607 = vmatprep.subr.bf16.mxu0 %v10542_v7  ;;  %v10577_v0 = vld [vmem:[#allocation5 + $0xaf8] sm:$0xff]  }
 0x198   :  { %9628 = vmatpush3.bf16.msra.mxu1 %v10541_v5  ;;  %7203 = vmatprep.mubr.bf16.mxu0 %v643_v19  ;;  %v98_v1 = vld [vmem:[#allocation2 + $0x50] sm:$0xff]  ;;  %v10587_v19 = vld [vmem:[#allocation5 + $0xb88] sm:$0xff]  }
 0x199   :  { %9629 = vmatprep.subr.bf16.mxu1 %v10544_v9  ;;  %v311_v2 = vrot.slane %v98_v1, %v11223_v34  ;;  %v10579_v5 = vld [vmem:[#allocation5 + $0xb40] sm:$0xff]  }
 0x19a   :  { %9608 = vmatpush3.bf16.msra.mxu0 %v10543_v8  ;;  %v10581_v8 = vld [vmem:[#allocation5 + $0xb00] sm:$0xff]  }
 0x19b   :  { %9637 = vmatprep.subr.bf16.mxu0 %v10546_v14  ;;  %v319_v6 = vcombine.high %v311_v2, %v311_v2  ;;  %v646_v9 = vpack.c.bf16 %v311_v2, %v311_v2 }
 0x19c   :  { %9630 = vmatpush3.bf16.msra.mxu1 %v10545_v12 }
 0x19d   :  { %9659 = vmatprep.subr.bf16.mxu1 %v10549_v18  ;;  %7204 = vmatmul.mubr.bf16.vlgmr.msra.gmra.mrb[36].mxu0 %v642_v17  ;;  %v647_v11 = vpack.c.bf16 %v319_v6, %v319_v6  ;;  %v10585_v17 = vld [vmem:[#allocation5 + $0xb08] sm:$0xff]  }
 0x19e   :  { %9638 = vmatpush3.bf16.msra.mxu0 %v10548_v21  ;;  %v10586_v18 = vld [vmem:[#allocation5 + $0xbc8] sm:$0xff]   ;;  %v10589_v21 = vld [vmem:[#allocation5 + $0xb10] sm:$0xff]  }
 0x19f   :  { %7244 = vmatmul.mubr.bf16.vlgmr.msra.gmra.mrb[36].mxu1 %v644_v22  ;;  %9639 = vmatprep.subr.bf16.mxu0 %v10551_v23  ;;  %v10590_v22 = vld [vmem:[#allocation5 + $0xbd0] sm:$0xff]   ;;  %v10617_v6 = vld [vmem:[#allocation5 + $0xc48] sm:$0xff]  }
 0x1a0   :  { %9660 = vmatpush3.bf16.msra.mxu1 %v10550_v25  ;;  %7283 = vmatprep.mubr.bf16.mxu0 %v647_v11  ;;  %v10591_v23 = vld [vmem:[#allocation5 + $0xb90] sm:$0xff]   ;;  %v10593_v25 = vld [vmem:[#allocation5 + $0xb18] sm:$0xff]  }
 0x1a1   :  { %9661 = vmatprep.subr.bf16.mxu1 %v10553_v26  ;;  %v10594_v26 = vld [vmem:[#allocation5 + $0xbd8] sm:$0xff]   ;;  %v10621_v11 = vld [vmem:[#allocation5 + $0xc50] sm:$0xff]  }
 0x1a2   :  { %9640 = vmatpush3.bf16.msra.mxu0 %v10552_v27  ;;  %v10595_v27 = vld [vmem:[#allocation5 + $0xb98] sm:$0xff]  }
 0x1a3   :  { %9641 = vmatprep.subr.bf16.mxu0 %v10555_v28  ;;  %v10596_v28 = vld [vmem:[#allocation5 + $0xb60] sm:$0xff]  }
 0x1a4   :  { %9662 = vmatpush3.bf16.msra.mxu1 %v10554_v29  ;;  %v10597_v29 = vld [vmem:[#allocation5 + $0xb20] sm:$0xff]  }
 0x1a5   :  { %9663 = vmatprep.subr.bf16.mxu1 %v10557_v30  ;;  %v10598_v30 = vld [vmem:[#allocation5 + $0xbe0] sm:$0xff]  }
 0x1a6   :  { %9642 = vmatpush3.bf16.msra.mxu0 %v10556_v31  ;;  %v10599_v31 = vld [vmem:[#allocation5 + $0xba0] sm:$0xff]  }
 0x1a7   :  { %9643 = vmatprep.subr.bf16.mxu0 %v10559_v32  ;;  %v10600_v32 = vld [vmem:[#allocation5 + $0xb68] sm:$0xff]  }
 0x1a8   :  { %9664 = vmatpush3.bf16.msra.mxu1 %v10558_v33 }
 0x1a9   :  { %9665 = vmatprep.subr.bf16.mxu1 %v10561_v35  ;;  %v10601_v35 = vld [vmem:[#allocation5 + $0xb28] sm:$0xff]  }
 0x1aa   :  { %9644 = vmatpush3.bf16.msra.mxu0 %v10560_v36 }
 0x1ab   :  { %9645 = vmatprep.subr.bf16.mxu0 %v10563_v37  ;;  %v10602_v37 = vld [vmem:[#allocation5 + $0xbe8] sm:$0xff]  }
 0x1ac   :  { %9666 = vmatpush3.bf16.msra.mxu1 %v10562_v38 }
 0x1ad   :  { %9667 = vmatprep.subr.bf16.mxu1 %v10565_v39 }
 0x1ae   :  { %9646 = vmatpush3.bf16.msra.mxu0 %v10564_v40 }
 0x1af   :  { %9647 = vmatprep.subr.bf16.mxu0 %v10567_v41  ;;  %v10603_v41 = vld [vmem:[#allocation5 + $0xba8] sm:$0xff]  }
 0x1b0   :  { %v9345_v43 = vpop.f32.mrb[12].mxu0  ;;  %9668 = vmatpush3.bf16.msra.mxu1 %v10566_v42  ;;  %v10604_v42 = vld [vmem:[#allocation5 + $0xb70] sm:$0xff]  }
 0x1b1   :  { %v9346_v45 = vpop.f32.mrb[13].mxu0  ;;  %9669 = vmatprep.subr.bf16.mxu1 %v10569_v44 }
 0x1b2   :  { %v9347_v47 = vadd.f32 %v9346_v45, %v9345_v43  ;;  %v9348_v48 = vpop.f32.mrb[14].mxu0  ;;  %v9367_v49 = vpop.f32.mrb[12].mxu1  ;;  %9648 = vmatpush3.bf16.msra.mxu0 %v10568_v46 }
 0x1b3   :  { %v9349_v52 = vpop.f32.mrb[15].mxu0  ;;  %v9368_v53 = vpop.f32.mrb[13].mxu1  ;;  %9649 = vmatprep.subr.bf16.mxu0 %v10571_v51 }
 0x1b4   :  { %v6726_v55 = vadd.f32 %v9347_v47, %v11249_v4  ;;  %v9369_v56 = vadd.f32 %v9368_v53, %v9367_v49  ;;  %v9370_v58 = vpop.f32.mrb[14].mxu1  ;;  %9670 = vmatpush3.bf16.msra.mxu1 %v10570_v50  ;;  %v304_v4 = vcombine.high %v98_v1, %v98_v1  ;;  %v10605_v47 = vld [vmem:[#allocation5 + $0xb30] sm:$0xff]   ;;  %v10608_v53 = vld [vmem:[#allocation5 + $0xb78] sm:$0xff]   ;;  %v10615_v1 = vld [vmem:[#allocation5 + $0xcc0] sm:$0xff]  }
 0x1b5   :  { %v9371_v60 = vpop.f32.mrb[15].mxu1  ;;  %9671 = vmatprep.subr.bf16.mxu1 %v10573_v57  ;;  %v10606_v49 = vld [vmem:[#allocation5 + $0xbf0] sm:$0xff]   ;;  %v10611_v58 = vld [vmem:[#allocation5 + $0xbb8] sm:$0xff]  }
 0x1b6   :  { %v11254_v61 = vadd.f32 %v9369_v56, %v6726_v55  ;;  %9650 = vmatpush3.bf16.msra.mxu0 %v10572_v54  ;;  %v318_v7 = vrot.slane %v304_v4, %v11223_v34  ;;  %v10607_v52 = vld [vmem:[#allocation5 + $0xbb0] sm:$0xff]   ;;  %v10609_v54 = vld [vmem:[#allocation5 + $0xb38] sm:$0xff]   ;;  %v99_v56 = vld [vmem:[#allocation2 + $0x58] sm:$0xff] }
 0x1b7   :  { %9651 = vmatprep.subr.bf16.mxu0 %v10575_v62  ;;  %v10610_v55 = vld [vmem:[#allocation5 + $0xbf8] sm:$0xff]   ;;  %v328_v57 = vrot.slane %v99_v56, %v11223_v34  ;;  %v10612_v60 = vld [vmem:[#allocation5 + $0xc40] sm:$0xff]  }
 0x1b8   :  { %9672 = vmatpush3.bf16.msra.mxu1 %v10574_v59  ;;  %v320_v12 = vcombine.high %v318_v7, %v318_v7  ;;  %v648_v14 = vpack.c.bf16 %v318_v7, %v318_v7  ;;  %v321_v59 = vcombine.high %v99_v56, %v99_v56  ;;  %v10616_v4 = vld [vmem:[#allocation5 + $0xc80] sm:$0xff]  }
 0x1b9   :  { %9673 = vmatprep.subr.bf16.mxu1 %v10577_v0  ;;  %v650_v0 = vpack.c.bf16 %v328_v57, %v328_v57  ;;  %v10648_v56 = vld [vmem:[#allocation5 + $0xdc0] sm:$0xff]  }
 0x1ba   :  { %9652 = vmatpush3.bf16.msra.mxu0 %v10576_v63  ;;  %v649_v16 = vpack.c.bf16 %v320_v12, %v320_v12  ;;  %v335_v62 = vrot.slane %v321_v59, %v11223_v34  ;;  %v10614_v63 = vld [vmem:[#allocation5 + $0xc00] sm:$0xff]   ;;  %v10622_v12 = vld [vmem:[#allocation5 + $0xc10] sm:$0xff]  }
 0x1bb   :  { %9681 = vmatprep.subr.bf16.mxu0 %v10579_v5  ;;  %v10649_v59 = vld [vmem:[#allocation5 + $0xd80] sm:$0xff]  }
 0x1bc   :  { %9674 = vmatpush3.bf16.msra.mxu1 %v10578_v3  ;;  %7323 = vmatprep.mubr.bf16.mxu1 %v649_v16  ;;  %v337_v3 = vcombine.high %v335_v62, %v335_v62  ;;  %v652_v5 = vpack.c.bf16 %v335_v62, %v335_v62  ;;  %v10626_v16 = vld [vmem:[#allocation5 + $0xc18] sm:$0xff]  }
 0x1bd   :  { %9703 = vmatprep.subr.bf16.mxu1 %v10582_v10  ;;  %7284 = vmatmul.mubr.bf16.vlgmr.msra.gmra.mrb[40].mxu0 %v646_v9  ;;  %v10619_v9 = vld [vmem:[#allocation5 + $0xcc8] sm:$0xff]  }
 0x1be   :  { %9682 = vmatpush3.bf16.msra.mxu0 %v10581_v8  ;;  %v653_v7 = vpack.c.bf16 %v337_v3, %v337_v3  ;;  %v10618_v8 = vld [vmem:[#allocation5 + $0xc08] sm:$0xff]   ;;  %v10655_v3 = vld [vmem:[#allocation5 + $0xd10] sm:$0xff]  }
 0x1bf   :  { %7324 = vmatmul.mubr.bf16.vlgmr.msra.gmra.mrb[40].mxu1 %v648_v14  ;;  %9683 = vmatprep.subr.bf16.mxu0 %v10584_v15  ;;  %v10620_v10 = vld [vmem:[#allocation5 + $0xc88] sm:$0xff]   ;;  %v10624_v14 = vld [vmem:[#allocation5 + $0xc90] sm:$0xff]   ;;  %v10625_v15 = vld [vmem:[#allocation5 + $0xc58] sm:$0xff]  }
 0x1c0   :  { %9704 = vmatpush3.bf16.msra.mxu1 %v10583_v13  ;;  %7403 = vmatprep.mubr.bf16.mxu1 %v653_v7  ;;  %v10623_v13 = vld [vmem:[#allocation5 + $0xcd0] sm:$0xff]   ;;  %v10659_v7 = vld [vmem:[#allocation5 + $0xd18] sm:$0xff]  }
 0x1c1   :  { %9705 = vmatprep.subr.bf16.mxu1 %v10586_v18  ;;  %v10628_v18 = vld [vmem:[#allocation5 + $0xc98] sm:$0xff]  }
 0x1c2   :  { %9684 = vmatpush3.bf16.msra.mxu0 %v10585_v17  ;;  %v10627_v17 = vld [vmem:[#allocation5 + $0xcd8] sm:$0xff]  }
 0x1c3   :  { %9685 = vmatprep.subr.bf16.mxu0 %v10588_v20  ;;  %v10630_v20 = vld [vmem:[#allocation5 + $0xc20] sm:$0xff]  }
 0x1c4   :  { %9706 = vmatpush3.bf16.msra.mxu1 %v10587_v19  ;;  %v10629_v19 = vld [vmem:[#allocation5 + $0xc60] sm:$0xff]  }
 0x1c5   :  { %9707 = vmatprep.subr.bf16.mxu1 %v10590_v22  ;;  %v10632_v22 = vld [vmem:[#allocation5 + $0xca0] sm:$0xff]  }
 0x1c6   :  { %9686 = vmatpush3.bf16.msra.mxu0 %v10589_v21  ;;  %v10631_v21 = vld [vmem:[#allocation5 + $0xce0] sm:$0xff]  }
 0x1c7   :  { %9687 = vmatprep.subr.bf16.mxu0 %v10592_v24 }
 0x1c8   :  { %9708 = vmatpush3.bf16.msra.mxu1 %v10591_v23  ;;  %v10633_v23 = vld [vmem:[#allocation5 + $0xc68] sm:$0xff]  }
 0x1c9   :  { %9709 = vmatprep.subr.bf16.mxu1 %v10594_v26 }
 0x1ca   :  { %9688 = vmatpush3.bf16.msra.mxu0 %v10593_v25  ;;  %v10634_v25 = vld [vmem:[#allocation5 + $0xc28] sm:$0xff]  }
 0x1cb   :  { %9689 = vmatprep.subr.bf16.mxu0 %v10596_v28 }
 0x1cc   :  { %9710 = vmatpush3.bf16.msra.mxu1 %v10595_v27  ;;  %v10635_v27 = vld [vmem:[#allocation5 + $0xce8] sm:$0xff]  }
 0x1cd   :  { %9711 = vmatprep.subr.bf16.mxu1 %v10598_v30 }
 0x1ce   :  { %9690 = vmatpush3.bf16.msra.mxu0 %v10597_v29 }
 0x1cf   :  { %9691 = vmatprep.subr.bf16.mxu0 %v10600_v32 }
 0x1d0   :  { %v9389_v33 = vpop.f32.mrb[16].mxu0  ;;  %9712 = vmatpush3.bf16.msra.mxu1 %v10599_v31 }
 0x1d1   :  { %v9390_v36 = vpop.f32.mrb[17].mxu0  ;;  %9713 = vmatprep.subr.bf16.mxu1 %v10602_v37 }
 0x1d2   :  { %v9391_v38 = vadd.f32 %v9390_v36, %v9389_v33  ;;  %v9392_v39 = vpop.f32.mrb[18].mxu0  ;;  %v9411_v40 = vpop.f32.mrb[16].mxu1  ;;  %9692 = vmatpush3.bf16.msra.mxu0 %v10601_v35  ;;  %v10636_v33 = vld [vmem:[#allocation5 + $0xca8] sm:$0xff]   ;;  %v10637_v35 = vld [vmem:[#allocation5 + $0xc70] sm:$0xff]  }
 0x1d3   :  { %v9393_v43 = vpop.f32.mrb[19].mxu0  ;;  %v9412_v44 = vpop.f32.mrb[17].mxu1  ;;  %9693 = vmatprep.subr.bf16.mxu0 %v10604_v42 }
 0x1d4   :  { %v6806_v45 = vadd.f32 %v9391_v38, %v11254_v61  ;;  %v9413_v46 = vadd.f32 %v9412_v44, %v9411_v40  ;;  %v9414_v48 = vpop.f32.mrb[18].mxu1  ;;  %9714 = vmatpush3.bf16.msra.mxu1 %v10603_v41  ;;  %v336_v61 = vcombine.high %v328_v57, %v328_v57  ;;  %v10638_v38 = vld [vmem:[#allocation5 + $0xc30] sm:$0xff]   ;;  %v10641_v44 = vld [vmem:[#allocation5 + $0xc78] sm:$0xff]  }
 0x1d5   :  { %v9415_v50 = vpop.f32.mrb[19].mxu1  ;;  %9715 = vmatprep.subr.bf16.mxu1 %v10606_v49  ;;  %v10639_v41 = vld [vmem:[#allocation5 + $0xcf0] sm:$0xff]   ;;  %v10644_v49 = vld [vmem:[#allocation5 + $0xcb8] sm:$0xff]  }
 0x1d6   :  { %v11259_v51 = vadd.f32 %v9413_v46, %v6806_v45  ;;  %9694 = vmatpush3.bf16.msra.mxu0 %v10605_v47  ;;  %v651_v2 = vpack.c.bf16 %v336_v61, %v336_v61  ;;  %v10640_v43 = vld [vmem:[#allocation5 + $0xcb0] sm:$0xff]   ;;  %v10642_v45 = vld [vmem:[#allocation5 + $0xc38] sm:$0xff]   ;;  %v10650_v61 = vld [vmem:[#allocation5 + $0xd48] sm:$0xff]  }
 0x1d7   :  { %9695 = vmatprep.subr.bf16.mxu0 %v10608_v53  ;;  %v10643_v46 = vld [vmem:[#allocation5 + $0xcf8] sm:$0xff]   ;;  %v100_v47 = vld [vmem:[#allocation2 + $0x60] sm:$0xff] }
 0x1d8   :  { %9716 = vmatpush3.bf16.msra.mxu1 %v10607_v52  ;;  %7363 = vmatprep.mubr.bf16.mxu0 %v651_v2  ;;  %v345_v48 = vrot.slane %v100_v47, %v11223_v34  ;;  %v338_v50 = vcombine.high %v100_v47, %v100_v47  ;;  %v10654_v2 = vld [vmem:[#allocation5 + $0xd50] sm:$0xff]   ;;  %v10681_v47 = vld [vmem:[#allocation5 + $0xec0] sm:$0xff]  }
 0x1d9   :  { %9717 = vmatprep.subr.bf16.mxu1 %v10610_v55 }
 0x1da   :  { %9696 = vmatpush3.bf16.msra.mxu0 %v10609_v54  ;;  %v353_v52 = vcombine.high %v345_v48, %v345_v48  ;;  %v352_v53 = vrot.slane %v338_v50, %v11223_v34  ;;  %v10647_v54 = vld [vmem:[#allocation5 + $0xd00] sm:$0xff]   ;;  %v654_v55 = vpack.c.bf16 %v345_v48, %v345_v48 }
 0x1db   :  { %9725 = vmatprep.subr.bf16.mxu0 %v10612_v60  ;;  %v10682_v50 = vld [vmem:[#allocation5 + $0xe80] sm:$0xff]  }
 0x1dc   :  { %9718 = vmatpush3.bf16.msra.mxu1 %v10611_v58  ;;  %v655_v57 = vpack.c.bf16 %v353_v52, %v353_v52  ;;  %v354_v58 = vcombine.high %v352_v53, %v352_v53  ;;  %v656_v60 = vpack.c.bf16 %v352_v53, %v352_v53  ;;  %v10683_v52 = vld [vmem:[#allocation5 + $0xe48] sm:$0xff]  }
 0x1dd   :  { %7364 = vmatmul.mubr.bf16.vlgmr.msra.gmra.mrb[44].mxu0 %v650_v0  ;;  %9747 = vmatprep.subr.bf16.mxu1 %v10615_v1  ;;  %v10652_v0 = vld [vmem:[#allocation5 + $0xdc8] sm:$0xff]  }
 0x1de   :  { %9726 = vmatpush3.bf16.msra.mxu0 %v10614_v63  ;;  %7443 = vmatprep.mubr.bf16.mxu0 %v655_v57  ;;  %v657_v62 = vpack.c.bf16 %v354_v58, %v354_v58  ;;  %v10651_v63 = vld [vmem:[#allocation5 + $0xd08] sm:$0xff]   ;;  %v10687_v57 = vld [vmem:[#allocation5 + $0xe50] sm:$0xff]  }
 0x1df   :  { %7404 = vmatmul.mubr.bf16.vlgmr.msra.gmra.mrb[44].mxu1 %v652_v5  ;;  %9727 = vmatprep.subr.bf16.mxu0 %v10617_v6  ;;  %v10653_v1 = vld [vmem:[#allocation5 + $0xd88] sm:$0xff]   ;;  %v10657_v5 = vld [vmem:[#allocation5 + $0xd90] sm:$0xff]   ;;  %v10658_v6 = vld [vmem:[#allocation5 + $0xd58] sm:$0xff]  }
 0x1e0   :  { %9748 = vmatpush3.bf16.msra.mxu1 %v10616_v4  ;;  %7483 = vmatprep.mubr.bf16.mxu1 %v657_v62  ;;  %v10656_v4 = vld [vmem:[#allocation5 + $0xdd0] sm:$0xff]   ;;  %v10692_v62 = vld [vmem:[#allocation5 + $0xe18] sm:$0xff]  }
 0x1e1   :  { %9749 = vmatprep.subr.bf16.mxu1 %v10619_v9  ;;  %v10661_v9 = vld [vmem:[#allocation5 + $0xd98] sm:$0xff]   ;;  %v10688_v58 = vld [vmem:[#allocation5 + $0xe10] sm:$0xff]  }
 0x1e2   :  { %9728 = vmatpush3.bf16.msra.mxu0 %v10618_v8  ;;  %v10660_v8 = vld [vmem:[#allocation5 + $0xdd8] sm:$0xff]  }
 0x1e3   :  { %9729 = vmatprep.subr.bf16.mxu0 %v10621_v11  ;;  %v10663_v11 = vld [vmem:[#allocation5 + $0xd20] sm:$0xff]  }
 0x1e4   :  { %9750 = vmatpush3.bf16.msra.mxu1 %v10620_v10  ;;  %v10662_v10 = vld [vmem:[#allocation5 + $0xd60] sm:$0xff]  }
 0x1e5   :  { %9751 = vmatprep.subr.bf16.mxu1 %v10623_v13  ;;  %v10665_v13 = vld [vmem:[#allocation5 + $0xda0] sm:$0xff]  }
 0x1e6   :  { %9730 = vmatpush3.bf16.msra.mxu0 %v10622_v12  ;;  %v10664_v12 = vld [vmem:[#allocation5 + $0xde0] sm:$0xff]  }
 0x1e7   :  { %9731 = vmatprep.subr.bf16.mxu0 %v10625_v15 }
 0x1e8   :  { %9752 = vmatpush3.bf16.msra.mxu1 %v10624_v14  ;;  %v10666_v14 = vld [vmem:[#allocation5 + $0xd68] sm:$0xff]  }
 0x1e9   :  { %9753 = vmatprep.subr.bf16.mxu1 %v10627_v17 }
 0x1ea   :  { %9732 = vmatpush3.bf16.msra.mxu0 %v10626_v16  ;;  %v10667_v16 = vld [vmem:[#allocation5 + $0xd28] sm:$0xff]  }
 0x1eb   :  { %9733 = vmatprep.subr.bf16.mxu0 %v10629_v19 }
 0x1ec   :  { %9754 = vmatpush3.bf16.msra.mxu1 %v10628_v18  ;;  %v10668_v18 = vld [vmem:[#allocation5 + $0xde8] sm:$0xff]  }
 0x1ed   :  { %9755 = vmatprep.subr.bf16.mxu1 %v10631_v21 }
 0x1ee   :  { %9734 = vmatpush3.bf16.msra.mxu0 %v10630_v20 }
 0x1ef   :  { %9735 = vmatprep.subr.bf16.mxu0 %v10633_v23  ;;  %v10670_v23 = vld [vmem:[#allocation5 + $0xd70] sm:$0xff]  }
 0x1f0   :  { %v9433_v24 = vpop.f32.mrb[20].mxu0  ;;  %9756 = vmatpush3.bf16.msra.mxu1 %v10632_v22  ;;  %v10669_v22 = vld [vmem:[#allocation5 + $0xda8] sm:$0xff]  }
 0x1f1   :  { %v9434_v26 = vpop.f32.mrb[21].mxu0  ;;  %9757 = vmatprep.subr.bf16.mxu1 %v10635_v27 }
 0x1f2   :  { %v9435_v28 = vadd.f32 %v9434_v26, %v9433_v24  ;;  %v9436_v29 = vpop.f32.mrb[22].mxu0  ;;  %v9455_v30 = vpop.f32.mrb[20].mxu1  ;;  %9736 = vmatpush3.bf16.msra.mxu0 %v10634_v25 }
 0x1f3   :  { %v9437_v31 = vpop.f32.mrb[23].mxu0  ;;  %v9456_v32 = vpop.f32.mrb[21].mxu1  ;;  %9737 = vmatprep.subr.bf16.mxu0 %v10637_v35  ;;  %v10674_v35 = vld [vmem:[#allocation5 + $0xd78] sm:$0xff]  }
 0x1f4   :  { %v6886_v36 = vadd.f32 %v9435_v28, %v11259_v51  ;;  %v9457_v37 = vadd.f32 %v9456_v32, %v9455_v30  ;;  %v9458_v39 = vpop.f32.mrb[22].mxu1  ;;  %9758 = vmatpush3.bf16.msra.mxu1 %v10636_v33  ;;  %v10645_v51 = vld [vmem:[#allocation5 + $0xd40] sm:$0xff]   ;;  %v10671_v28 = vld [vmem:[#allocation5 + $0xd30] sm:$0xff]  }
 0x1f5   :  { %v9459_v42 = vpop.f32.mrb[23].mxu1  ;;  %9759 = vmatprep.subr.bf16.mxu1 %v10639_v41  ;;  %v10672_v30 = vld [vmem:[#allocation5 + $0xdf0] sm:$0xff]  }
 0x1f6   :  { %v11264_v40 = vadd.f32 %v9457_v37, %v6886_v36  ;;  %9738 = vmatpush3.bf16.msra.mxu0 %v10638_v38  ;;  %v10673_v33 = vld [vmem:[#allocation5 + $0xdb0] sm:$0xff]   ;;  %v10675_v36 = vld [vmem:[#allocation5 + $0xd38] sm:$0xff]   ;;  %v10678_v42 = vld [vmem:[#allocation5 + $0xe40] sm:$0xff]  }
 0x1f7   :  { %9739 = vmatprep.subr.bf16.mxu0 %v10641_v44  ;;  %v10676_v37 = vld [vmem:[#allocation5 + $0xdf8] sm:$0xff]  }
 0x1f8   :  { %9760 = vmatpush3.bf16.msra.mxu1 %v10640_v43  ;;  %v101_v38 = vld [vmem:[#allocation2 + $0x68] sm:$0xff] }
 0x1f9   :  { %9761 = vmatprep.subr.bf16.mxu1 %v10643_v46  ;;  %v362_v39 = vrot.slane %v101_v38, %v11223_v34  ;;  %v355_v41 = vcombine.high %v101_v38, %v101_v38  ;;  %v10714_v38 = vld [vmem:[#allocation5 + $0xfc0] sm:$0xff]  }
 0x1fa   :  { %9740 = vmatpush3.bf16.msra.mxu0 %v10642_v45  ;;  %v10680_v45 = vld [vmem:[#allocation5 + $0xe00] sm:$0xff]  }
 0x1fb   :  { %9769 = vmatprep.subr.bf16.mxu0 %v10645_v51  ;;  %v370_v43 = vcombine.high %v362_v39, %v362_v39  ;;  %v369_v44 = vrot.slane %v355_v41, %v11223_v34  ;;  %v658_v46 = vpack.c.bf16 %v362_v39, %v362_v39  ;;  %v10715_v41 = vld [vmem:[#allocation5 + $0xf80] sm:$0xff]  }
 0x1fc   :  { %9762 = vmatpush3.bf16.msra.mxu1 %v10644_v49 }
 0x1fd   :  { %9791 = vmatprep.subr.bf16.mxu1 %v10648_v56  ;;  %7444 = vmatmul.mubr.bf16.vlgmr.msra.gmra.mrb[48].mxu0 %v654_v55  ;;  %v659_v48 = vpack.c.bf16 %v370_v43, %v370_v43  ;;  %v371_v49 = vcombine.high %v369_v44, %v369_v44  ;;  %v660_v51 = vpack.c.bf16 %v369_v44, %v369_v44  ;;  %v10685_v55 = vld [vmem:[#allocation5 + $0xec8] sm:$0xff]  }
 0x1fe   :  { %9770 = vmatpush3.bf16.msra.mxu0 %v10647_v54  ;;  %v10684_v54 = vld [vmem:[#allocation5 + $0xe08] sm:$0xff]  }
 0x1ff   :  { %7484 = vmatmul.mubr.bf16.vlgmr.msra.gmra.mrb[48].mxu1 %v656_v60  ;;  %9771 = vmatprep.subr.bf16.mxu0 %v10650_v61  ;;  %v661_v53 = vpack.c.bf16 %v371_v49, %v371_v49  ;;  %v10686_v56 = vld [vmem:[#allocation5 + $0xe88] sm:$0xff]   ;;  %v10690_v60 = vld [vmem:[#allocation5 + $0xe90] sm:$0xff]   ;;  %v10691_v61 = vld [vmem:[#allocation5 + $0xe58] sm:$0xff]  }
 0x200   :  { %9792 = vmatpush3.bf16.msra.mxu1 %v10649_v59  ;;  %7523 = vmatprep.mubr.bf16.mxu0 %v659_v48  ;;  %v10689_v59 = vld [vmem:[#allocation5 + $0xed0] sm:$0xff]   ;;  %v10716_v43 = vld [vmem:[#allocation5 + $0xf48] sm:$0xff]  }
 0x201   :  { %9793 = vmatprep.subr.bf16.mxu1 %v10652_v0  ;;  %7563 = vmatprep.mubr.bf16.mxu1 %v661_v53  ;;  %v10694_v0 = vld [vmem:[#allocation5 + $0xe98] sm:$0xff]   ;;  %v10720_v48 = vld [vmem:[#allocation5 + $0xf50] sm:$0xff]  }
 0x202   :  { %9772 = vmatpush3.bf16.msra.mxu0 %v10651_v63  ;;  %v10693_v63 = vld [vmem:[#allocation5 + $0xed8] sm:$0xff]   ;;  %v10721_v49 = vld [vmem:[#allocation5 + $0xf10] sm:$0xff]  }
 0x203   :  { %9773 = vmatprep.subr.bf16.mxu0 %v10654_v2  ;;  %v10696_v2 = vld [vmem:[#allocation5 + $0xe20] sm:$0xff]   ;;  %v10725_v53 = vld [vmem:[#allocation5 + $0xf18] sm:$0xff]  }
 0x204   :  { %9794 = vmatpush3.bf16.msra.mxu1 %v10653_v1  ;;  %v10695_v1 = vld [vmem:[#allocation5 + $0xe60] sm:$0xff]  }
 0x205   :  { %9795 = vmatprep.subr.bf16.mxu1 %v10656_v4  ;;  %v10698_v4 = vld [vmem:[#allocation5 + $0xea0] sm:$0xff]  }
 0x206   :  { %9774 = vmatpush3.bf16.msra.mxu0 %v10655_v3  ;;  %v10697_v3 = vld [vmem:[#allocation5 + $0xee0] sm:$0xff]  }
 0x207   :  { %9775 = vmatprep.subr.bf16.mxu0 %v10658_v6 }
 0x208   :  { %9796 = vmatpush3.bf16.msra.mxu1 %v10657_v5  ;;  %v10699_v5 = vld [vmem:[#allocation5 + $0xe68] sm:$0xff]  }
 0x209   :  { %9797 = vmatprep.subr.bf16.mxu1 %v10660_v8 }
 0x20a   :  { %9776 = vmatpush3.bf16.msra.mxu0 %v10659_v7  ;;  %v10700_v7 = vld [vmem:[#allocation5 + $0xe28] sm:$0xff]  }
 0x20b   :  { %9777 = vmatprep.subr.bf16.mxu0 %v10662_v10 }
 0x20c   :  { %9798 = vmatpush3.bf16.msra.mxu1 %v10661_v9  ;;  %v10701_v9 = vld [vmem:[#allocation5 + $0xee8] sm:$0xff]  }
 0x20d   :  { %9799 = vmatprep.subr.bf16.mxu1 %v10664_v12 }
 0x20e   :  { %9778 = vmatpush3.bf16.msra.mxu0 %v10663_v11 }
 0x20f   :  { %9779 = vmatprep.subr.bf16.mxu0 %v10666_v14  ;;  %v10703_v14 = vld [vmem:[#allocation5 + $0xe70] sm:$0xff]  }
 0x210   :  { %v9477_v15 = vpop.f32.mrb[24].mxu0  ;;  %9800 = vmatpush3.bf16.msra.mxu1 %v10665_v13  ;;  %v10702_v13 = vld [vmem:[#allocation5 + $0xea8] sm:$0xff]  }
 0x211   :  { %v9478_v17 = vpop.f32.mrb[25].mxu0  ;;  %9801 = vmatprep.subr.bf16.mxu1 %v10668_v18 }
 0x212   :  { %v9479_v19 = vadd.f32 %v9478_v17, %v9477_v15  ;;  %v9480_v20 = vpop.f32.mrb[26].mxu0  ;;  %v9499_v21 = vpop.f32.mrb[24].mxu1  ;;  %9780 = vmatpush3.bf16.msra.mxu0 %v10667_v16 }
 0x213   :  { %v9481_v24 = vpop.f32.mrb[27].mxu0  ;;  %v9500_v25 = vpop.f32.mrb[25].mxu1  ;;  %9781 = vmatprep.subr.bf16.mxu0 %v10670_v23 }
 0x214   :  { %v6966_v26 = vadd.f32 %v9479_v19, %v11264_v40  ;;  %v9501_v27 = vadd.f32 %v9500_v25, %v9499_v21  ;;  %v9502_v29 = vpop.f32.mrb[26].mxu1  ;;  %9802 = vmatpush3.bf16.msra.mxu1 %v10669_v22  ;;  %v10677_v40 = vld [vmem:[#allocation5 + $0xdb8] sm:$0xff]   ;;  %v10704_v19 = vld [vmem:[#allocation5 + $0xe30] sm:$0xff]  }
 0x215   :  { %v9503_v31 = vpop.f32.mrb[27].mxu1  ;;  %9803 = vmatprep.subr.bf16.mxu1 %v10672_v30  ;;  %v10705_v21 = vld [vmem:[#allocation5 + $0xef0] sm:$0xff]   ;;  %v10707_v25 = vld [vmem:[#allocation5 + $0xe78] sm:$0xff]  }
 0x216   :  { %v11269_v32 = vadd.f32 %v9501_v27, %v6966_v26  ;;  %9782 = vmatpush3.bf16.msra.mxu0 %v10671_v28  ;;  %v10706_v24 = vld [vmem:[#allocation5 + $0xeb0] sm:$0xff]   ;;  %v10708_v26 = vld [vmem:[#allocation5 + $0xe38] sm:$0xff]  }
 0x217   :  { %9783 = vmatprep.subr.bf16.mxu0 %v10674_v35  ;;  %v10709_v27 = vld [vmem:[#allocation5 + $0xef8] sm:$0xff]  }
 0x218   :  { %9804 = vmatpush3.bf16.msra.mxu1 %v10673_v33  ;;  %v102_v28 = vld [vmem:[#allocation2 + $0x70] sm:$0xff] }
 0x219   :  { %9805 = vmatprep.subr.bf16.mxu1 %v10676_v37  ;;  %v379_v29 = vrot.slane %v102_v28, %v11223_v34  ;;  %v10710_v30 = vld [vmem:[#allocation5 + $0xeb8] sm:$0xff]   ;;  %v372_v31 = vcombine.high %v102_v28, %v102_v28  ;;  %v10747_v28 = vld [vmem:[#allocation5 + $0x10c0] sm:$0xff]  }
 0x21a   :  { %9784 = vmatpush3.bf16.msra.mxu0 %v10675_v36  ;;  %v10713_v36 = vld [vmem:[#allocation5 + $0xf00] sm:$0xff]  }
 0x21b   :  { %9813 = vmatprep.subr.bf16.mxu0 %v10678_v42  ;;  %v387_v33 = vcombine.high %v379_v29, %v379_v29  ;;  %v386_v35 = vrot.slane %v372_v31, %v11223_v34  ;;  %v662_v37 = vpack.c.bf16 %v379_v29, %v379_v29  ;;  %v10748_v31 = vld [vmem:[#allocation5 + $0x1080] sm:$0xff]  }
 0x21c   :  { %9806 = vmatpush3.bf16.msra.mxu1 %v10677_v40 }
 0x21d   :  { %9835 = vmatprep.subr.bf16.mxu1 %v10681_v47  ;;  %7524 = vmatmul.mubr.bf16.vlgmr.msra.gmra.mrb[52].mxu0 %v658_v46  ;;  %v663_v39 = vpack.c.bf16 %v387_v33, %v387_v33  ;;  %v388_v40 = vcombine.high %v386_v35, %v386_v35  ;;  %v664_v42 = vpack.c.bf16 %v386_v35, %v386_v35  ;;  %v10718_v46 = vld [vmem:[#allocation5 + $0xfc8] sm:$0xff]  }
 0x21e   :  { %9814 = vmatpush3.bf16.msra.mxu0 %v10680_v45  ;;  %v10717_v45 = vld [vmem:[#allocation5 + $0xf08] sm:$0xff]  }
 0x21f   :  { %7564 = vmatmul.mubr.bf16.vlgmr.msra.gmra.mrb[52].mxu1 %v660_v51  ;;  %9815 = vmatprep.subr.bf16.mxu0 %v10683_v52  ;;  %v665_v44 = vpack.c.bf16 %v388_v40, %v388_v40  ;;  %v10719_v47 = vld [vmem:[#allocation5 + $0xf88] sm:$0xff]   ;;  %v10723_v51 = vld [vmem:[#allocation5 + $0xf90] sm:$0xff]   ;;  %v10724_v52 = vld [vmem:[#allocation5 + $0xf58] sm:$0xff]  }
 0x220   :  { %9836 = vmatpush3.bf16.msra.mxu1 %v10682_v50  ;;  %7603 = vmatprep.mubr.bf16.mxu0 %v663_v39  ;;  %v10722_v50 = vld [vmem:[#allocation5 + $0xfd0] sm:$0xff]   ;;  %v10749_v33 = vld [vmem:[#allocation5 + $0x1048] sm:$0xff]  }
 0x221   :  { %9837 = vmatprep.subr.bf16.mxu1 %v10685_v55  ;;  %7643 = vmatprep.mubr.bf16.mxu1 %v665_v44  ;;  %v10727_v55 = vld [vmem:[#allocation5 + $0xf98] sm:$0xff]   ;;  %v10753_v39 = vld [vmem:[#allocation5 + $0x1050] sm:$0xff]  }
 0x222   :  { %9816 = vmatpush3.bf16.msra.mxu0 %v10684_v54  ;;  %v10726_v54 = vld [vmem:[#allocation5 + $0xfd8] sm:$0xff]   ;;  %v10754_v40 = vld [vmem:[#allocation5 + $0x1010] sm:$0xff]  }
 0x223   :  { %9817 = vmatprep.subr.bf16.mxu0 %v10687_v57  ;;  %v10729_v57 = vld [vmem:[#allocation5 + $0xf20] sm:$0xff]   ;;  %v10758_v44 = vld [vmem:[#allocation5 + $0x1018] sm:$0xff]  }
 0x224   :  { %9838 = vmatpush3.bf16.msra.mxu1 %v10686_v56  ;;  %v10728_v56 = vld [vmem:[#allocation5 + $0xf60] sm:$0xff]  }
 0x225   :  { %9839 = vmatprep.subr.bf16.mxu1 %v10689_v59  ;;  %v10731_v59 = vld [vmem:[#allocation5 + $0xfa0] sm:$0xff]  }
 0x226   :  { %9818 = vmatpush3.bf16.msra.mxu0 %v10688_v58  ;;  %v10730_v58 = vld [vmem:[#allocation5 + $0xfe0] sm:$0xff]  }
 0x227   :  { %9819 = vmatprep.subr.bf16.mxu0 %v10691_v61 }
 0x228   :  { %9840 = vmatpush3.bf16.msra.mxu1 %v10690_v60  ;;  %v10732_v60 = vld [vmem:[#allocation5 + $0xf68] sm:$0xff]  }
 0x229   :  { %9841 = vmatprep.subr.bf16.mxu1 %v10693_v63 }
 0x22a   :  { %9820 = vmatpush3.bf16.msra.mxu0 %v10692_v62  ;;  %v10733_v62 = vld [vmem:[#allocation5 + $0xf28] sm:$0xff]  }
 0x22b   :  { %9821 = vmatprep.subr.bf16.mxu0 %v10695_v1 }
 0x22c   :  { %9842 = vmatpush3.bf16.msra.mxu1 %v10694_v0  ;;  %v10734_v0 = vld [vmem:[#allocation5 + $0xfe8] sm:$0xff]  }
 0x22d   :  { %9843 = vmatprep.subr.bf16.mxu1 %v10697_v3 }
 0x22e   :  { %9822 = vmatpush3.bf16.msra.mxu0 %v10696_v2 }
 0x22f   :  { %9823 = vmatprep.subr.bf16.mxu0 %v10699_v5 }
 0x230   :  { %v9521_v6 = vpop.f32.mrb[28].mxu0  ;;  %9844 = vmatpush3.bf16.msra.mxu1 %v10698_v4 }
 0x231   :  { %v9522_v8 = vpop.f32.mrb[29].mxu0  ;;  %9845 = vmatprep.subr.bf16.mxu1 %v10701_v9 }
 0x232   :  { %v9523_v10 = vadd.f32 %v9522_v8, %v9521_v6  ;;  %v9524_v11 = vpop.f32.mrb[30].mxu0  ;;  %v9543_v12 = vpop.f32.mrb[28].mxu1  ;;  %9824 = vmatpush3.bf16.msra.mxu0 %v10700_v7  ;;  %v10735_v6 = vld [vmem:[#allocation5 + $0xfa8] sm:$0xff]   ;;  %v10736_v7 = vld [vmem:[#allocation5 + $0xf70] sm:$0xff]  }
 0x233   :  { %v9525_v15 = vpop.f32.mrb[31].mxu0  ;;  %v9544_v16 = vpop.f32.mrb[29].mxu1  ;;  %9825 = vmatprep.subr.bf16.mxu0 %v10703_v14 }
 0x234   :  { %v7046_v17 = vadd.f32 %v9523_v10, %v11269_v32  ;;  %v9545_v18 = vadd.f32 %v9544_v16, %v9543_v12  ;;  %v9546_v20 = vpop.f32.mrb[30].mxu1  ;;  %9846 = vmatpush3.bf16.msra.mxu1 %v10702_v13  ;;  %v10711_v32 = vld [vmem:[#allocation5 + $0xf40] sm:$0xff]   ;;  %v10737_v10 = vld [vmem:[#allocation5 + $0xf30] sm:$0xff]   ;;  %v10740_v16 = vld [vmem:[#allocation5 + $0xf78] sm:$0xff]  }
 0x235   :  { %v9547_v22 = vpop.f32.mrb[31].mxu1  ;;  %9847 = vmatprep.subr.bf16.mxu1 %v10705_v21  ;;  %v10738_v13 = vld [vmem:[#allocation5 + $0xff0] sm:$0xff]   ;;  %v10743_v21 = vld [vmem:[#allocation5 + $0xfb8] sm:$0xff]  }
 0x236   :  { %v11274_v23 = vadd.f32 %v9545_v18, %v7046_v17  ;;  %9826 = vmatpush3.bf16.msra.mxu0 %v10704_v19  ;;  %v10739_v15 = vld [vmem:[#allocation5 + $0xfb0] sm:$0xff]   ;;  %v10741_v17 = vld [vmem:[#allocation5 + $0xf38] sm:$0xff]   ;;  %v103_v19 = vld [vmem:[#allocation2 + $0x78] sm:$0xff] }
 0x237   :  { %9827 = vmatprep.subr.bf16.mxu0 %v10707_v25  ;;  %v10742_v18 = vld [vmem:[#allocation5 + $0xff8] sm:$0xff]   ;;  %v396_v20 = vrot.slane %v103_v19, %v11223_v34  ;;  %v389_v22 = vcombine.high %v103_v19, %v103_v19  ;;  %v10780_v19 = vld [vmem:[#allocation5 + $0x11c0] sm:$0xff]  }
 0x238   :  { %9848 = vmatpush3.bf16.msra.mxu1 %v10706_v24 }
 0x239   :  { %9849 = vmatprep.subr.bf16.mxu1 %v10709_v27  ;;  %v404_v24 = vcombine.high %v396_v20, %v396_v20  ;;  %v403_v25 = vrot.slane %v389_v22, %v11223_v34  ;;  %v666_v27 = vpack.c.bf16 %v396_v20, %v396_v20  ;;  %v10781_v22 = vld [vmem:[#allocation5 + $0x1180] sm:$0xff]  }
 0x23a   :  { %9828 = vmatpush3.bf16.msra.mxu0 %v10708_v26  ;;  %v10746_v26 = vld [vmem:[#allocation5 + $0x1000] sm:$0xff]  }
 0x23b   :  { %9857 = vmatprep.subr.bf16.mxu0 %v10711_v32  ;;  %v667_v29 = vpack.c.bf16 %v404_v24, %v404_v24  ;;  %v668_v32 = vpack.c.bf16 %v403_v25, %v403_v25  ;;  %v10782_v24 = vld [vmem:[#allocation5 + $0x1148] sm:$0xff]  }
 0x23c   :  { %9850 = vmatpush3.bf16.msra.mxu1 %v10710_v30  ;;  %v405_v30 = vcombine.high %v403_v25, %v403_v25 }
 0x23d   :  { %7604 = vmatmul.mubr.bf16.vlgmr.msra.gmra.mrb[56].mxu0 %v662_v37  ;;  %9879 = vmatprep.subr.bf16.mxu1 %v10714_v38  ;;  %v10751_v37 = vld [vmem:[#allocation5 + $0x10c8] sm:$0xff]  }
 0x23e   :  { %9858 = vmatpush3.bf16.msra.mxu0 %v10713_v36  ;;  %7683 = vmatprep.mubr.bf16.mxu0 %v667_v29  ;;  %v669_v35 = vpack.c.bf16 %v405_v30, %v405_v30  ;;  %v10750_v36 = vld [vmem:[#allocation5 + $0x1008] sm:$0xff]   ;;  %v10786_v29 = vld [vmem:[#allocation5 + $0x1150] sm:$0xff]  }
 0x23f   :  { %7644 = vmatmul.mubr.bf16.vlgmr.msra.gmra.mrb[56].mxu1 %v664_v42  ;;  %9859 = vmatprep.subr.bf16.mxu0 %v10716_v43  ;;  %v10752_v38 = vld [vmem:[#allocation5 + $0x1088] sm:$0xff]   ;;  %v10756_v42 = vld [vmem:[#allocation5 + $0x1090] sm:$0xff]   ;;  %v10757_v43 = vld [vmem:[#allocation5 + $0x1058] sm:$0xff]  }
 0x240   :  { %9880 = vmatpush3.bf16.msra.mxu1 %v10715_v41  ;;  %7723 = vmatprep.mubr.bf16.mxu1 %v669_v35  ;;  %v10755_v41 = vld [vmem:[#allocation5 + $0x10d0] sm:$0xff]   ;;  %v10791_v35 = vld [vmem:[#allocation5 + $0x1118] sm:$0xff]  }
 0x241   :  { %9881 = vmatprep.subr.bf16.mxu1 %v10718_v46  ;;  %v10760_v46 = vld [vmem:[#allocation5 + $0x1098] sm:$0xff]   ;;  %v10787_v30 = vld [vmem:[#allocation5 + $0x1110] sm:$0xff]  }
 0x242   :  { %9860 = vmatpush3.bf16.msra.mxu0 %v10717_v45  ;;  %v10759_v45 = vld [vmem:[#allocation5 + $0x10d8] sm:$0xff]  }
 0x243   :  { %9861 = vmatprep.subr.bf16.mxu0 %v10720_v48  ;;  %v10762_v48 = vld [vmem:[#allocation5 + $0x1020] sm:$0xff]  }
 0x244   :  { %9882 = vmatpush3.bf16.msra.mxu1 %v10719_v47  ;;  %v10761_v47 = vld [vmem:[#allocation5 + $0x1060] sm:$0xff]  }
 0x245   :  { %9883 = vmatprep.subr.bf16.mxu1 %v10722_v50  ;;  %v10764_v50 = vld [vmem:[#allocation5 + $0x10a0] sm:$0xff]  }
 0x246   :  { %9862 = vmatpush3.bf16.msra.mxu0 %v10721_v49  ;;  %v10763_v49 = vld [vmem:[#allocation5 + $0x10e0] sm:$0xff]  }
 0x247   :  { %9863 = vmatprep.subr.bf16.mxu0 %v10724_v52 }
 0x248   :  { %9884 = vmatpush3.bf16.msra.mxu1 %v10723_v51  ;;  %v10765_v51 = vld [vmem:[#allocation5 + $0x1068] sm:$0xff]  }
 0x249   :  { %9885 = vmatprep.subr.bf16.mxu1 %v10726_v54 }
 0x24a   :  { %9864 = vmatpush3.bf16.msra.mxu0 %v10725_v53  ;;  %v10766_v53 = vld [vmem:[#allocation5 + $0x1028] sm:$0xff]  }
 0x24b   :  { %9865 = vmatprep.subr.bf16.mxu0 %v10728_v56 }
 0x24c   :  { %9886 = vmatpush3.bf16.msra.mxu1 %v10727_v55  ;;  %v10767_v55 = vld [vmem:[#allocation5 + $0x10e8] sm:$0xff]  }
 0x24d   :  { %9887 = vmatprep.subr.bf16.mxu1 %v10730_v58 }
 0x24e   :  { %9866 = vmatpush3.bf16.msra.mxu0 %v10729_v57 }
 0x24f   :  { %9867 = vmatprep.subr.bf16.mxu0 %v10732_v60  ;;  %v10769_v60 = vld [vmem:[#allocation5 + $0x1070] sm:$0xff]  }
 0x250   :  { %v9565_v61 = vpop.f32.mrb[32].mxu0  ;;  %9888 = vmatpush3.bf16.msra.mxu1 %v10731_v59  ;;  %v10768_v59 = vld [vmem:[#allocation5 + $0x10a8] sm:$0xff]  }
 0x251   :  { %v9566_v63 = vpop.f32.mrb[33].mxu0  ;;  %9889 = vmatprep.subr.bf16.mxu1 %v10734_v0 }
 0x252   :  { %v9567_v1 = vadd.f32 %v9566_v63, %v9565_v61  ;;  %v9568_v2 = vpop.f32.mrb[34].mxu0  ;;  %v9587_v3 = vpop.f32.mrb[32].mxu1  ;;  %9868 = vmatpush3.bf16.msra.mxu0 %v10733_v62 }
 0x253   :  { %v9569_v4 = vpop.f32.mrb[35].mxu0  ;;  %v9588_v5 = vpop.f32.mrb[33].mxu1  ;;  %9869 = vmatprep.subr.bf16.mxu0 %v10736_v7  ;;  %v10773_v7 = vld [vmem:[#allocation5 + $0x1078] sm:$0xff]  }
 0x254   :  { %v7126_v8 = vadd.f32 %v9567_v1, %v11274_v23  ;;  %v9589_v9 = vadd.f32 %v9588_v5, %v9587_v3  ;;  %v9590_v11 = vpop.f32.mrb[34].mxu1  ;;  %9890 = vmatpush3.bf16.msra.mxu1 %v10735_v6  ;;  %v10744_v23 = vld [vmem:[#allocation5 + $0x1040] sm:$0xff]   ;;  %v10770_v1 = vld [vmem:[#allocation5 + $0x1030] sm:$0xff]  }
 0x255   :  { %v9591_v14 = vpop.f32.mrb[35].mxu1  ;;  %9891 = vmatprep.subr.bf16.mxu1 %v10738_v13  ;;  %v10771_v3 = vld [vmem:[#allocation5 + $0x10f0] sm:$0xff]  }
 0x256   :  { %v11279_v12 = vadd.f32 %v9589_v9, %v7126_v8  ;;  %9870 = vmatpush3.bf16.msra.mxu0 %v10737_v10  ;;  %v10772_v6 = vld [vmem:[#allocation5 + $0x10b0] sm:$0xff]   ;;  %v10774_v8 = vld [vmem:[#allocation5 + $0x1038] sm:$0xff]   ;;  %v10777_v14 = vld [vmem:[#allocation5 + $0x1140] sm:$0xff]  }
 0x257   :  { %9871 = vmatprep.subr.bf16.mxu0 %v10740_v16  ;;  %v10775_v9 = vld [vmem:[#allocation5 + $0x10f8] sm:$0xff]   ;;  %v104_v10 = vld [vmem:[#allocation2 + $0x80] sm:$0xff] }
 0x258   :  { %9892 = vmatpush3.bf16.msra.mxu1 %v10739_v15  ;;  %v413_v11 = vrot.slane %v104_v10, %v11223_v34  ;;  %v406_v13 = vcombine.high %v104_v10, %v104_v10  ;;  %v10813_v10 = vld [vmem:[#allocation5 + $0x12c0] sm:$0xff]  }
 0x259   :  { %9893 = vmatprep.subr.bf16.mxu1 %v10742_v18 }
 0x25a   :  { %9872 = vmatpush3.bf16.msra.mxu0 %v10741_v17  ;;  %v421_v15 = vcombine.high %v413_v11, %v413_v11  ;;  %v420_v16 = vrot.slane %v406_v13, %v11223_v34  ;;  %v10779_v17 = vld [vmem:[#allocation5 + $0x1100] sm:$0xff]   ;;  %v670_v18 = vpack.c.bf16 %v413_v11, %v413_v11 }
 0x25b   :  { %9901 = vmatprep.subr.bf16.mxu0 %v10744_v23  ;;  %v10814_v13 = vld [vmem:[#allocation5 + $0x1280] sm:$0xff]  }
 0x25c   :  { %9894 = vmatpush3.bf16.msra.mxu1 %v10743_v21  ;;  %v671_v20 = vpack.c.bf16 %v421_v15, %v421_v15  ;;  %v422_v21 = vcombine.high %v420_v16, %v420_v16  ;;  %v672_v23 = vpack.c.bf16 %v420_v16, %v420_v16  ;;  %v10815_v15 = vld [vmem:[#allocation5 + $0x1248] sm:$0xff]  }
 0x25d   :  { %9923 = vmatprep.subr.bf16.mxu1 %v10747_v28  ;;  %7684 = vmatmul.mubr.bf16.vlgmr.msra.gmra.mrb[60].mxu0 %v666_v27  ;;  %v10784_v27 = vld [vmem:[#allocation5 + $0x11c8] sm:$0xff]  }
 0x25e   :  { %9902 = vmatpush3.bf16.msra.mxu0 %v10746_v26  ;;  %7763 = vmatprep.mubr.bf16.mxu0 %v671_v20  ;;  %v673_v25 = vpack.c.bf16 %v422_v21, %v422_v21  ;;  %v10783_v26 = vld [vmem:[#allocation5 + $0x1108] sm:$0xff]   ;;  %v10819_v20 = vld [vmem:[#allocation5 + $0x1250] sm:$0xff]  }
 0x25f   :  { %7724 = vmatmul.mubr.bf16.vlgmr.msra.gmra.mrb[60].mxu1 %v668_v32  ;;  %9903 = vmatprep.subr.bf16.mxu0 %v10749_v33  ;;  %v10785_v28 = vld [vmem:[#allocation5 + $0x1188] sm:$0xff]   ;;  %v10789_v32 = vld [vmem:[#allocation5 + $0x1190] sm:$0xff]   ;;  %v10790_v33 = vld [vmem:[#allocation5 + $0x1158] sm:$0xff]  }
 0x260   :  { %9924 = vmatpush3.bf16.msra.mxu1 %v10748_v31  ;;  %7803 = vmatprep.mubr.bf16.mxu1 %v673_v25  ;;  %v10788_v31 = vld [vmem:[#allocation5 + $0x11d0] sm:$0xff]   ;;  %v10824_v25 = vld [vmem:[#allocation5 + $0x1218] sm:$0xff]  }
 0x261   :  { %9925 = vmatprep.subr.bf16.mxu1 %v10751_v37  ;;  %v10793_v37 = vld [vmem:[#allocation5 + $0x1198] sm:$0xff]   ;;  %v10820_v21 = vld [vmem:[#allocation5 + $0x1210] sm:$0xff]  }
 0x262   :  { %9904 = vmatpush3.bf16.msra.mxu0 %v10750_v36  ;;  %v10792_v36 = vld [vmem:[#allocation5 + $0x11d8] sm:$0xff]  }
 0x263   :  { %9905 = vmatprep.subr.bf16.mxu0 %v10753_v39  ;;  %v10795_v39 = vld [vmem:[#allocation5 + $0x1120] sm:$0xff]  }
 0x264   :  { %9926 = vmatpush3.bf16.msra.mxu1 %v10752_v38  ;;  %v10794_v38 = vld [vmem:[#allocation5 + $0x1160] sm:$0xff]  }
 0x265   :  { %9927 = vmatprep.subr.bf16.mxu1 %v10755_v41  ;;  %v10797_v41 = vld [vmem:[#allocation5 + $0x11a0] sm:$0xff]  }
 0x266   :  { %9906 = vmatpush3.bf16.msra.mxu0 %v10754_v40  ;;  %v10796_v40 = vld [vmem:[#allocation5 + $0x11e0] sm:$0xff]  }
 0x267   :  { %9907 = vmatprep.subr.bf16.mxu0 %v10757_v43 }
 0x268   :  { %9928 = vmatpush3.bf16.msra.mxu1 %v10756_v42  ;;  %v10798_v42 = vld [vmem:[#allocation5 + $0x1168] sm:$0xff]  }
 0x269   :  { %9929 = vmatprep.subr.bf16.mxu1 %v10759_v45 }
 0x26a   :  { %9908 = vmatpush3.bf16.msra.mxu0 %v10758_v44  ;;  %v10799_v44 = vld [vmem:[#allocation5 + $0x1128] sm:$0xff]  }
 0x26b   :  { %9909 = vmatprep.subr.bf16.mxu0 %v10761_v47 }
 0x26c   :  { %9930 = vmatpush3.bf16.msra.mxu1 %v10760_v46  ;;  %v10800_v46 = vld [vmem:[#allocation5 + $0x11e8] sm:$0xff]  }
 0x26d   :  { %9931 = vmatprep.subr.bf16.mxu1 %v10763_v49 }
 0x26e   :  { %9910 = vmatpush3.bf16.msra.mxu0 %v10762_v48 }
 0x26f   :  { %9911 = vmatprep.subr.bf16.mxu0 %v10765_v51  ;;  %v10802_v51 = vld [vmem:[#allocation5 + $0x1170] sm:$0xff]  }
 0x270   :  { %v9609_v52 = vpop.f32.mrb[36].mxu0  ;;  %9932 = vmatpush3.bf16.msra.mxu1 %v10764_v50  ;;  %v10801_v50 = vld [vmem:[#allocation5 + $0x11a8] sm:$0xff]  }
 0x271   :  { %v9610_v54 = vpop.f32.mrb[37].mxu0  ;;  %9933 = vmatprep.subr.bf16.mxu1 %v10767_v55 }
 0x272   :  { %v9611_v56 = vadd.f32 %v9610_v54, %v9609_v52  ;;  %v9612_v57 = vpop.f32.mrb[38].mxu0  ;;  %v9631_v58 = vpop.f32.mrb[36].mxu1  ;;  %9912 = vmatpush3.bf16.msra.mxu0 %v10766_v53 }
 0x273   :  { %v9613_v61 = vpop.f32.mrb[39].mxu0  ;;  %v9632_v62 = vpop.f32.mrb[37].mxu1  ;;  %9913 = vmatprep.subr.bf16.mxu0 %v10769_v60 }
 0x274   :  { %v7206_v63 = vadd.f32 %v9611_v56, %v11279_v12  ;;  %v9633_v0 = vadd.f32 %v9632_v62, %v9631_v58  ;;  %v9634_v2 = vpop.f32.mrb[38].mxu1  ;;  %9934 = vmatpush3.bf16.msra.mxu1 %v10768_v59  ;;  %v10776_v12 = vld [vmem:[#allocation5 + $0x10b8] sm:$0xff]   ;;  %v10803_v56 = vld [vmem:[#allocation5 + $0x1130] sm:$0xff]  }
 0x275   :  { %v9635_v4 = vpop.f32.mrb[39].mxu1  ;;  %9935 = vmatprep.subr.bf16.mxu1 %v10771_v3  ;;  %v10804_v58 = vld [vmem:[#allocation5 + $0x11f0] sm:$0xff]   ;;  %v10806_v62 = vld [vmem:[#allocation5 + $0x1178] sm:$0xff]  }
 0x276   :  { %v11284_v5 = vadd.f32 %v9633_v0, %v7206_v63  ;;  %9914 = vmatpush3.bf16.msra.mxu0 %v10770_v1  ;;  %v10805_v61 = vld [vmem:[#allocation5 + $0x11b0] sm:$0xff]   ;;  %v10807_v63 = vld [vmem:[#allocation5 + $0x1138] sm:$0xff]  }
 0x277   :  { %9915 = vmatprep.subr.bf16.mxu0 %v10773_v7  ;;  %v10808_v0 = vld [vmem:[#allocation5 + $0x11f8] sm:$0xff]  }
 0x278   :  { %9936 = vmatpush3.bf16.msra.mxu1 %v10772_v6  ;;  %v105_v1 = vld [vmem:[#allocation2 + $0x88] sm:$0xff] }
 0x279   :  { %9937 = vmatprep.subr.bf16.mxu1 %v10775_v9  ;;  %v430_v2 = vrot.slane %v105_v1, %v11223_v34  ;;  %v10809_v3 = vld [vmem:[#allocation5 + $0x11b8] sm:$0xff]   ;;  %v423_v4 = vcombine.high %v105_v1, %v105_v1  ;;  %v10846_v1 = vld [vmem:[#allocation5 + $0x13c0] sm:$0xff]  }
 0x27a   :  { %9916 = vmatpush3.bf16.msra.mxu0 %v10774_v8  ;;  %v10812_v8 = vld [vmem:[#allocation5 + $0x1200] sm:$0xff]  }
 0x27b   :  { %9945 = vmatprep.subr.bf16.mxu0 %v10777_v14  ;;  %v438_v6 = vcombine.high %v430_v2, %v430_v2  ;;  %v437_v7 = vrot.slane %v423_v4, %v11223_v34  ;;  %v674_v9 = vpack.c.bf16 %v430_v2, %v430_v2  ;;  %v10847_v4 = vld [vmem:[#allocation5 + $0x1380] sm:$0xff]  }
 0x27c   :  { %9938 = vmatpush3.bf16.msra.mxu1 %v10776_v12 }
 0x27d   :  { %9967 = vmatprep.subr.bf16.mxu1 %v10780_v19  ;;  %7764 = vmatmul.mubr.bf16.vlgmr.msra.gmra.mrb[64].mxu0 %v670_v18  ;;  %v675_v11 = vpack.c.bf16 %v438_v6, %v438_v6  ;;  %v439_v12 = vcombine.high %v437_v7, %v437_v7  ;;  %v676_v14 = vpack.c.bf16 %v437_v7, %v437_v7  ;;  %v10817_v18 = vld [vmem:[#allocation5 + $0x12c8] sm:$0xff]  }
 0x27e   :  { %9946 = vmatpush3.bf16.msra.mxu0 %v10779_v17  ;;  %v10816_v17 = vld [vmem:[#allocation5 + $0x1208] sm:$0xff]  }
 0x27f   :  { %7804 = vmatmul.mubr.bf16.vlgmr.msra.gmra.mrb[64].mxu1 %v672_v23  ;;  %9947 = vmatprep.subr.bf16.mxu0 %v10782_v24  ;;  %v677_v16 = vpack.c.bf16 %v439_v12, %v439_v12  ;;  %v10818_v19 = vld [vmem:[#allocation5 + $0x1288] sm:$0xff]   ;;  %v10822_v23 = vld [vmem:[#allocation5 + $0x1290] sm:$0xff]   ;;  %v10823_v24 = vld [vmem:[#allocation5 + $0x1258] sm:$0xff]  }
 0x280   :  { %9968 = vmatpush3.bf16.msra.mxu1 %v10781_v22  ;;  %7843 = vmatprep.mubr.bf16.mxu0 %v675_v11  ;;  %v10821_v22 = vld [vmem:[#allocation5 + $0x12d0] sm:$0xff]   ;;  %v10848_v6 = vld [vmem:[#allocation5 + $0x1348] sm:$0xff]  }
 0x281   :  { %9969 = vmatprep.subr.bf16.mxu1 %v10784_v27  ;;  %7883 = vmatprep.mubr.bf16.mxu1 %v677_v16  ;;  %v10826_v27 = vld [vmem:[#allocation5 + $0x1298] sm:$0xff]   ;;  %v10852_v11 = vld [vmem:[#allocation5 + $0x1350] sm:$0xff]  }
 0x282   :  { %9948 = vmatpush3.bf16.msra.mxu0 %v10783_v26  ;;  %v10825_v26 = vld [vmem:[#allocation5 + $0x12d8] sm:$0xff]   ;;  %v10853_v12 = vld [vmem:[#allocation5 + $0x1310] sm:$0xff]  }
 0x283   :  { %9949 = vmatprep.subr.bf16.mxu0 %v10786_v29  ;;  %v10828_v29 = vld [vmem:[#allocation5 + $0x1220] sm:$0xff]   ;;  %v10857_v16 = vld [vmem:[#allocation5 + $0x1318] sm:$0xff]  }
 0x284   :  { %9970 = vmatpush3.bf16.msra.mxu1 %v10785_v28  ;;  %v10827_v28 = vld [vmem:[#allocation5 + $0x1260] sm:$0xff]  }
 0x285   :  { %9971 = vmatprep.subr.bf16.mxu1 %v10788_v31  ;;  %v10830_v31 = vld [vmem:[#allocation5 + $0x12a0] sm:$0xff]  }
 0x286   :  { %9950 = vmatpush3.bf16.msra.mxu0 %v10787_v30  ;;  %v10829_v30 = vld [vmem:[#allocation5 + $0x12e0] sm:$0xff]  }
 0x287   :  { %9951 = vmatprep.subr.bf16.mxu0 %v10790_v33 }
 0x288   :  { %9972 = vmatpush3.bf16.msra.mxu1 %v10789_v32  ;;  %v10831_v32 = vld [vmem:[#allocation5 + $0x1268] sm:$0xff]  }
 0x289   :  { %9973 = vmatprep.subr.bf16.mxu1 %v10792_v36 }
 0x28a   :  { %9952 = vmatpush3.bf16.msra.mxu0 %v10791_v35  ;;  %v10832_v35 = vld [vmem:[#allocation5 + $0x1228] sm:$0xff]  }
 0x28b   :  { %9953 = vmatprep.subr.bf16.mxu0 %v10794_v38 }
 0x28c   :  { %9974 = vmatpush3.bf16.msra.mxu1 %v10793_v37  ;;  %v10833_v37 = vld [vmem:[#allocation5 + $0x12e8] sm:$0xff]  }
 0x28d   :  { %9975 = vmatprep.subr.bf16.mxu1 %v10796_v40 }
 0x28e   :  { %9954 = vmatpush3.bf16.msra.mxu0 %v10795_v39 }
 0x28f   :  { %9955 = vmatprep.subr.bf16.mxu0 %v10798_v42 }
 0x290   :  { %v9653_v43 = vpop.f32.mrb[40].mxu0  ;;  %9976 = vmatpush3.bf16.msra.mxu1 %v10797_v41 }
 0x291   :  { %v9654_v45 = vpop.f32.mrb[41].mxu0  ;;  %9977 = vmatprep.subr.bf16.mxu1 %v10800_v46 }
 0x292   :  { %v9655_v47 = vadd.f32 %v9654_v45, %v9653_v43  ;;  %v9656_v48 = vpop.f32.mrb[42].mxu0  ;;  %v9675_v49 = vpop.f32.mrb[40].mxu1  ;;  %9956 = vmatpush3.bf16.msra.mxu0 %v10799_v44  ;;  %v10834_v43 = vld [vmem:[#allocation5 + $0x12a8] sm:$0xff]   ;;  %v10835_v44 = vld [vmem:[#allocation5 + $0x1270] sm:$0xff]  }
 0x293   :  { %v9657_v52 = vpop.f32.mrb[43].mxu0  ;;  %v9676_v53 = vpop.f32.mrb[41].mxu1  ;;  %9957 = vmatprep.subr.bf16.mxu0 %v10802_v51 }
 0x294   :  { %v7286_v54 = vadd.f32 %v9655_v47, %v11284_v5  ;;  %v9677_v55 = vadd.f32 %v9676_v53, %v9675_v49  ;;  %v9678_v57 = vpop.f32.mrb[42].mxu1  ;;  %9978 = vmatpush3.bf16.msra.mxu1 %v10801_v50  ;;  %v10810_v5 = vld [vmem:[#allocation5 + $0x1240] sm:$0xff]   ;;  %v10836_v47 = vld [vmem:[#allocation5 + $0x1230] sm:$0xff]   ;;  %v10839_v53 = vld [vmem:[#allocation5 + $0x1278] sm:$0xff]  }
 0x295   :  { %v9679_v59 = vpop.f32.mrb[43].mxu1  ;;  %9979 = vmatprep.subr.bf16.mxu1 %v10804_v58  ;;  %v10837_v50 = vld [vmem:[#allocation5 + $0x12f0] sm:$0xff]   ;;  %v10842_v58 = vld [vmem:[#allocation5 + $0x12b8] sm:$0xff]  }
 0x296   :  { %v11289_v60 = vadd.f32 %v9677_v55, %v7286_v54  ;;  %9958 = vmatpush3.bf16.msra.mxu0 %v10803_v56  ;;  %v10838_v52 = vld [vmem:[#allocation5 + $0x12b0] sm:$0xff]   ;;  %v10840_v54 = vld [vmem:[#allocation5 + $0x1238] sm:$0xff]  }
 0x297   :  { %9959 = vmatprep.subr.bf16.mxu0 %v10806_v62  ;;  %v10841_v55 = vld [vmem:[#allocation5 + $0x12f8] sm:$0xff]  }
 0x298   :  { %9980 = vmatpush3.bf16.msra.mxu1 %v10805_v61  ;;  %v106_v56 = vld [vmem:[#allocation2 + $0x90] sm:$0xff] }
 0x299   :  { %9981 = vmatprep.subr.bf16.mxu1 %v10808_v0  ;;  %v447_v57 = vrot.slane %v106_v56, %v11223_v34  ;;  %v440_v59 = vcombine.high %v106_v56, %v106_v56  ;;  %v10879_v56 = vld [vmem:[#allocation5 + $0x14c0] sm:$0xff]  }
 0x29a   :  { %9960 = vmatpush3.bf16.msra.mxu0 %v10807_v63  ;;  %v10845_v63 = vld [vmem:[#allocation5 + $0x1300] sm:$0xff]  }
 0x29b   :  { %9989 = vmatprep.subr.bf16.mxu0 %v10810_v5  ;;  %v455_v61 = vcombine.high %v447_v57, %v447_v57  ;;  %v454_v62 = vrot.slane %v440_v59, %v11223_v34  ;;  %v678_v0 = vpack.c.bf16 %v447_v57, %v447_v57  ;;  %v10880_v59 = vld [vmem:[#allocation5 + $0x1480] sm:$0xff]  }
 0x29c   :  { %9982 = vmatpush3.bf16.msra.mxu1 %v10809_v3 }
 0x29d   :  { %7844 = vmatmul.mubr.bf16.vlgmr.msra.gmra.mrb[68].mxu0 %v674_v9  ;;  %10011 = vmatprep.subr.bf16.mxu1 %v10813_v10  ;;  %v679_v2 = vpack.c.bf16 %v455_v61, %v455_v61  ;;  %v456_v3 = vcombine.high %v454_v62, %v454_v62  ;;  %v680_v5 = vpack.c.bf16 %v454_v62, %v454_v62  ;;  %v10850_v9 = vld [vmem:[#allocation5 + $0x13c8] sm:$0xff]  }
 0x29e   :  { %9990 = vmatpush3.bf16.msra.mxu0 %v10812_v8  ;;  %v10849_v8 = vld [vmem:[#allocation5 + $0x1308] sm:$0xff]  }
 0x29f   :  { %7884 = vmatmul.mubr.bf16.vlgmr.msra.gmra.mrb[68].mxu1 %v676_v14  ;;  %9991 = vmatprep.subr.bf16.mxu0 %v10815_v15  ;;  %v681_v7 = vpack.c.bf16 %v456_v3, %v456_v3  ;;  %v10851_v10 = vld [vmem:[#allocation5 + $0x1388] sm:$0xff]   ;;  %v10855_v14 = vld [vmem:[#allocation5 + $0x1390] sm:$0xff]   ;;  %v10856_v15 = vld [vmem:[#allocation5 + $0x1358] sm:$0xff]  }
 0x2a0   :  { %10012 = vmatpush3.bf16.msra.mxu1 %v10814_v13  ;;  %7923 = vmatprep.mubr.bf16.mxu0 %v679_v2  ;;  %v10854_v13 = vld [vmem:[#allocation5 + $0x13d0] sm:$0xff]   ;;  %v10881_v61 = vld [vmem:[#allocation5 + $0x1448] sm:$0xff]  }
 0x2a1   :  { %10013 = vmatprep.subr.bf16.mxu1 %v10817_v18  ;;  %7963 = vmatprep.mubr.bf16.mxu1 %v681_v7  ;;  %v10859_v18 = vld [vmem:[#allocation5 + $0x1398] sm:$0xff]   ;;  %v10885_v2 = vld [vmem:[#allocation5 + $0x1450] sm:$0xff]  }
 0x2a2   :  { %9992 = vmatpush3.bf16.msra.mxu0 %v10816_v17  ;;  %v10858_v17 = vld [vmem:[#allocation5 + $0x13d8] sm:$0xff]   ;;  %v10886_v3 = vld [vmem:[#allocation5 + $0x1410] sm:$0xff]  }
 0x2a3   :  { %9993 = vmatprep.subr.bf16.mxu0 %v10819_v20  ;;  %v10861_v20 = vld [vmem:[#allocation5 + $0x1320] sm:$0xff]   ;;  %v10890_v7 = vld [vmem:[#allocation5 + $0x1418] sm:$0xff]  }
 0x2a4   :  { %10014 = vmatpush3.bf16.msra.mxu1 %v10818_v19  ;;  %v10860_v19 = vld [vmem:[#allocation5 + $0x1360] sm:$0xff]  }
 0x2a5   :  { %10015 = vmatprep.subr.bf16.mxu1 %v10821_v22  ;;  %v10863_v22 = vld [vmem:[#allocation5 + $0x13a0] sm:$0xff]  }
 0x2a6   :  { %9994 = vmatpush3.bf16.msra.mxu0 %v10820_v21  ;;  %v10862_v21 = vld [vmem:[#allocation5 + $0x13e0] sm:$0xff]  }
 0x2a7   :  { %9995 = vmatprep.subr.bf16.mxu0 %v10823_v24 }
 0x2a8   :  { %10016 = vmatpush3.bf16.msra.mxu1 %v10822_v23  ;;  %v10864_v23 = vld [vmem:[#allocation5 + $0x1368] sm:$0xff]  }
 0x2a9   :  { %10017 = vmatprep.subr.bf16.mxu1 %v10825_v26 }
 0x2aa   :  { %9996 = vmatpush3.bf16.msra.mxu0 %v10824_v25  ;;  %v10865_v25 = vld [vmem:[#allocation5 + $0x1328] sm:$0xff]  }
 0x2ab   :  { %9997 = vmatprep.subr.bf16.mxu0 %v10827_v28 }
 0x2ac   :  { %10018 = vmatpush3.bf16.msra.mxu1 %v10826_v27  ;;  %v10866_v27 = vld [vmem:[#allocation5 + $0x13e8] sm:$0xff]  }
 0x2ad   :  { %10019 = vmatprep.subr.bf16.mxu1 %v10829_v30 }
 0x2ae   :  { %9998 = vmatpush3.bf16.msra.mxu0 %v10828_v29 }
 0x2af   :  { %9999 = vmatprep.subr.bf16.mxu0 %v10831_v32  ;;  %v10868_v32 = vld [vmem:[#allocation5 + $0x1370] sm:$0xff]  }
 0x2b0   :  { %v9697_v33 = vpop.f32.mrb[44].mxu0  ;;  %10020 = vmatpush3.bf16.msra.mxu1 %v10830_v31  ;;  %v10867_v31 = vld [vmem:[#allocation5 + $0x13a8] sm:$0xff]  }
 0x2b1   :  { %v9698_v36 = vpop.f32.mrb[45].mxu0  ;;  %10021 = vmatprep.subr.bf16.mxu1 %v10833_v37 }
 0x2b2   :  { %v9699_v38 = vadd.f32 %v9698_v36, %v9697_v33  ;;  %v9700_v39 = vpop.f32.mrb[46].mxu0  ;;  %v9719_v40 = vpop.f32.mrb[44].mxu1  ;;  %10000 = vmatpush3.bf16.msra.mxu0 %v10832_v35 }
 0x2b3   :  { %v9701_v41 = vpop.f32.mrb[47].mxu0  ;;  %v9720_v42 = vpop.f32.mrb[45].mxu1  ;;  %10001 = vmatprep.subr.bf16.mxu0 %v10835_v44  ;;  %v10872_v44 = vld [vmem:[#allocation5 + $0x1378] sm:$0xff]  }
 0x2b4   :  { %v7366_v45 = vadd.f32 %v9699_v38, %v11289_v60  ;;  %v9721_v46 = vadd.f32 %v9720_v42, %v9719_v40  ;;  %v9722_v48 = vpop.f32.mrb[46].mxu1  ;;  %10022 = vmatpush3.bf16.msra.mxu1 %v10834_v43  ;;  %v10843_v60 = vld [vmem:[#allocation5 + $0x1340] sm:$0xff]   ;;  %v10869_v38 = vld [vmem:[#allocation5 + $0x1330] sm:$0xff]  }
 0x2b5   :  { %v9723_v51 = vpop.f32.mrb[47].mxu1  ;;  %10023 = vmatprep.subr.bf16.mxu1 %v10837_v50  ;;  %v10870_v40 = vld [vmem:[#allocation5 + $0x13f0] sm:$0xff]  }
 0x2b6   :  { %v11294_v49 = vadd.f32 %v9721_v46, %v7366_v45  ;;  %10002 = vmatpush3.bf16.msra.mxu0 %v10836_v47  ;;  %v10871_v43 = vld [vmem:[#allocation5 + $0x13b0] sm:$0xff]   ;;  %v10873_v45 = vld [vmem:[#allocation5 + $0x1338] sm:$0xff]   ;;  %v107_v47 = vld [vmem:[#allocation2 + $0x98] sm:$0xff] }
 0x2b7   :  { %10003 = vmatprep.subr.bf16.mxu0 %v10839_v53  ;;  %v10874_v46 = vld [vmem:[#allocation5 + $0x13f8] sm:$0xff]   ;;  %v464_v48 = vrot.slane %v107_v47, %v11223_v34  ;;  %v457_v50 = vcombine.high %v107_v47, %v107_v47  ;;  %v10876_v51 = vld [vmem:[#allocation5 + $0x1440] sm:$0xff]  }
 0x2b8   :  { %10024 = vmatpush3.bf16.msra.mxu1 %v10838_v52  ;;  %v10912_v47 = vld [vmem:[#allocation5 + $0x15c0] sm:$0xff]  }
 0x2b9   :  { %10025 = vmatprep.subr.bf16.mxu1 %v10841_v55  ;;  %v472_v52 = vcombine.high %v464_v48, %v464_v48  ;;  %v471_v53 = vrot.slane %v457_v50, %v11223_v34  ;;  %v682_v55 = vpack.c.bf16 %v464_v48, %v464_v48  ;;  %v10913_v50 = vld [vmem:[#allocation5 + $0x1580] sm:$0xff]  }
 0x2ba   :  { %10004 = vmatpush3.bf16.msra.mxu0 %v10840_v54  ;;  %v10878_v54 = vld [vmem:[#allocation5 + $0x1400] sm:$0xff]  }
 0x2bb   :  { %10033 = vmatprep.subr.bf16.mxu0 %v10843_v60  ;;  %v683_v57 = vpack.c.bf16 %v472_v52, %v472_v52  ;;  %v684_v60 = vpack.c.bf16 %v471_v53, %v471_v53  ;;  %v10914_v52 = vld [vmem:[#allocation5 + $0x1548] sm:$0xff]  }
 0x2bc   :  { %10026 = vmatpush3.bf16.msra.mxu1 %v10842_v58  ;;  %v473_v58 = vcombine.high %v471_v53, %v471_v53 }
 0x2bd   :  { %10055 = vmatprep.subr.bf16.mxu1 %v10846_v1  ;;  %7924 = vmatmul.mubr.bf16.vlgmr.msra.gmra.mrb[72].mxu0 %v678_v0  ;;  %v10883_v0 = vld [vmem:[#allocation5 + $0x14c8] sm:$0xff]  }
 0x2be   :  { %10034 = vmatpush3.bf16.msra.mxu0 %v10845_v63  ;;  %8003 = vmatprep.mubr.bf16.mxu0 %v683_v57  ;;  %v685_v62 = vpack.c.bf16 %v473_v58, %v473_v58  ;;  %v10882_v63 = vld [vmem:[#allocation5 + $0x1408] sm:$0xff]   ;;  %v10918_v57 = vld [vmem:[#allocation5 + $0x1550] sm:$0xff]  }
 0x2bf   :  { %7964 = vmatmul.mubr.bf16.vlgmr.msra.gmra.mrb[72].mxu1 %v680_v5  ;;  %10035 = vmatprep.subr.bf16.mxu0 %v10848_v6  ;;  %v10884_v1 = vld [vmem:[#allocation5 + $0x1488] sm:$0xff]   ;;  %v10888_v5 = vld [vmem:[#allocation5 + $0x1490] sm:$0xff]   ;;  %v10889_v6 = vld [vmem:[#allocation5 + $0x1458] sm:$0xff]  }
 0x2c0   :  { %10056 = vmatpush3.bf16.msra.mxu1 %v10847_v4  ;;  %8043 = vmatprep.mubr.bf16.mxu1 %v685_v62  ;;  %v10887_v4 = vld [vmem:[#allocation5 + $0x14d0] sm:$0xff]   ;;  %v10923_v62 = vld [vmem:[#allocation5 + $0x1518] sm:$0xff]  }
 0x2c1   :  { %10057 = vmatprep.subr.bf16.mxu1 %v10850_v9  ;;  %v10892_v9 = vld [vmem:[#allocation5 + $0x1498] sm:$0xff]   ;;  %v10919_v58 = vld [vmem:[#allocation5 + $0x1510] sm:$0xff]  }
 0x2c2   :  { %10036 = vmatpush3.bf16.msra.mxu0 %v10849_v8  ;;  %v10891_v8 = vld [vmem:[#allocation5 + $0x14d8] sm:$0xff]  }
 0x2c3   :  { %10037 = vmatprep.subr.bf16.mxu0 %v10852_v11  ;;  %v10894_v11 = vld [vmem:[#allocation5 + $0x1420] sm:$0xff]  }
 0x2c4   :  { %10058 = vmatpush3.bf16.msra.mxu1 %v10851_v10  ;;  %v10893_v10 = vld [vmem:[#allocation5 + $0x1460] sm:$0xff]  }
 0x2c5   :  { %10059 = vmatprep.subr.bf16.mxu1 %v10854_v13  ;;  %v10896_v13 = vld [vmem:[#allocation5 + $0x14a0] sm:$0xff]  }
 0x2c6   :  { %10038 = vmatpush3.bf16.msra.mxu0 %v10853_v12  ;;  %v10895_v12 = vld [vmem:[#allocation5 + $0x14e0] sm:$0xff]  }
 0x2c7   :  { %10039 = vmatprep.subr.bf16.mxu0 %v10856_v15 }
 0x2c8   :  { %10060 = vmatpush3.bf16.msra.mxu1 %v10855_v14  ;;  %v10897_v14 = vld [vmem:[#allocation5 + $0x1468] sm:$0xff]  }
 0x2c9   :  { %10061 = vmatprep.subr.bf16.mxu1 %v10858_v17 }
 0x2ca   :  { %10040 = vmatpush3.bf16.msra.mxu0 %v10857_v16  ;;  %v10898_v16 = vld [vmem:[#allocation5 + $0x1428] sm:$0xff]  }
 0x2cb   :  { %10041 = vmatprep.subr.bf16.mxu0 %v10860_v19 }
 0x2cc   :  { %10062 = vmatpush3.bf16.msra.mxu1 %v10859_v18  ;;  %v10899_v18 = vld [vmem:[#allocation5 + $0x14e8] sm:$0xff]  }
 0x2cd   :  { %10063 = vmatprep.subr.bf16.mxu1 %v10862_v21 }
 0x2ce   :  { %10042 = vmatpush3.bf16.msra.mxu0 %v10861_v20 }
 0x2cf   :  { %10043 = vmatprep.subr.bf16.mxu0 %v10864_v23  ;;  %v10901_v23 = vld [vmem:[#allocation5 + $0x1470] sm:$0xff]  }
 0x2d0   :  { %v9741_v24 = vpop.f32.mrb[48].mxu0  ;;  %10064 = vmatpush3.bf16.msra.mxu1 %v10863_v22  ;;  %v10900_v22 = vld [vmem:[#allocation5 + $0x14a8] sm:$0xff]  }
 0x2d1   :  { %v9742_v26 = vpop.f32.mrb[49].mxu0  ;;  %10065 = vmatprep.subr.bf16.mxu1 %v10866_v27 }
 0x2d2   :  { %v9743_v28 = vadd.f32 %v9742_v26, %v9741_v24  ;;  %v9744_v29 = vpop.f32.mrb[50].mxu0  ;;  %v9763_v30 = vpop.f32.mrb[48].mxu1  ;;  %10044 = vmatpush3.bf16.msra.mxu0 %v10865_v25 }
 0x2d3   :  { %v9745_v33 = vpop.f32.mrb[51].mxu0  ;;  %v9764_v35 = vpop.f32.mrb[49].mxu1  ;;  %10045 = vmatprep.subr.bf16.mxu0 %v10868_v32 }
 0x2d4   :  { %v7446_v36 = vadd.f32 %v9743_v28, %v11294_v49  ;;  %v9765_v37 = vadd.f32 %v9764_v35, %v9763_v30  ;;  %v9766_v39 = vpop.f32.mrb[50].mxu1  ;;  %10066 = vmatpush3.bf16.msra.mxu1 %v10867_v31  ;;  %v10875_v49 = vld [vmem:[#allocation5 + $0x13b8] sm:$0xff]   ;;  %v10902_v28 = vld [vmem:[#allocation5 + $0x1430] sm:$0xff]  }
 0x2d5   :  { %v9767_v41 = vpop.f32.mrb[51].mxu1  ;;  %10067 = vmatprep.subr.bf16.mxu1 %v10870_v40  ;;  %v10903_v30 = vld [vmem:[#allocation5 + $0x14f0] sm:$0xff]   ;;  %v10905_v35 = vld [vmem:[#allocation5 + $0x1478] sm:$0xff]  }
 0x2d6   :  { %v11299_v42 = vadd.f32 %v9765_v37, %v7446_v36  ;;  %10046 = vmatpush3.bf16.msra.mxu0 %v10869_v38  ;;  %v10904_v33 = vld [vmem:[#allocation5 + $0x14b0] sm:$0xff]   ;;  %v10906_v36 = vld [vmem:[#allocation5 + $0x1438] sm:$0xff]  }
 0x2d7   :  { %10047 = vmatprep.subr.bf16.mxu0 %v10872_v44  ;;  %v10907_v37 = vld [vmem:[#allocation5 + $0x14f8] sm:$0xff]   ;;  %v108_v38 = vld [vmem:[#allocation2 + $0xa0] sm:$0xff] }
 0x2d8   :  { %10068 = vmatpush3.bf16.msra.mxu1 %v10871_v43  ;;  %v481_v39 = vrot.slane %v108_v38, %v11223_v34  ;;  %v10908_v40 = vld [vmem:[#allocation5 + $0x14b8] sm:$0xff]   ;;  %v474_v41 = vcombine.high %v108_v38, %v108_v38 }
 0x2d9   :  { %10069 = vmatprep.subr.bf16.mxu1 %v10874_v46 }
 0x2da   :  { %10048 = vmatpush3.bf16.msra.mxu0 %v10873_v45  ;;  %v489_v43 = vcombine.high %v481_v39, %v481_v39  ;;  %v488_v44 = vrot.slane %v474_v41, %v11223_v34  ;;  %v10911_v45 = vld [vmem:[#allocation5 + $0x1500] sm:$0xff]   ;;  %v686_v46 = vpack.c.bf16 %v481_v39, %v481_v39 }
 0x2db   :  { %10077 = vmatprep.subr.bf16.mxu0 %v10876_v51  ;;  %v10943_v39 = vld [vmem:[#allocation5 + $0x1600] sm:$0xff]  }
 0x2dc   :  { %10070 = vmatpush3.bf16.msra.mxu1 %v10875_v49  ;;  %v687_v48 = vpack.c.bf16 %v489_v43, %v489_v43  ;;  %v490_v49 = vcombine.high %v488_v44, %v488_v44  ;;  %v688_v51 = vpack.c.bf16 %v488_v44, %v488_v44  ;;  %v11314_v43 = vld.sshfl [vmem:[#allocation2 + $0xb0] sm:$0x33 pattern:$0x76325410] }
 0x2dd   :  { %10099 = vmatprep.subr.bf16.mxu1 %v10879_v56  ;;  %8004 = vmatmul.mubr.bf16.vlgmr.msra.gmra.mrb[76].mxu0 %v682_v55  ;;  %v10916_v55 = vld [vmem:[#allocation5 + $0x15c8] sm:$0xff]   ;;  %v515_v44 = vcombine.high %v11314_v43, %v11314_v43 }
 0x2de   :  { %10078 = vmatpush3.bf16.msra.mxu0 %v10878_v54  ;;  %8083 = vmatprep.mubr.bf16.mxu0 %v687_v48  ;;  %v689_v53 = vpack.c.bf16 %v490_v49, %v490_v49  ;;  %v10915_v54 = vld [vmem:[#allocation5 + $0x1508] sm:$0xff]  }
 0x2df   :  { %8044 = vmatmul.mubr.bf16.vlgmr.msra.gmra.mrb[76].mxu1 %v684_v60  ;;  %10079 = vmatprep.subr.bf16.mxu0 %v10881_v61  ;;  %v10917_v56 = vld [vmem:[#allocation5 + $0x1588] sm:$0xff]   ;;  %v10921_v60 = vld [vmem:[#allocation5 + $0x1590] sm:$0xff]   ;;  %v10922_v61 = vld [vmem:[#allocation5 + $0x1558] sm:$0xff]  }
 0x2e0   :  { %10100 = vmatpush3.bf16.msra.mxu1 %v10880_v59  ;;  %8123 = vmatprep.mubr.bf16.mxu1 %v689_v53  ;;  %v10920_v59 = vld [vmem:[#allocation5 + $0x15d0] sm:$0xff]   ;;  %v10948_v53 = vld [vmem:[#allocation5 + $0x1628] sm:$0xff]  }
 0x2e1   :  { %10101 = vmatprep.subr.bf16.mxu1 %v10883_v0  ;;  %v10925_v0 = vld [vmem:[#allocation5 + $0x1598] sm:$0xff]  }
 0x2e2   :  { %10080 = vmatpush3.bf16.msra.mxu0 %v10882_v63  ;;  %v10924_v63 = vld [vmem:[#allocation5 + $0x15d8] sm:$0xff]  }
 0x2e3   :  { %10081 = vmatprep.subr.bf16.mxu0 %v10885_v2  ;;  %v10927_v2 = vld [vmem:[#allocation5 + $0x1520] sm:$0xff]  }
 0x2e4   :  { %10102 = vmatpush3.bf16.msra.mxu1 %v10884_v1  ;;  %v10926_v1 = vld [vmem:[#allocation5 + $0x1560] sm:$0xff]  }
 0x2e5   :  { %10103 = vmatprep.subr.bf16.mxu1 %v10887_v4  ;;  %v10929_v4 = vld [vmem:[#allocation5 + $0x15a0] sm:$0xff]  }
 0x2e6   :  { %10082 = vmatpush3.bf16.msra.mxu0 %v10886_v3  ;;  %v10928_v3 = vld [vmem:[#allocation5 + $0x15e0] sm:$0xff]  }
 0x2e7   :  { %10083 = vmatprep.subr.bf16.mxu0 %v10889_v6 }
 0x2e8   :  { %10104 = vmatpush3.bf16.msra.mxu1 %v10888_v5  ;;  %v10930_v5 = vld [vmem:[#allocation5 + $0x1568] sm:$0xff]  }
 0x2e9   :  { %10105 = vmatprep.subr.bf16.mxu1 %v10891_v8 }
 0x2ea   :  { %10084 = vmatpush3.bf16.msra.mxu0 %v10890_v7  ;;  %v10931_v7 = vld [vmem:[#allocation5 + $0x1528] sm:$0xff]  }
 0x2eb   :  { %10085 = vmatprep.subr.bf16.mxu0 %v10893_v10 }
 0x2ec   :  { %10106 = vmatpush3.bf16.msra.mxu1 %v10892_v9  ;;  %v10932_v9 = vld [vmem:[#allocation5 + $0x15e8] sm:$0xff]  }
 0x2ed   :  { %10107 = vmatprep.subr.bf16.mxu1 %v10895_v12 }
 0x2ee   :  { %10086 = vmatpush3.bf16.msra.mxu0 %v10894_v11 }
 0x2ef   :  { %10087 = vmatprep.subr.bf16.mxu0 %v10897_v14 }
 0x2f0   :  { %v9785_v15 = vpop.f32.mrb[52].mxu0  ;;  %10108 = vmatpush3.bf16.msra.mxu1 %v10896_v13 }
 0x2f1   :  { %v9786_v17 = vpop.f32.mrb[53].mxu0  ;;  %10109 = vmatprep.subr.bf16.mxu1 %v10899_v18 }
 0x2f2   :  { %v9787_v19 = vadd.f32 %v9786_v17, %v9785_v15  ;;  %v9788_v20 = vpop.f32.mrb[54].mxu0  ;;  %v9807_v21 = vpop.f32.mrb[52].mxu1  ;;  %10088 = vmatpush3.bf16.msra.mxu0 %v10898_v16  ;;  %v10933_v15 = vld [vmem:[#allocation5 + $0x15a8] sm:$0xff]   ;;  %v10934_v16 = vld [vmem:[#allocation5 + $0x1570] sm:$0xff]  }
 0x2f3   :  { %v9789_v24 = vpop.f32.mrb[55].mxu0  ;;  %v9808_v25 = vpop.f32.mrb[53].mxu1  ;;  %10089 = vmatprep.subr.bf16.mxu0 %v10901_v23 }
 0x2f4   :  { %v7526_v26 = vadd.f32 %v9787_v19, %v11299_v42  ;;  %v9809_v27 = vadd.f32 %v9808_v25, %v9807_v21  ;;  %v9810_v29 = vpop.f32.mrb[54].mxu1  ;;  %10110 = vmatpush3.bf16.msra.mxu1 %v10900_v22  ;;  %v10909_v42 = vld [vmem:[#allocation5 + $0x1540] sm:$0xff]   ;;  %v10935_v19 = vld [vmem:[#allocation5 + $0x1530] sm:$0xff]   ;;  %v10938_v25 = vld [vmem:[#allocation5 + $0x1578] sm:$0xff]  }
 0x2f5   :  { %v9811_v31 = vpop.f32.mrb[55].mxu1  ;;  %10111 = vmatprep.subr.bf16.mxu1 %v10903_v30  ;;  %v10936_v22 = vld [vmem:[#allocation5 + $0x15f0] sm:$0xff]  }
 0x2f6   :  { %v11304_v32 = vadd.f32 %v9809_v27, %v7526_v26  ;;  %10090 = vmatpush3.bf16.msra.mxu0 %v10902_v28  ;;  %v10937_v24 = vld [vmem:[#allocation5 + $0x15b0] sm:$0xff]   ;;  %v10939_v26 = vld [vmem:[#allocation5 + $0x1538] sm:$0xff]  }
 0x2f7   :  { %10091 = vmatprep.subr.bf16.mxu0 %v10905_v35  ;;  %v10940_v27 = vld [vmem:[#allocation5 + $0x15f8] sm:$0xff]  }
 0x2f8   :  { %10112 = vmatpush3.bf16.msra.mxu1 %v10904_v33  ;;  %v109_v28 = vld [vmem:[#allocation2 + $0xa8] sm:$0xff] }
 0x2f9   :  { %10113 = vmatprep.subr.bf16.mxu1 %v10907_v37  ;;  %v498_v29 = vrot.slane %v109_v28, %v11223_v34  ;;  %v491_v30 = vcombine.high %v109_v28, %v109_v28  ;;  %v10941_v31 = vld [vmem:[#allocation5 + $0x15b8] sm:$0xff]   ;;  %v11119_v37 = vmov 0  }
 0x2fa   :  { %10092 = vmatpush3.bf16.msra.mxu0 %v10906_v36 }
 0x2fb   :  { %10121 = vmatprep.subr.bf16.mxu0 %v10909_v42  ;;  %v505_v33 = vrot.slane %v491_v30, %v11223_v34  ;;  %v690_v35 = vpack.c.bf16 %v498_v29, %v498_v29  ;;  %v10944_v42 = vld [vmem:[#allocation5 + $0x1608] sm:$0xff]   ;;  %v10945_v34 = vld [vmem:[#allocation5 + $0x1610] sm:$0xff]  }
 0x2fc   :  { %10114 = vmatpush3.bf16.msra.mxu1 %v10908_v40 }
 0x2fd   :  { %8084 = vmatmul.mubr.bf16.vlgmr.msra.gmra.mrb[80].mxu0 %v686_v46  ;;  %10143 = vmatprep.subr.bf16.mxu1 %v10912_v47  ;;  %v507_v38 = vcombine.high %v505_v33, %v505_v33  ;;  %v692_v40 = vpack.c.bf16 %v505_v33, %v505_v33  ;;  %v695_v46 = vpack.c.bf16 %v515_v44, %v515_v44  ;;  %v10947_v47 = vld [vmem:[#allocation5 + $0x1620] sm:$0xff]   ;;  %v10958_v33 = vld [vmem:[%s11393_s3 + $0x8] sm:$0xff]  }
 0x2fe   :  { %10122 = vmatpush3.bf16.msra.mxu0 %v10911_v45  ;;  %v10946_v45 = vld [vmem:[#allocation5 + $0x1618] sm:$0xff]  }
 0x2ff   :  { %8124 = vmatmul.mubr.bf16.vlgmr.msra.gmra.mrb[80].mxu1 %v688_v51  ;;  %10123 = vmatprep.subr.bf16.mxu0 %v10914_v52  ;;  %v693_v41 = vpack.c.bf16 %v507_v38, %v507_v38  ;;  %v10962_v38 = vld [vmem:[%s11393_s3 + $0x28] sm:$0xff]  }
 0x300   :  { %10144 = vmatpush3.bf16.msra.mxu1 %v10913_v50 }
 0x301   :  { %10145 = vmatprep.subr.bf16.mxu1 %v10916_v55  ;;  %8203 = vmatprep.mubr.bf16.mxu1 %v693_v41 }
 0x302   :  { %10124 = vmatpush3.bf16.msra.mxu0 %v10915_v54 }
 0x303   :  { %10125 = vmatprep.subr.bf16.mxu0 %v10918_v57 }
 0x304   :  { %10146 = vmatpush3.bf16.msra.mxu1 %v10917_v56 }
 0x305   :  { %10147 = vmatprep.subr.bf16.mxu1 %v10920_v59 }
 0x306   :  { %10126 = vmatpush3.bf16.msra.mxu0 %v10919_v58 }
 0x307   :  { %10127 = vmatprep.subr.bf16.mxu0 %v10922_v61  ;;  %v10949_v61 = vld [vmem:[#allocation5 + $0x1630] sm:$0xff]  }
 0x308   :  { %10148 = vmatpush3.bf16.msra.mxu1 %v10921_v60 }
 0x309   :  { %10149 = vmatprep.subr.bf16.mxu1 %v10924_v63  ;;  %v10951_v63 = vld [vmem:[#allocation5 + $0x1640] sm:$0xff]  }
 0x30a   :  { %10128 = vmatpush3.bf16.msra.mxu0 %v10923_v62  ;;  %v10950_v62 = vld [vmem:[#allocation5 + $0x1638] sm:$0xff]  }
 0x30b   :  { %10129 = vmatprep.subr.bf16.mxu0 %v10926_v1  ;;  %v10953_v1 = vld [vmem:[#allocation5 + $0x1650] sm:$0xff]  }
 0x30c   :  { %10150 = vmatpush3.bf16.msra.mxu1 %v10925_v0  ;;  %v10952_v0 = vld [vmem:[#allocation5 + $0x1648] sm:$0xff]  }
 0x30d   :  { %10151 = vmatprep.subr.bf16.mxu1 %v10928_v3  ;;  %v10955_v3 = vld [vmem:[#allocation5 + $0x1660] sm:$0xff]  }
 0x30e   :  { %10130 = vmatpush3.bf16.msra.mxu0 %v10927_v2  ;;  %v10954_v2 = vld [vmem:[#allocation5 + $0x1658] sm:$0xff]  }
 0x30f   :  { %10131 = vmatprep.subr.bf16.mxu0 %v10930_v5 }
 0x310   :  { %v9829_v6 = vpop.f32.mrb[56].mxu0  ;;  %10152 = vmatpush3.bf16.msra.mxu1 %v10929_v4  ;;  %v10956_v4 = vld [vmem:[#allocation5 + $0x1668] ss:$0 sps:$4 sm:$0xff]  }
 0x311   :  { %v9830_v8 = vpop.f32.mrb[57].mxu0  ;;  %10153 = vmatprep.subr.bf16.mxu1 %v10932_v9 }
 0x312   :  { %v9831_v10 = vadd.f32 %v9830_v8, %v9829_v6  ;;  %v9832_v11 = vpop.f32.mrb[58].mxu0  ;;  %v9851_v12 = vpop.f32.mrb[56].mxu1  ;;  %10132 = vmatpush3.bf16.msra.mxu0 %v10931_v7 }
 0x313   :  { %v9833_v13 = vpop.f32.mrb[59].mxu0  ;;  %v9852_v14 = vpop.f32.mrb[57].mxu1  ;;  %10133 = vmatprep.subr.bf16.mxu0 %v10934_v16 }
 0x314   :  { %v7606_v17 = vadd.f32 %v9831_v10, %v11304_v32  ;;  %v9853_v18 = vadd.f32 %v9852_v14, %v9851_v12  ;;  %v9854_v20 = vpop.f32.mrb[58].mxu1  ;;  %10154 = vmatpush3.bf16.msra.mxu1 %v10933_v15  ;;  %v506_v32 = vcombine.high %v498_v29, %v498_v29  ;;  %v6449_v10 = vsel %vm6447_vm1, %v10956_v4, 0 }
 0x315   :  { %v9855_v23 = vpop.f32.mrb[59].mxu1  ;;  %10155 = vmatprep.subr.bf16.mxu1 %v10936_v22  ;;  %v694_v15 = vpack.c.bf16 %v11314_v43, %v11314_v43 }
 0x316   :  { %v7646_v21 = vadd.f32 %v9853_v18, %v7606_v17  ;;  %10134 = vmatpush3.bf16.msra.mxu0 %v10935_v19  ;;  %v691_v36 = vpack.c.bf16 %v506_v32, %v506_v32  ;;  %v11120_v32 = vmov 0.0  }
 0x317   :  { %10135 = vmatprep.subr.bf16.mxu0 %v10938_v25 }
 0x318   :  { %10156 = vmatpush3.bf16.msra.mxu1 %v10937_v24  ;;  %8163 = vmatprep.mubr.bf16.mxu0 %v691_v36  ;;  %v10960_v36 = vld [vmem:[%s11393_s3 + $0x18] sm:$0xff]  }
 0x319   :  { %10157 = vmatprep.subr.bf16.mxu1 %v10940_v27 }
 0x31a   :  { %10136 = vmatpush3.bf16.msra.mxu0 %v10939_v26 }
 0x31b   :  { %8211 = vmatprep.subr.bf16.mxu0 %v11119_v37 }
 0x31c   :  { %10158 = vmatpush3.bf16.msra.mxu1 %v10941_v31  ;;  %v10957_v31 = vld [vmem:[%s11393_s3] sm:$0xff]  }
 0x31d   :  { %8164 = vmatmul.mubr.bf16.vlgmr.msra.gmra.mrb[84].mxu0 %v690_v35  ;;  %10177 = vmatprep.subr.bf16.mxu1 %v11120_v32  ;;  %v10959_v35 = vld [vmem:[%s11393_s3 + $0x10] sm:$0xff]  }
 0x31e   :  { %8212 = vmatpush1.bf16.msra.mxu0 %v10943_v39  ;;  %9183 = vmatprep.mubr.msk.bf16.mxu0 %vm6443_vm0, %v695_v46 }
 0x31f   :  { %8204 = vmatmul.mubr.bf16.vlgmr.msra.gmra.mrb[84].mxu1 %v692_v40  ;;  %8213 = vmatprep.subr.bf16.mxu0 %v11119_v37 }
 0x320   :  { %10178 = vmatpush3.bf16.msra.mxu1 %v10957_v31  ;;  %10193 = vmatprep.mubr.msk.bf16.mxu1 %vm11121_vm2, %v11120_v32 }
 0x321   :  { %10179 = vmatprep.subr.bf16.mxu1 %v11120_v32 }
 0x322   :  { %8214 = vmatpush1.bf16.msra.mxu0 %v10944_v42 }
 0x323   :  { %8215 = vmatprep.subr.bf16.mxu0 %v11119_v37 }
 0x324   :  { %10180 = vmatpush3.bf16.msra.mxu1 %v10958_v33  ;;  %v10966_v33 = vld [vmem:[%s11395_s5 + $0x8] sm:$0xff]  }
 0x325   :  { %10181 = vmatprep.subr.bf16.mxu1 %v11120_v32 }
 0x326   :  { %8216 = vmatpush1.bf16.msra.mxu0 %v10945_v34 }
 0x327   :  { %8217 = vmatprep.subr.bf16.mxu0 %v11119_v37 }
 0x328   :  { %10182 = vmatpush3.bf16.msra.mxu1 %v10959_v35  ;;  %v9184_v35 = vld [vmem:[#allocation8] ss:$0 sm:$0xff] }
 0x329   :  { %10183 = vmatprep.subr.bf16.mxu1 %v11120_v32 }
 0x32a   :  { %8218 = vmatpush1.bf16.msra.mxu0 %v10946_v45 }
 0x32b   :  { %8219 = vmatprep.subr.bf16.mxu0 %v11119_v37 }
 0x32c   :  { %10184 = vmatpush3.bf16.msra.mxu1 %v10960_v36 }
 0x32d   :  { %10185 = vmatprep.subr.bf16.mxu1 %v11120_v32 }
 0x32e   :  { %8220 = vmatpush1.bf16.msra.mxu0 %v10947_v47 }
 0x32f   :  { %8221 = vmatprep.subr.bf16.mxu0 %v11119_v37 }
 0x330   :  { %v9873_v48 = vpop.f32.mrb[60].mxu0 }
 0x331   :  { %v9874_v49 = vpop.f32.mrb[61].mxu0 }
 0x332   :  { %v9875_v50 = vadd.f32 %v9874_v49, %v9873_v48  ;;  %v9876_v51 = vpop.f32.mrb[62].mxu0  ;;  %v9895_v52 = vpop.f32.mrb[60].mxu1  ;;  %8222 = vmatpush1.bf16.msra.mxu0 %v10948_v53 }
 0x333   :  { %v9877_v54 = vpop.f32.mrb[63].mxu0  ;;  %v9896_v55 = vpop.f32.mrb[61].mxu1  ;;  %8223 = vmatprep.subr.bf16.mxu0 %v11119_v37  ;;  %v10964_v51 = vld [vmem:[%s11393_s3 + $0x38] sm:$0xff]  }
 0x334   :  { %v7686_v56 = vadd.f32 %v9875_v50, %v7646_v21  ;;  %v9897_v57 = vadd.f32 %v9896_v55, %v9895_v52  ;;  %v9898_v58 = vpop.f32.mrb[62].mxu1  ;;  %v10963_v50 = vld [vmem:[%s11393_s3 + $0x30] sm:$0xff]  }
 0x335   :  { %v9899_v59 = vpop.f32.mrb[63].mxu1 }
 0x336   :  { %v7726_v60 = vadd.f32 %v9897_v57, %v7686_v56  ;;  %8224 = vmatpush1.bf16.msra.mxu0 %v10949_v61 }
 0x337   :  { %8225 = vmatprep.subr.bf16.mxu0 %v11119_v37 }
 0x33a   :  { %8226 = vmatpush1.bf16.msra.mxu0 %v10950_v62 }
 0x33b   :  { %8227 = vmatprep.subr.bf16.mxu0 %v11119_v37 }
 0x33e   :  { %8228 = vmatpush1.bf16.msra.mxu0 %v10951_v63 }
 0x33f   :  { %8229 = vmatprep.subr.bf16.mxu0 %v11119_v37 }
 0x342   :  { %8230 = vmatpush1.bf16.msra.mxu0 %v10952_v0 }
 0x343   :  { %8231 = vmatprep.subr.bf16.mxu0 %v11119_v37 }
 0x346   :  { %8232 = vmatpush1.bf16.msra.mxu0 %v10953_v1 }
 0x347   :  { %8233 = vmatprep.subr.bf16.mxu0 %v11119_v37 }
 0x34a   :  { %8234 = vmatpush1.bf16.msra.mxu0 %v10954_v2 }
 0x34b   :  { %8235 = vmatprep.subr.bf16.mxu0 %v11119_v37 }
 0x34e   :  { %8236 = vmatpush1.bf16.msra.mxu0 %v10955_v3 }
 0x34f   :  { %8237 = vmatprep.subr.bf16.mxu0 %v11119_v37  ;;  %v10961_v37 = vld [vmem:[%s11393_s3 + $0x20] sm:$0xff]  }
 0x350   :  { %v9917_v5 = vpop.f32.mrb[64].mxu0  ;;  %10186 = vmatpush3.bf16.msra.mxu1 %v10961_v37 }
 0x351   :  { %v9918_v6 = vpop.f32.mrb[65].mxu0  ;;  %10187 = vmatprep.subr.bf16.mxu1 %v11120_v32 }
 0x352   :  { %v9919_v7 = vadd.f32 %v9918_v6, %v9917_v5  ;;  %v9920_v8 = vpop.f32.mrb[66].mxu0  ;;  %v9939_v9 = vpop.f32.mrb[64].mxu1  ;;  %8238 = vmatpush1.bf16.msra.mxu0 %v6449_v10 }
 0x353   :  { %v9921_v11 = vpop.f32.mrb[67].mxu0  ;;  %v9940_v12 = vpop.f32.mrb[65].mxu1 }
 0x354   :  { %v7766_v13 = vadd.f32 %v9919_v7, %v7726_v60  ;;  %v9941_v14 = vadd.f32 %v9940_v12, %v9939_v9  ;;  %v9942_v16 = vpop.f32.mrb[66].mxu1  ;;  %10188 = vmatpush3.bf16.msra.mxu1 %v10962_v38 }
 0x355   :  { %v9943_v17 = vpop.f32.mrb[67].mxu1  ;;  %8244 = vmatmul.mubr.bf16.vlgmr.msra.gmra.mrb[88].mxu0 %v694_v15  ;;  %10189 = vmatprep.subr.bf16.mxu1 %v11120_v32 }
 0x356   :  { %v7806_v18 = vadd.f32 %v9941_v14, %v7766_v13 }
 0x358   :  { %10190 = vmatpush3.bf16.msra.mxu1 %v10963_v50 }
 0x359   :  { %10191 = vmatprep.subr.bf16.mxu1 %v11120_v32 }
 0x35c   :  { %10192 = vmatpush3.bf16.msra.mxu1 %v10964_v51 }
 0x35d   :  { %10197 = vmatprep.subr.bf16.mxu1 %v11120_v32 }
 0x370   :  { %v9961_v19 = vpop.f32.mrb[68].mxu0 }
 0x371   :  { %v9962_v20 = vpop.f32.mrb[69].mxu0 }
 0x372   :  { %v9963_v21 = vadd.f32 %v9962_v20, %v9961_v19  ;;  %v9964_v22 = vpop.f32.mrb[70].mxu0  ;;  %v9983_v23 = vpop.f32.mrb[68].mxu1 }
 0x373   :  { %v9965_v24 = vpop.f32.mrb[71].mxu0  ;;  %v9984_v25 = vpop.f32.mrb[69].mxu1 }
 0x374   :  { %v7846_v26 = vadd.f32 %v9963_v21, %v7806_v18  ;;  %v9985_v27 = vadd.f32 %v9984_v25, %v9983_v23  ;;  %v9986_v28 = vpop.f32.mrb[70].mxu1 }
 0x375   :  { %v9987_v29 = vpop.f32.mrb[71].mxu1 }
 0x376   :  { %v7886_v30 = vadd.f32 %v9985_v27, %v7846_v26 }
 0x390   :  { %v10005_v39 = vpop.f32.mrb[72].mxu0 }
 0x391   :  { %v10006_v40 = vpop.f32.mrb[73].mxu0 }
 0x392   :  { %v10007_v41 = vadd.f32 %v10006_v40, %v10005_v39  ;;  %v10008_v42 = vpop.f32.mrb[74].mxu0  ;;  %v10027_v34 = vpop.f32.mrb[72].mxu1 }
 0x393   :  { %v10009_v43 = vpop.f32.mrb[75].mxu0  ;;  %v10028_v44 = vpop.f32.mrb[73].mxu1 }
 0x394   :  { %v7926_v45 = vadd.f32 %v10007_v41, %v7886_v30  ;;  %v10029_v46 = vadd.f32 %v10028_v44, %v10027_v34  ;;  %v10030_v47 = vpop.f32.mrb[74].mxu1  ;;  %v10965_v30 = vld [vmem:[%s11395_s5] sm:$0xff]   ;;  %s11122_s5 = smov [#allocation11]  }
 0x395   :  { %v10031_v48 = vpop.f32.mrb[75].mxu1  ;;  %v9193_v34 = vld [vmem:[#allocation10] ss:$0 sm:$0xff]  ;;  %s8452_s30 = sshll.u32 %s11122_s5, 4  ;;  %s8453_s30 = int_to_ptr.vmem [resolvable:$true] %s8452_s30 }
 0x396   :  { %v7966_v49 = vadd.f32 %v10029_v46, %v7926_v45  ;;  %s11081_s8 = scalar_lea.vmem %s8453_s30, 32  ;;  %p11086_p13 = scmp.lt.s32.totalorder %s8453_s30, %s8453_s30 }
 0x397   :  { %p11082_p12 = scmp.ne.s32.totalorder %s8453_s30, %s11081_s8  ;;  %p11087_p0 = scmp.lt.s32.totalorder %s11081_s8, %s11081_s8 }
 0x399   :  { %p11088_p1 = por %p11087_p0, %p11086_p13 }
 0x39b   :  { %p11089_p2 = pnand %p11088_p1, %p11082_p12 }
 0x3b0   :  { %v10049_v52 = vpop.f32.mrb[76].mxu0 }
 0x3b1   :  { %v10050_v53 = vpop.f32.mrb[77].mxu0 }
 0x3b2   :  { %v10051_v54 = vadd.f32 %v10050_v53, %v10049_v52  ;;  %v10052_v55 = vpop.f32.mrb[78].mxu0  ;;  %v10071_v56 = vpop.f32.mrb[76].mxu1 }
 0x3b3   :  { %v10053_v57 = vpop.f32.mrb[79].mxu0  ;;  %v10072_v58 = vpop.f32.mrb[77].mxu1 }
 0x3b4   :  { %v8006_v59 = vadd.f32 %v10051_v54, %v7966_v49  ;;  %v10073_v60 = vadd.f32 %v10072_v58, %v10071_v56  ;;  %v10074_v61 = vpop.f32.mrb[78].mxu1 }
 0x3b5   :  { %v10075_v62 = vpop.f32.mrb[79].mxu1 }
 0x3b6   :  { %v8046_v63 = vadd.f32 %v10073_v60, %v8006_v59 }
 0x3d0   :  { %v10093_v0 = vpop.f32.mrb[80].mxu0 }
 0x3d1   :  { %v10094_v1 = vpop.f32.mrb[81].mxu0 }
 0x3d2   :  { %v10095_v2 = vadd.f32 %v10094_v1, %v10093_v0  ;;  %v10096_v3 = vpop.f32.mrb[82].mxu0  ;;  %v10115_v4 = vpop.f32.mrb[80].mxu1 }
 0x3d3   :  { %v10097_v5 = vpop.f32.mrb[83].mxu0  ;;  %v10116_v6 = vpop.f32.mrb[81].mxu1 }
 0x3d4   :  { %v8086_v7 = vadd.f32 %v10095_v2, %v8046_v63  ;;  %v10117_v8 = vadd.f32 %v10116_v6, %v10115_v4  ;;  %v10118_v9 = vpop.f32.mrb[82].mxu1 }
 0x3d5   :  { %v10119_v10 = vpop.f32.mrb[83].mxu1 }
 0x3d6   :  { %v8126_v11 = vadd.f32 %v10117_v8, %v8086_v7 }
 0x3f0   :  { %v10137_v12 = vpop.f32.mrb[84].mxu0 }
 0x3f1   :  { %v10138_v13 = vpop.f32.mrb[85].mxu0 }
 0x3f2   :  { %v10139_v14 = vadd.f32 %v10138_v13, %v10137_v12  ;;  %v10140_v15 = vpop.f32.mrb[86].mxu0  ;;  %v10159_v16 = vpop.f32.mrb[84].mxu1 }
 0x3f3   :  { %v10141_v17 = vpop.f32.mrb[87].mxu0  ;;  %v10160_v18 = vpop.f32.mrb[85].mxu1 }
 0x3f4   :  { %v8166_v19 = vadd.f32 %v10139_v14, %v8126_v11  ;;  %v10161_v20 = vadd.f32 %v10160_v18, %v10159_v16  ;;  %v10162_v21 = vpop.f32.mrb[86].mxu1 }
 0x3f5   :  { %v10163_v22 = vpop.f32.mrb[87].mxu1 }
 0x3f6   :  { %v8206_v23 = vadd.f32 %v10161_v20, %v8166_v19 }
 0x428   :  { %v8245_v24 = vpop.f32.mrb[88].mxu0 }
 0x429   :  { %v8246_v25 = vadd.f32 %v8245_v24, %v8206_v23  ;;  %v8247_v26 = vpop.f32.mrb[89].mxu0 }
 0x42a   :  { %v8248_v27 = vpop.f32.mrb[90].mxu0 }
 0x42b   :  { %v8251_v28 = vmax.f32 %v8246_v25, 0.0  ;;  %v8249_v29 = vpop.f32.mrb[91].mxu0 }
 0x42d   :  { %v8252_v31 = vpack.c.bf16 %v8251_v28, %v8251_v28 }
 0x42f   :  { %10194 = vmatmul.mubr.bf16.vlgmr.msra.gmra.mrb[88].mxu1 %v8252_v31 }
 0x430   :  { %10198 = vmatpush3.bf16.msra.mxu1 %v10965_v30  ;;  %10201 = vmatprep.mubr.msk.bf16.mxu1 %vm11121_vm2, %v11120_v32 }
 0x431   :  { %10199 = vmatprep.subr.bf16.mxu1 %v11120_v32 }
 0x434   :  { %10200 = vmatpush3.bf16.msra.mxu1 %v10966_v33 }
 0x502   :  { %v8358_v36 = vpop.f32.mrb[88].mxu1 }
 0x503   :  { %v8359_v37 = vadd.f32 %v9184_v35, %v8358_v36  ;;  %v10195_v38 = vpop.f32.mrb[89].mxu1 }
 0x504   :  { %v8361_v39 = vpop.f32.mrb[90].mxu1 }
 0x505   :  { %v8364_v40 = vmax.f32 %v8359_v37, 0.0  ;;  %v10196_v41 = vpop.f32.mrb[91].mxu1 }
 0x507   :  { %v8365_v42 = vpack.c.bf16 %v8364_v40, %v8364_v40 }
 0x509   :  { %10202 = vmatmul.mubr.msk.bf16.vlgmr.msra.gmra.mrb[92].mxu1 %vm8389_vm3, %v8365_v42 }
 0x5dc   :  { %v8427_v43 = vpop.f32.mrb[92].mxu1 }
 0x5dd   :  { %v8428_v44 = vadd.f32 %v9193_v34, %v8427_v43  ;;  %v10203_v32 = vpop.f32.mrb[93].mxu1 }
 0x5de   :  { %v8430_v45 = vpop.f32.mrb[94].mxu1 }
 0x5df   :  { %v10204_v46 = vpop.f32.mrb[95].mxu1  ;;  %v8434_v47 = vsel %vm8433_vm4, %v8428_v44, -inf }
 0x5e0   :  { %8435 = vmax.xlane.f32.xlu0 %v8434_v47 }
 0x66d   :  { %v8436_v48 = vpop.xlane.xlu0 %8435 }
 0x66e   :  { %v8437_v49 = vsub.f32 %v8428_v44, %v8436_v48 }
 0x670   :  { %v8438_v50 = vmul.f32 1.442695, %v8437_v49 }
 0x672   :  { %10967 = vpow2.f32 %v8438_v50 }
 0x67c   :  { %v10968_v51 = vpop.eup %10967 }
 0x67d   :  { %v8440_v52 = vsel %vm8433_vm4, %v10968_v51, 0.0 }
 0x67e   :  { %8441 = vadd.xlane.f32.xlu0 %v8440_v52 }
 0x70b   :  { %v8442_v53 = vpop.xlane.xlu0 %8441 }
 0x70c   :  { %10969 = vrcp.f32 %v8442_v53 }
 0x716   :  { %v10970_v54 = vpop.eup %10969 }
 0x717   :  { %v8444_v55 = vmul.f32 %v10970_v54, %v10968_v51 }
 0x719   :  { %8445 = vst.msk [vmem:[#allocation11] sm:$0x3] %vm8433_vm4, %v8444_v55 }
 0x71a   :  { %11092 = shalt.err (!%p11089_p2)
}
 0x71b   :  { %s11093_s11 = scalar_lea.hbm %s11397_s7, 32 }
 0x71c   :  { %p11094_p3 = scmp.ne.s32.totalorder %s11397_s7, %s11093_s11  ;;  %p11097_p4 = scmp.lt.u32.totalorder %s11093_s11, %s11397_s7 }
 0x71e   :  { %p11099_p5 = pnand %p11097_p4, %p11094_p3 }
 0x720   :  { %11102 = shalt.err (!%p11099_p5)
}
 0x721   :  { %8455 = dma.vmem_to_hbm [thread:$0]  %s8453_s30, 32, %s11397_s7, [#allocation4]  }
 0x722   :  { %11109 = dma.done.wait [#allocation4], 32  }
 0x723   :  { %11110 = vsyncadd [#allocation4], 4294967264 }
 0x724   :  { %8459 = vsyncpa [#allocation3], 1 }
 0x725   :  { %8460 = vsyncpa [#allocation6], 1 }
 0x726   :  { %8461 = vsyncpa [#allocation9], 1 }
 0x727   :  { %8462 = vsyncpa [#allocation4], 1 }

</bundles_post_ra>
